<compile_context>
chip_gen: v7x
topology: tpu7x:2x2x1
jax: 0.10.0
libtpu: 0.0.40
codegen_flags: <defaults>
</compile_context>

<pallas_src>
import jax
import jax.numpy as jnp
from jax.experimental import pallas as pl
from jax.experimental.pallas import tpu as pltpu

HIDDEN = 1024
LANES = 128


def _mlp_kernel(x_ref, w1_ref, b1_ref, w2_ref, b2_ref, w3_ref, b3_ref, o_ref):
    # Layer 1: (tb, Fp)bf16 @ (Fp, 1024)bf16 -> fp32, + bias, ReLU
    h1 = jnp.dot(x_ref[...], w1_ref[...], preferred_element_type=jnp.float32)
    h1 = jnp.maximum(h1 + b1_ref[...], 0.0)

    # Layer 2: (tb, 1024)bf16 @ (1024, 1024)bf16 -> fp32, + bias, ReLU
    h2 = jnp.dot(h1.astype(jnp.bfloat16), w2_ref[...],
                 preferred_element_type=jnp.float32)
    h2 = jnp.maximum(h2 + b2_ref[...], 0.0)

    # Layer 3 (head, padded to 128 lanes): (tb, 1024)bf16 @ (1024, 128)bf16 -> fp32
    out = jnp.dot(h2.astype(jnp.bfloat16), w3_ref[...],
                  preferred_element_type=jnp.float32)
    o_ref[...] = (out + b3_ref[...]).astype(o_ref.dtype)


def _round_up(n, m):
    return ((n + m - 1) // m) * m


def mnist_network_forward(x, params):
    """x: (B, C, H, W); params: w1/w2/w3 bf16 stored (in, out), b1/b2/b3 fp32 (1, out)."""
    B = x.shape[0]
    x2d = x.reshape(B, -1).astype(jnp.bfloat16)        # torch.flatten(x, 1)
    F = x2d.shape[1]

    w1, b1 = params["w1"], params["b1"]
    w2, b2 = params["w2"], params["b2"]
    w3, b3 = params["w3"], params["b3"]
    H = w1.shape[1]
    num_classes = w3.shape[1]

    # Pad feature dim to a lane multiple (784 -> 896): contiguous, aligned x / w1 tiles.
    Fp = _round_up(F, LANES)
    if Fp != F:
        x2d = jnp.pad(x2d, ((0, 0), (0, Fp - F)))
        w1 = jnp.pad(w1, ((0, Fp - F), (0, 0)))

    # Pad the classifier head to 128 lanes -> lane-dense output stores, full MXU width.
    NCp = _round_up(num_classes, LANES)
    if NCp != num_classes:
        w3 = jnp.pad(w3, ((0, 0), (0, NCp - num_classes)))
        b3 = jnp.pad(b3, ((0, 0), (0, NCp - num_classes)))

    # Pad batch to a multiple of 16 (bf16 packs 16 rows / sublane register). Large
    # batches tile at 128 rows so the resident weights amortize over many tiles.
    Bp = _round_up(B, 16)
    if Bp > 128:
        Bp = _round_up(Bp, 128)
        tb = 128
    else:
        tb = Bp
    if Bp != B:
        x2d = jnp.pad(x2d, ((0, Bp - B), (0, 0)))

    grid = (Bp // tb,)

    flops = 2 * Bp * (Fp * H + H * H + H * NCp)
    bytes_accessed = (x2d.size * 2 + w1.size * 2 + w2.size * 2 + w3.size * 2
                      + b1.size * 4 + b2.size * 4 + b3.size * 4 + Bp * NCp * 4)

    out = pl.pallas_call(
        _mlp_kernel,
        out_shape=jax.ShapeDtypeStruct((Bp, NCp), jnp.float32),
        grid_spec=pltpu.PrefetchScalarGridSpec(
            num_scalar_prefetch=0,
            grid=grid,
            in_specs=[
                pl.BlockSpec((tb, Fp), lambda b: (b, 0)),     # x batch tile
                pl.BlockSpec((Fp, H), lambda b: (0, 0)),      # w1 (resident)
                pl.BlockSpec((1, H), lambda b: (0, 0)),       # b1 (resident)
                pl.BlockSpec((H, H), lambda b: (0, 0)),       # w2 (resident)
                pl.BlockSpec((1, H), lambda b: (0, 0)),       # b2 (resident)
                pl.BlockSpec((H, NCp), lambda b: (0, 0)),     # w3 (resident, padded head)
                pl.BlockSpec((1, NCp), lambda b: (0, 0)),     # b3 (resident, padded head)
            ],
            out_specs=pl.BlockSpec((tb, NCp), lambda b: (b, 0)),
        ),
        compiler_params=pltpu.CompilerParams(
            dimension_semantics=("parallel",)),
        cost_estimate=pl.CostEstimate(flops=flops, transcendentals=0,
                                      bytes_accessed=bytes_accessed),
    )(x2d, w1, b1, w2, b2, w3, b3)

    return out[:B, :num_classes]


def init_params(key, features, num_classes, hidden=HIDDEN):
    """nn.Linear-style U(-1/sqrt(fan_in), 1/sqrt(fan_in)) init.
    Weights stored as (in, out) in bf16 (kernel dtype); biases fp32 (1, out)."""
    keys = jax.random.split(key, 6)

    def linear(kw, kb, fan_in, fan_out):
        bound = 1.0 / jnp.sqrt(fan_in)
        w = jax.random.uniform(kw, (fan_in, fan_out), jnp.float32, -bound, bound)
        b = jax.random.uniform(kb, (1, fan_out), jnp.float32, -bound, bound)
        return w.astype(jnp.bfloat16), b

    w1, b1 = linear(keys[0], keys[1], features, hidden)
    w2, b2 = linear(keys[2], keys[3], hidden, hidden)
    w3, b3 = linear(keys[4], keys[5], hidden, num_classes)
    return {"w1": w1, "b1": b1, "w2": w2, "b2": b2, "w3": w3, "b3": b3}


def reference_forward(x, params):
    """Pure-JAX reference with the same bf16-operand / fp32-accumulation math."""
    h = x.reshape(x.shape[0], -1).astype(jnp.bfloat16)
    h1 = jnp.dot(h, params["w1"], preferred_element_type=jnp.float32)
    h1 = jnp.maximum(h1 + params["b1"], 0.0)
    h2 = jnp.dot(h1.astype(jnp.bfloat16), params["w2"],
                 preferred_element_type=jnp.float32)
    h2 = jnp.maximum(h2 + params["b2"], 0.0)
    out = jnp.dot(h2.astype(jnp.bfloat16), params["w3"],
                  preferred_element_type=jnp.float32)
    return out + params["b3"]


if __name__ == "__main__":
    key = jax.random.PRNGKey(0)
    k_x, k_p = jax.random.split(key)

    # MNIST-like small input: batch=8, NCHW (8, 1, 28, 28) -> features = 784
    B, C, H, W = 8, 1, 28, 28
    features = C * H * W
    num_classes = 10

    x = jax.random.normal(k_x, (B, C, H, W), dtype=jnp.float32)
    params = init_params(k_p, features, num_classes)

    out = mnist_network_forward(x, params)
    out = jax.block_until_ready(out)

    ref = reference_forward(x, params)
    assert out.shape == (B, num_classes), out.shape
    err = float(jnp.max(jnp.abs(out - ref)))
    assert jnp.allclose(out, ref, atol=2e-3, rtol=2e-3), err

    print("KERNEL_OK")
</pallas_src>

<mosaic_0001>
module attributes {stable_mosaic.version = 11 : i64} {
  func.func @_mlp_kernel(%arg0: i32, %arg1: memref<16x896xbf16, #tpu.memory_space<vmem>>, %arg2: memref<896x1024xbf16, #tpu.memory_space<vmem>>, %arg3: memref<1x1024xf32, #tpu.memory_space<vmem>>, %arg4: memref<1024x1024xbf16, #tpu.memory_space<vmem>>, %arg5: memref<1x1024xf32, #tpu.memory_space<vmem>>, %arg6: memref<1024x128xbf16, #tpu.memory_space<vmem>>, %arg7: memref<1x128xf32, #tpu.memory_space<vmem>>, %arg8: memref<16x128xf32, #tpu.memory_space<vmem>>) attributes {dimension_semantics = [#tpu.dimension_semantics<parallel>], iteration_bounds = array<i64: 1>, scalar_prefetch = 0 : i64, scratch_operands = 0 : i64, tpu.core_type = #tpu.core_type<tc>, window_params = [{transform_indices = @transform_0, window_bounds = array<i64: 16, 896>}, {pipeline_mode = #tpu.pipeline_mode<synchronous>, transform_indices = @transform_1, window_bounds = array<i64: 896, 1024>}, {pipeline_mode = #tpu.pipeline_mode<synchronous>, transform_indices = @transform_2, window_bounds = array<i64: 1, 1024>}, {pipeline_mode = #tpu.pipeline_mode<synchronous>, transform_indices = @transform_3, window_bounds = array<i64: 1024, 1024>}, {pipeline_mode = #tpu.pipeline_mode<synchronous>, transform_indices = @transform_4, window_bounds = array<i64: 1, 1024>}, {pipeline_mode = #tpu.pipeline_mode<synchronous>, transform_indices = @transform_5, window_bounds = array<i64: 1024, 128>}, {pipeline_mode = #tpu.pipeline_mode<synchronous>, transform_indices = @transform_6, window_bounds = array<i64: 1, 128>}, {transform_indices = @transform_7, window_bounds = array<i64: 16, 128>}]} {
    %c0 = arith.constant 0 : index
    %c0_0 = arith.constant 0 : index
    %0 = vector.load %arg1[%c0, %c0_0] : memref<16x896xbf16, #tpu.memory_space<vmem>>, vector<16x896xbf16>
    %c0_1 = arith.constant 0 : index
    %c0_2 = arith.constant 0 : index
    %1 = vector.load %arg2[%c0_1, %c0_2] : memref<896x1024xbf16, #tpu.memory_space<vmem>>, vector<896x1024xbf16>
    %cst = arith.constant dense<0.000000e+00> : vector<16x1024xf32>
    %2 = tpu.matmul %0, %1, %cst {dimension_numbers = #tpu.dot_dimension_numbers<[1], [0], [0], [1], [0, 0, 1, 1], [], []>} : vector<16x896xbf16>, vector<896x1024xbf16>, vector<16x1024xf32> -> vector<16x1024xf32>
    %c0_3 = arith.constant 0 : index
    %c0_4 = arith.constant 0 : index
    %3 = vector.load %arg3[%c0_3, %c0_4] : memref<1x1024xf32, #tpu.memory_space<vmem>>, vector<1x1024xf32>
    %4 = vector.broadcast %3 : vector<1x1024xf32> to vector<16x1024xf32>
    %5 = arith.addf %2, %4 : vector<16x1024xf32>
    %cst_5 = arith.constant 0.000000e+00 : f32
    %6 = vector.broadcast %cst_5 : f32 to vector<16x1024xf32>
    %7 = arith.maximumf %5, %6 : vector<16x1024xf32>
    %8 = arith.truncf %7 : vector<16x1024xf32> to vector<16x1024xbf16>
    %c0_6 = arith.constant 0 : index
    %c0_7 = arith.constant 0 : index
    %9 = vector.load %arg4[%c0_6, %c0_7] : memref<1024x1024xbf16, #tpu.memory_space<vmem>>, vector<1024x1024xbf16>
    %cst_8 = arith.constant dense<0.000000e+00> : vector<16x1024xf32>
    %10 = tpu.matmul %8, %9, %cst_8 {dimension_numbers = #tpu.dot_dimension_numbers<[1], [0], [0], [1], [0, 0, 1, 1], [], []>} : vector<16x1024xbf16>, vector<1024x1024xbf16>, vector<16x1024xf32> -> vector<16x1024xf32>
    %c0_9 = arith.constant 0 : index
    %c0_10 = arith.constant 0 : index
    %11 = vector.load %arg5[%c0_9, %c0_10] : memref<1x1024xf32, #tpu.memory_space<vmem>>, vector<1x1024xf32>
    %12 = vector.broadcast %11 : vector<1x1024xf32> to vector<16x1024xf32>
    %13 = arith.addf %10, %12 : vector<16x1024xf32>
    %cst_11 = arith.constant 0.000000e+00 : f32
    %14 = vector.broadcast %cst_11 : f32 to vector<16x1024xf32>
    %15 = arith.maximumf %13, %14 : vector<16x1024xf32>
    %16 = arith.truncf %15 : vector<16x1024xf32> to vector<16x1024xbf16>
    %c0_12 = arith.constant 0 : index
    %c0_13 = arith.constant 0 : index
    %17 = vector.load %arg6[%c0_12, %c0_13] : memref<1024x128xbf16, #tpu.memory_space<vmem>>, vector<1024x128xbf16>
    %cst_14 = arith.constant dense<0.000000e+00> : vector<16x128xf32>
    %18 = tpu.matmul %16, %17, %cst_14 {dimension_numbers = #tpu.dot_dimension_numbers<[1], [0], [0], [1], [0, 0, 1, 1], [], []>} : vector<16x1024xbf16>, vector<1024x128xbf16>, vector<16x128xf32> -> vector<16x128xf32>
    %c0_15 = arith.constant 0 : index
    %c0_16 = arith.constant 0 : index
    %19 = vector.load %arg7[%c0_15, %c0_16] : memref<1x128xf32, #tpu.memory_space<vmem>>, vector<1x128xf32>
    %20 = vector.broadcast %19 : vector<1x128xf32> to vector<16x128xf32>
    %21 = arith.addf %18, %20 : vector<16x128xf32>
    %c0_17 = arith.constant 0 : index
    %c0_18 = arith.constant 0 : index
    %22 = vector.load %arg8[%c0_17, %c0_18] : memref<16x128xf32, #tpu.memory_space<vmem>>, vector<16x128xf32>
    tpu.vector_store %arg8[%c0_17, %c0_18], %21 {strides = array<i32>} : memref<16x128xf32, #tpu.memory_space<vmem>>, vector<16x128xf32>,
    return
  }
  func.func @transform_0(%arg0: i32) -> (i32, i32) {
    %c0_i32 = arith.constant 0 : i32
    %c0_i32_0 = arith.constant 0 : i32
    return %arg0, %c0_i32 : i32, i32
  }
  func.func @transform_1(%arg0: i32) -> (i32, i32) {
    %c0_i32 = arith.constant 0 : i32
    %c0_i32_0 = arith.constant 0 : i32
    %c0_i32_1 = arith.constant 0 : i32
    return %c0_i32, %c0_i32_0 : i32, i32
  }
  func.func @transform_2(%arg0: i32) -> (i32, i32) {
    %c0_i32 = arith.constant 0 : i32
    %c0_i32_0 = arith.constant 0 : i32
    %c0_i32_1 = arith.constant 0 : i32
    return %c0_i32, %c0_i32_0 : i32, i32
  }
  func.func @transform_3(%arg0: i32) -> (i32, i32) {
    %c0_i32 = arith.constant 0 : i32
    %c0_i32_0 = arith.constant 0 : i32
    %c0_i32_1 = arith.constant 0 : i32
    return %c0_i32, %c0_i32_0 : i32, i32
  }
  func.func @transform_4(%arg0: i32) -> (i32, i32) {
    %c0_i32 = arith.constant 0 : i32
    %c0_i32_0 = arith.constant 0 : i32
    %c0_i32_1 = arith.constant 0 : i32
    return %c0_i32, %c0_i32_0 : i32, i32
  }
  func.func @transform_5(%arg0: i32) -> (i32, i32) {
    %c0_i32 = arith.constant 0 : i32
    %c0_i32_0 = arith.constant 0 : i32
    %c0_i32_1 = arith.constant 0 : i32
    return %c0_i32, %c0_i32_0 : i32, i32
  }
  func.func @transform_6(%arg0: i32) -> (i32, i32) {
    %c0_i32 = arith.constant 0 : i32
    %c0_i32_0 = arith.constant 0 : i32
    %c0_i32_1 = arith.constant 0 : i32
    return %c0_i32, %c0_i32_0 : i32, i32
  }
  func.func @transform_7(%arg0: i32) -> (i32, i32) {
    %c0_i32 = arith.constant 0 : i32
    %c0_i32_0 = arith.constant 0 : i32
    return %arg0, %c0_i32 : i32, i32
  }
}

</mosaic_0001>

<bundles_post_ra>
// kernel: tpu_custom_call.1
= control target key start
LH: loop header
LB: loop body
LE: loop exit
PB: predicated region body
PF: predicated region fallthrough
CT: control target
= control target key end

     0   :  { %12 = vsyncpa [#allocation3], 0  ;;  %s9952_s0 = inlined_call_operand.hbm [shape: bf16[16,896], index: 0, kind: input, shape index: {}]   ;;  %s9953_s1 = inlined_call_operand.hbm [shape: bf16[896,1024], index: 1, kind: input, shape index: {}]   ;;  %s9954_s2 = inlined_call_operand.hbm [shape: f32[1,1024], index: 2, kind: input, shape index: {}]   ;;  %s9955_s3 = inlined_call_operand.hbm [shape: bf16[1024,1024], index: 3, kind: input, shape index: {}]   ;;  %s9956_s4 = inlined_call_operand.hbm [shape: f32[1,1024], index: 4, kind: input, shape index: {}]   ;;  %s9957_s5 = inlined_call_operand.hbm [shape: bf16[1024,128], index: 5, kind: input, shape index: {}]   ;;  %s9958_s6 = inlined_call_operand.hbm [shape: f32[1,128], index: 6, kind: input, shape index: {}]   ;;  %s9959_s7 = inlined_call_operand.hbm [shape: f32[16,128], index: 7, kind: output, shape index: {}]  }
   0x1   :  { %13 = vsyncpa [#allocation6], 0 }
   0x2   :  { %14 = vsyncpa [#allocation9], 0 }
   0x3   :  { %15 = vsyncpa [#allocation12], 0 }
   0x4   :  { %16 = vsyncpa [#allocation4], 0  ;;  %s9667_s24 = smov [#allocation5]   ;;  %s9481_s28 = scalar_lea.hbm %s9953_s1, 57344 }
   0x5   :  { %s34_s25 = sshll.u32 %s9667_s24, 4  ;;  %p9482_p0 = scmp.ne.s32.totalorder %s9953_s1, %s9481_s28  ;;  %s35_s25 = int_to_ptr.vmem [resolvable:$true] %s34_s25 }
   0x6   :  { %p9485_p1 = scmp.lt.u32.totalorder %s9481_s28, %s9953_s1 }
   0x8   :  { %p9487_p2 = pnand %p9485_p1, %p9482_p0 }
   0xa   :  { %9490 = shalt.err (!%p9487_p2)
}
   0xb   :  { %s9491_s10 = scalar_lea.vmem %s35_s25, 57344  ;;  %p9496_p4 = scmp.lt.s32.totalorder %s35_s25, %s35_s25 }
   0xc   :  { %p9492_p3 = scmp.ne.s32.totalorder %s35_s25, %s9491_s10  ;;  %p9497_p5 = scmp.lt.s32.totalorder %s9491_s10, %s9491_s10 }
   0xe   :  { %p9498_p6 = por %p9497_p5, %p9496_p4 }
  0x10   :  { %p9499_p7 = pnand %p9498_p6, %p9492_p3 }
  0x12   :  { %9502 = shalt.err (!%p9499_p7)
}
  0x13   :  { %s9668_s11 = smov 512   ;;  %s9669_s12 = smov 32  }
  0x14   :  { %40 = dma.hbm_to_vmem [thread:$0]  %s9953_s1, 57344, %s35_s25, [#allocation6], %s9668_s11, %s9668_s11, %s9669_s12  }
  0x15   :  { %s9670_s15 = smov [#allocation8]   ;;  %s9671_s17 = smov [#allocation11]  }
  0x16   :  { %s56_s16 = sshll.u32 %s9670_s15, 4  ;;  %s78_s18 = sshll.u32 %s9671_s17, 4  ;;  %s57_s16 = int_to_ptr.vmem [resolvable:$true] %s56_s16  ;;  %s79_s18 = int_to_ptr.vmem [resolvable:$true] %s78_s18 }
  0x17   :  { %s9503_s21 = scalar_lea.hbm %s9955_s3, 65536 }
  0x18   :  { %p9504_p8 = scmp.ne.s32.totalorder %s9955_s3, %s9503_s21  ;;  %p9507_p9 = scmp.lt.u32.totalorder %s9503_s21, %s9955_s3 }
  0x1a   :  { %p9509_p10 = pnand %p9507_p9, %p9504_p8 }
  0x1c   :  { %9512 = shalt.err (!%p9509_p10)
}
  0x1d   :  { %s9513_s1 = scalar_lea.vmem %s57_s16, 65536  ;;  %p9518_p12 = scmp.lt.s32.totalorder %s57_s16, %s57_s16 }
  0x1e   :  { %p9514_p11 = scmp.ne.s32.totalorder %s57_s16, %s9513_s1  ;;  %p9519_p13 = scmp.lt.s32.totalorder %s9513_s1, %s9513_s1 }
  0x20   :  { %p9520_p0 = por %p9519_p13, %p9518_p12 }
  0x22   :  { %p9521_p1 = pnand %p9520_p0, %p9514_p11 }
  0x24   :  { %9524 = shalt.err (!%p9521_p1)
}
  0x25   :  { %62 = dma.hbm_to_vmem [thread:$0]  %s9955_s3, 65536, %s57_s16, [#allocation9], %s9668_s11, %s9668_s11, %s9669_s12  }
  0x26   :  { %s9525_s30 = scalar_lea.hbm %s9957_s5, 8192 }
  0x27   :  { %p9526_p2 = scmp.ne.s32.totalorder %s9957_s5, %s9525_s30  ;;  %p9529_p3 = scmp.lt.u32.totalorder %s9525_s30, %s9957_s5 }
  0x29   :  { %p9531_p4 = pnand %p9529_p3, %p9526_p2 }
  0x2b   :  { %9534 = shalt.err (!%p9531_p4)
}
  0x2c   :  { %s9535_s14 = scalar_lea.vmem %s79_s18, 8192  ;;  %p9540_p6 = scmp.lt.s32.totalorder %s79_s18, %s79_s18 }
  0x2d   :  { %p9536_p5 = scmp.ne.s32.totalorder %s79_s18, %s9535_s14  ;;  %p9541_p7 = scmp.lt.s32.totalorder %s9535_s14, %s9535_s14 }
  0x2f   :  { %p9542_p8 = por %p9541_p7, %p9540_p6 }
  0x31   :  { %p9543_p9 = pnand %p9542_p8, %p9536_p5 }
  0x33   :  { %9546 = shalt.err (!%p9543_p9)
}
  0x34   :  { %s9672_s3 = smov 64   ;;  %s9673_s11 = smov 4  }
  0x35   :  { %84 = dma.hbm_to_vmem [thread:$0]  %s9957_s5, 8192, %s79_s18, [#allocation12], %s9672_s3, %s9672_s3, %s9673_s11  }
  0x36   :  { %s9674_s16 = smov [#allocation2]   ;;  %s9547_s21 = scalar_lea.hbm %s9952_s0, 896 }
  0x37   :  { %s22_s17 = sshll.u32 %s9674_s16, 4  ;;  %p9548_p10 = scmp.ne.s32.totalorder %s9952_s0, %s9547_s21  ;;  %s23_s17 = int_to_ptr.vmem [resolvable:$true] %s22_s17 }
  0x38   :  { %p9551_p11 = scmp.lt.u32.totalorder %s9547_s21, %s9952_s0 }
  0x3a   :  { %p9553_p12 = pnand %p9551_p11, %p9548_p10 }
  0x3c   :  { %9556 = shalt.err (!%p9553_p12)
}
  0x3d   :  { %s9557_s1 = scalar_lea.vmem %s23_s17, 896  ;;  %p9562_p0 = scmp.lt.s32.totalorder %s23_s17, %s23_s17 }
  0x3e   :  { %p9558_p13 = scmp.ne.s32.totalorder %s23_s17, %s9557_s1  ;;  %p9563_p1 = scmp.lt.s32.totalorder %s9557_s1, %s9557_s1 }
  0x40   :  { %p9564_p2 = por %p9563_p1, %p9562_p0 }
  0x42   :  { %p9565_p3 = pnand %p9564_p2, %p9558_p13 }
  0x44   :  { %9568 = shalt.err (!%p9565_p3)
}
  0x45   :  { %s9675_s5 = smov 448   ;;  %s9676_s18 = smov 28  }
  0x46   :  { %28 = dma.hbm_to_vmem [thread:$0]  %s9952_s0, 896, %s23_s17, [#allocation3], %s9675_s5, %s9675_s5, %s9676_s18  }
  0x47   :  { %s9677_s28 = smov [#allocation7]   ;;  %s9678_s30 = smov [#allocation10]  }
  0x48   :  { %s47_s29 = sshll.u32 %s9677_s28, 4  ;;  %s69_s8 = sshll.u32 %s9678_s30, 4  ;;  %s48_s29 = int_to_ptr.vmem [resolvable:$true] %s47_s29  ;;  %s70_s8 = int_to_ptr.vmem [resolvable:$true] %s69_s8 }
  0x49   :  { %s9569_s13 = scalar_lea.hbm %s9954_s2, 128 }
  0x4a   :  { %p9570_p4 = scmp.ne.s32.totalorder %s9954_s2, %s9569_s13  ;;  %p9573_p5 = scmp.lt.u32.totalorder %s9569_s13, %s9954_s2 }
  0x4c   :  { %p9575_p6 = pnand %p9573_p5, %p9570_p4 }
  0x4e   :  { %9578 = shalt.err (!%p9575_p6)
}
  0x4f   :  { %s9579_s0 = scalar_lea.vmem %s48_s29, 128  ;;  %p9584_p8 = scmp.lt.s32.totalorder %s48_s29, %s48_s29 }
  0x50   :  { %p9580_p7 = scmp.ne.s32.totalorder %s48_s29, %s9579_s0  ;;  %p9585_p9 = scmp.lt.s32.totalorder %s9579_s0, %s9579_s0 }
  0x52   :  { %p9586_p10 = por %p9585_p9, %p9584_p8 }
  0x54   :  { %p9587_p11 = pnand %p9586_p10, %p9580_p7 }
  0x56   :  { %9590 = shalt.err (!%p9587_p11)
}
  0x57   :  { %50 = dma.hbm_to_vmem [thread:$0]  %s9954_s2, 128, %s48_s29, [#allocation6]  }
  0x58   :  { %s9591_s20 = scalar_lea.hbm %s9956_s4, 128 }
  0x59   :  { %p9592_p12 = scmp.ne.s32.totalorder %s9956_s4, %s9591_s20  ;;  %p9595_p13 = scmp.lt.u32.totalorder %s9591_s20, %s9956_s4 }
  0x5b   :  { %p9597_p0 = pnand %p9595_p13, %p9592_p12 }
  0x5d   :  { %9600 = shalt.err (!%p9597_p0)
}
  0x5e   :  { %s9601_s26 = scalar_lea.vmem %s70_s8, 128  ;;  %p9606_p2 = scmp.lt.s32.totalorder %s70_s8, %s70_s8 }
  0x5f   :  { %p9602_p1 = scmp.ne.s32.totalorder %s70_s8, %s9601_s26  ;;  %p9607_p3 = scmp.lt.s32.totalorder %s9601_s26, %s9601_s26 }
  0x61   :  { %p9608_p4 = por %p9607_p3, %p9606_p2 }
  0x63   :  { %p9609_p5 = pnand %p9608_p4, %p9602_p1 }
  0x65   :  { %9612 = shalt.err (!%p9609_p5)
}
  0x66   :  { %72 = dma.hbm_to_vmem [thread:$0]  %s9956_s4, 128, %s70_s8, [#allocation9]  }
  0x67   :  { %s9679_s5 = smov [#allocation13]   ;;  %s9613_s28 = scalar_lea.hbm %s9958_s6, 16 }
  0x68   :  { %s91_s18 = sshll.u32 %s9679_s5, 4  ;;  %p9614_p6 = scmp.ne.s32.totalorder %s9958_s6, %s9613_s28  ;;  %s92_s18 = int_to_ptr.vmem [resolvable:$true] %s91_s18 }
  0x69   :  { %p9617_p7 = scmp.lt.u32.totalorder %s9613_s28, %s9958_s6 }
  0x6b   :  { %p9619_p8 = pnand %p9617_p7, %p9614_p6 }
  0x6d   :  { %9622 = shalt.err (!%p9619_p8)
}
  0x6e   :  { %s9623_s13 = scalar_lea.vmem %s92_s18, 16  ;;  %s9627_s4 = scalar_lea.vmem %s92_s18, 32 }
  0x6f   :  { %p9624_p9 = scmp.ne.s32.totalorder %s92_s18, %s9623_s13  ;;  %p9628_p10 = scmp.lt.s32.totalorder %s92_s18, %s92_s18 }
  0x70   :  { %p9629_p11 = scmp.lt.s32.totalorder %s9627_s4, %s9623_s13 }
  0x72   :  { %p9630_p12 = por %p9629_p11, %p9628_p10 }
  0x74   :  { %p9631_p13 = pnand %p9630_p12, %p9624_p9 }
  0x76   :  { %9634 = shalt.err (!%p9631_p13)
}
  0x77   :  { %94 = dma.hbm_to_vmem [thread:$0]  %s9958_s6, 16, %s92_s18, [#allocation12]  }
  0x78   :  { %9657 = dma.done.wait [#allocation3], 896  }
  0x79   :  { %9658 = vsyncadd [#allocation3], 4294966400 }
  0x7a   :  { %9659 = dma.done.wait [#allocation6], 57472  }
  0x7b   :  { %9660 = vsyncadd [#allocation6], 4294909824 }
  0x7c   :  { %9661 = dma.done.wait [#allocation9], 65664  }
  0x7d   :  { %9662 = vsyncadd [#allocation9], 4294901632 }
  0x7e   :  { %9663 = dma.done.wait [#allocation12], 8208  }
  0x7f   :  { %9664 = vsyncadd [#allocation12], 4294959088  ;;  %v125_v0 = vld [vmem:[#allocation5] sm:$0xff]  ;;  %v126_v2 = vld [vmem:[#allocation5 + $0x8] sm:$0xff]  ;;  %s9681_s6 = smov [#allocation14]  }
  0x80   :  { %v129_v1 = vld [vmem:[#allocation5 + $0x20] sm:$0xff]  ;;  %v130_v4 = vld [vmem:[#allocation5 + $0x28] sm:$0xff]  ;;  %s8119_s3 = sshll.u32 %s9681_s6, 4  ;;  %s8120_s3 = int_to_ptr.vmem [resolvable:$true] %s8119_s3 }
  0x81   :  { %v8142_v3 = vcombine.high %v125_v0, %v129_v1  ;;  %v8141_v5 = vcombine.low %v125_v0, %v129_v1  ;;  %v133_v6 = vld [vmem:[#allocation5 + $0x40] sm:$0xff]  ;;  %v8144_v8 = vcombine.high %v126_v2, %v130_v4  ;;  %v8143_v9 = vcombine.low %v126_v2, %v130_v4  ;;  %v134_v11 = vld [vmem:[#allocation5 + $0x48] sm:$0xff]  ;;  %s9635_s11 = scalar_lea.vmem %s8120_s3, 256  ;;  %p9640_p1 = scmp.lt.s32.totalorder %s8120_s3, %s8120_s3 }
  0x82   :  { %v137_v7 = vld [vmem:[#allocation5 + $0x60] sm:$0xff]  ;;  %v138_v12 = vld [vmem:[#allocation5 + $0x68] sm:$0xff]  ;;  %p9636_p0 = scmp.ne.s32.totalorder %s8120_s3, %s9635_s11  ;;  %p9641_p2 = scmp.lt.s32.totalorder %s9635_s11, %s9635_s11 }
  0x83   :  { %v8150_v10 = vcombine.high %v133_v6, %v137_v7  ;;  %v141_v13 = vld [vmem:[#allocation5 + $0x80] sm:$0xff]  ;;  %2891 = vmatprep.subr.bf16.mxu0 %v8142_v3  ;;  %v8152_v14 = vcombine.high %v134_v11, %v138_v12  ;;  %v142_v16 = vld [vmem:[#allocation5 + $0x88] sm:$0xff]  ;;  %3063 = vmatprep.subr.bf16.mxu1 %v8144_v8  ;;  %v8149_v18 = vcombine.low %v133_v6, %v137_v7 }
  0x84   :  { %v145_v15 = vld [vmem:[#allocation5 + $0xa0] sm:$0xff]  ;;  %v146_v17 = vld [vmem:[#allocation5 + $0xa8] sm:$0xff]  ;;  %2892 = vmatpush1.bf16.msra.mxu0 %v8141_v5  ;;  %3064 = vmatpush1.bf16.msra.mxu1 %v8143_v9  ;;  %v8151_v19 = vcombine.low %v134_v11, %v138_v12  ;;  %p9642_p3 = por %p9641_p2, %p9640_p1 }
  0x85   :  { %2893 = vmatprep.subr.bf16.mxu0 %v8150_v10  ;;  %v8158_v20 = vcombine.high %v141_v13, %v145_v15  ;;  %3065 = vmatprep.subr.bf16.mxu1 %v8152_v14  ;;  %v8160_v21 = vcombine.high %v142_v16, %v146_v17  ;;  %v149_v22 = vld [vmem:[#allocation5 + $0xc0] sm:$0xff]  ;;  %v150_v24 = vld [vmem:[#allocation5 + $0xc8] sm:$0xff]  ;;  %v8157_v26 = vcombine.low %v141_v13, %v145_v15 }
  0x86   :  { %v153_v23 = vld [vmem:[#allocation5 + $0xe0] sm:$0xff]  ;;  %v154_v25 = vld [vmem:[#allocation5 + $0xe8] sm:$0xff]  ;;  %v8159_v27 = vcombine.low %v142_v16, %v146_v17  ;;  %p9643_p4 = pnand %p9642_p3, %p9636_p0 }
  0x87   :  { %v8166_v28 = vcombine.high %v149_v22, %v153_v23  ;;  %v8168_v29 = vcombine.high %v150_v24, %v154_v25  ;;  %v157_v30 = vld [vmem:[#allocation5 + $0x100] sm:$0xff]  ;;  %v158_v32 = vld [vmem:[#allocation5 + $0x108] sm:$0xff]  ;;  %v8165_v34 = vcombine.low %v149_v22, %v153_v23  ;;  %v8167_v35 = vcombine.low %v150_v24, %v154_v25 }
  0x88   :  { %2894 = vmatpush1.bf16.msra.mxu0 %v8149_v18  ;;  %3066 = vmatpush1.bf16.msra.mxu1 %v8151_v19  ;;  %v161_v31 = vld [vmem:[#allocation5 + $0x120] sm:$0xff]  ;;  %v162_v33 = vld [vmem:[#allocation5 + $0x128] sm:$0xff] }
  0x89   :  { %2895 = vmatprep.subr.bf16.mxu0 %v8158_v20  ;;  %3067 = vmatprep.subr.bf16.mxu1 %v8160_v21  ;;  %v8174_v36 = vcombine.high %v157_v30, %v161_v31  ;;  %v8176_v37 = vcombine.high %v158_v32, %v162_v33  ;;  %v165_v38 = vld [vmem:[#allocation5 + $0x140] sm:$0xff]  ;;  %v166_v40 = vld [vmem:[#allocation5 + $0x148] sm:$0xff]  ;;  %v8173_v42 = vcombine.low %v157_v30, %v161_v31 }
  0x8a   :  { %v169_v39 = vld [vmem:[#allocation5 + $0x160] sm:$0xff]  ;;  %v170_v41 = vld [vmem:[#allocation5 + $0x168] sm:$0xff]  ;;  %v8175_v43 = vcombine.low %v158_v32, %v162_v33 }
  0x8b   :  { %v8182_v44 = vcombine.high %v165_v38, %v169_v39  ;;  %v8184_v45 = vcombine.high %v166_v40, %v170_v41  ;;  %v173_v46 = vld [vmem:[#allocation5 + $0x180] sm:$0xff]  ;;  %v174_v48 = vld [vmem:[#allocation5 + $0x188] sm:$0xff]  ;;  %v8181_v50 = vcombine.low %v165_v38, %v169_v39  ;;  %v8183_v51 = vcombine.low %v166_v40, %v170_v41 }
  0x8c   :  { %2896 = vmatpush1.bf16.msra.mxu0 %v8157_v26  ;;  %3068 = vmatpush1.bf16.msra.mxu1 %v8159_v27  ;;  %v177_v47 = vld [vmem:[#allocation5 + $0x1a0] sm:$0xff]  ;;  %v178_v49 = vld [vmem:[#allocation5 + $0x1a8] sm:$0xff] }
  0x8d   :  { %2897 = vmatprep.subr.bf16.mxu0 %v8166_v28  ;;  %3069 = vmatprep.subr.bf16.mxu1 %v8168_v29  ;;  %v8190_v52 = vcombine.high %v173_v46, %v177_v47  ;;  %v8192_v53 = vcombine.high %v174_v48, %v178_v49  ;;  %v181_v54 = vld [vmem:[#allocation5 + $0x1c0] sm:$0xff]  ;;  %v9399_v56 = vld [vmem:[#allocation2 + $0x4] ss:$28 sps:$4 sm:$0xff]   ;;  %v8189_v59 = vcombine.low %v173_v46, %v177_v47 }
  0x8e   :  { %v185_v55 = vld [vmem:[#allocation5 + $0x1e0] sm:$0xff]  ;;  %v182_v57 = vld [vmem:[#allocation5 + $0x1c8] sm:$0xff]  ;;  %2923 = vmatprep.mubr.bf16.mxu0 %v9399_v56  ;;  %v8191_v60 = vcombine.low %v174_v48, %v178_v49  ;;  %3095 = vmatprep.mubr.bf16.mxu1 %v9399_v56 }
  0x8f   :  { %v186_v58 = vld [vmem:[#allocation5 + $0x1e8] sm:$0xff]  ;;  %v8198_v61 = vcombine.high %v181_v54, %v185_v55  ;;  %v189_v63 = vld [vmem:[#allocation5 + $0x200] sm:$0xff]  ;;  %v8197_v3 = vcombine.low %v181_v54, %v185_v55 }
  0x90   :  { %2898 = vmatpush1.bf16.msra.mxu0 %v8165_v34  ;;  %3070 = vmatpush1.bf16.msra.mxu1 %v8167_v35  ;;  %v8200_v62 = vcombine.high %v182_v57, %v186_v58  ;;  %v193_v0 = vld [vmem:[#allocation5 + $0x220] sm:$0xff]  ;;  %v190_v1 = vld [vmem:[#allocation5 + $0x208] sm:$0xff]  ;;  %v8199_v4 = vcombine.low %v182_v57, %v186_v58 }
  0x91   :  { %2899 = vmatprep.subr.bf16.mxu0 %v8174_v36  ;;  %3071 = vmatprep.subr.bf16.mxu1 %v8176_v37  ;;  %v194_v2 = vld [vmem:[#allocation5 + $0x228] sm:$0xff]  ;;  %v8206_v5 = vcombine.high %v189_v63, %v193_v0  ;;  %v197_v7 = vld [vmem:[#allocation5 + $0x240] sm:$0xff]  ;;  %v8205_v11 = vcombine.low %v189_v63, %v193_v0 }
  0x92   :  { %v8208_v6 = vcombine.high %v190_v1, %v194_v2  ;;  %v201_v8 = vld [vmem:[#allocation5 + $0x260] sm:$0xff]  ;;  %v198_v9 = vld [vmem:[#allocation5 + $0x248] sm:$0xff]  ;;  %v8207_v12 = vcombine.low %v190_v1, %v194_v2 }
  0x93   :  { %v202_v10 = vld [vmem:[#allocation5 + $0x268] sm:$0xff]  ;;  %v8214_v13 = vcombine.high %v197_v7, %v201_v8  ;;  %v205_v15 = vld [vmem:[#allocation5 + $0x280] sm:$0xff]  ;;  %v8213_v19 = vcombine.low %v197_v7, %v201_v8 }
  0x94   :  { %2900 = vmatpush1.bf16.msra.mxu0 %v8173_v42  ;;  %3072 = vmatpush1.bf16.msra.mxu1 %v8175_v43  ;;  %v8216_v14 = vcombine.high %v198_v9, %v202_v10  ;;  %v209_v16 = vld [vmem:[#allocation5 + $0x2a0] sm:$0xff]  ;;  %v206_v17 = vld [vmem:[#allocation5 + $0x288] sm:$0xff]  ;;  %v8215_v20 = vcombine.low %v198_v9, %v202_v10 }
  0x95   :  { %2901 = vmatprep.subr.bf16.mxu0 %v8182_v44  ;;  %3073 = vmatprep.subr.bf16.mxu1 %v8184_v45  ;;  %v210_v18 = vld [vmem:[#allocation5 + $0x2a8] sm:$0xff]  ;;  %v8222_v21 = vcombine.high %v205_v15, %v209_v16  ;;  %v213_v23 = vld [vmem:[#allocation5 + $0x2c0] sm:$0xff]  ;;  %v8221_v27 = vcombine.low %v205_v15, %v209_v16 }
  0x96   :  { %v8224_v22 = vcombine.high %v206_v17, %v210_v18  ;;  %v217_v24 = vld [vmem:[#allocation5 + $0x2e0] sm:$0xff]  ;;  %v214_v25 = vld [vmem:[#allocation5 + $0x2c8] sm:$0xff]  ;;  %v8223_v28 = vcombine.low %v206_v17, %v210_v18  ;;  %v9402_v18 = vld [vmem:[#allocation2 + $0xc] ss:$28 sps:$4 sm:$0xff]  }
  0x97   :  { %v218_v26 = vld [vmem:[#allocation5 + $0x2e8] sm:$0xff]  ;;  %v8230_v29 = vcombine.high %v213_v23, %v217_v24  ;;  %v221_v31 = vld [vmem:[#allocation5 + $0x300] sm:$0xff]  ;;  %v8229_v35 = vcombine.low %v213_v23, %v217_v24 }
  0x98   :  { %2902 = vmatpush1.bf16.msra.mxu0 %v8181_v50  ;;  %3074 = vmatpush1.bf16.msra.mxu1 %v8183_v51  ;;  %v8232_v30 = vcombine.high %v214_v25, %v218_v26  ;;  %v225_v32 = vld [vmem:[#allocation5 + $0x320] sm:$0xff]  ;;  %v222_v33 = vld [vmem:[#allocation5 + $0x308] sm:$0xff]  ;;  %v8231_v36 = vcombine.low %v214_v25, %v218_v26 }
  0x99   :  { %2903 = vmatprep.subr.bf16.mxu0 %v8190_v52  ;;  %3075 = vmatprep.subr.bf16.mxu1 %v8192_v53  ;;  %v226_v34 = vld [vmem:[#allocation5 + $0x328] sm:$0xff]  ;;  %v8238_v37 = vcombine.high %v221_v31, %v225_v32  ;;  %v229_v39 = vld [vmem:[#allocation5 + $0x340] sm:$0xff]  ;;  %v8237_v43 = vcombine.low %v221_v31, %v225_v32 }
  0x9a   :  { %v8240_v38 = vcombine.high %v222_v33, %v226_v34  ;;  %v233_v40 = vld [vmem:[#allocation5 + $0x360] sm:$0xff]  ;;  %v230_v41 = vld [vmem:[#allocation5 + $0x348] sm:$0xff]  ;;  %v8239_v44 = vcombine.low %v222_v33, %v226_v34 }
  0x9b   :  { %v234_v42 = vld [vmem:[#allocation5 + $0x368] sm:$0xff]  ;;  %v8246_v45 = vcombine.high %v229_v39, %v233_v40  ;;  %v237_v47 = vld [vmem:[#allocation5 + $0x380] sm:$0xff]  ;;  %v8245_v51 = vcombine.low %v229_v39, %v233_v40 }
  0x9c   :  { %2904 = vmatpush1.bf16.msra.mxu0 %v8189_v59  ;;  %3076 = vmatpush1.bf16.msra.mxu1 %v8191_v60  ;;  %v8248_v46 = vcombine.high %v230_v41, %v234_v42  ;;  %v241_v48 = vld [vmem:[#allocation5 + $0x3a0] sm:$0xff]  ;;  %v238_v49 = vld [vmem:[#allocation5 + $0x388] sm:$0xff]  ;;  %v8247_v52 = vcombine.low %v230_v41, %v234_v42 }
  0x9d   :  { %2905 = vmatprep.subr.bf16.mxu0 %v8198_v61  ;;  %3077 = vmatprep.subr.bf16.mxu1 %v8200_v62  ;;  %v242_v50 = vld [vmem:[#allocation5 + $0x3a8] sm:$0xff]  ;;  %v8254_v53 = vcombine.high %v237_v47, %v241_v48  ;;  %v245_v55 = vld [vmem:[#allocation5 + $0x3c0] sm:$0xff]  ;;  %v8253_v59 = vcombine.low %v237_v47, %v241_v48 }
  0x9e   :  { %v8256_v54 = vcombine.high %v238_v49, %v242_v50  ;;  %v249_v56 = vld [vmem:[#allocation5 + $0x3e0] sm:$0xff]  ;;  %v246_v57 = vld [vmem:[#allocation5 + $0x3c8] sm:$0xff]  ;;  %v8255_v60 = vcombine.low %v238_v49, %v242_v50 }
  0x9f   :  { %v250_v58 = vld [vmem:[#allocation5 + $0x3e8] sm:$0xff]  ;;  %v8262_v61 = vcombine.high %v245_v55, %v249_v56  ;;  %v253_v63 = vld [vmem:[#allocation5 + $0x400] sm:$0xff] }
  0xa0   :  { %2906 = vmatpush1.bf16.msra.mxu0 %v8197_v3  ;;  %3078 = vmatpush1.bf16.msra.mxu1 %v8199_v4  ;;  %v8264_v62 = vcombine.high %v246_v57, %v250_v58  ;;  %v257_v0 = vld [vmem:[#allocation5 + $0x420] sm:$0xff]  ;;  %v254_v1 = vld [vmem:[#allocation5 + $0x408] sm:$0xff]  ;;  %v8261_v3 = vcombine.low %v245_v55, %v249_v56  ;;  %v8263_v4 = vcombine.low %v246_v57, %v250_v58 }
  0xa1   :  { %2907 = vmatprep.subr.bf16.mxu0 %v8206_v5  ;;  %3079 = vmatprep.subr.bf16.mxu1 %v8208_v6  ;;  %v258_v2 = vld [vmem:[#allocation5 + $0x428] sm:$0xff]  ;;  %v8270_v5 = vcombine.high %v253_v63, %v257_v0  ;;  %v261_v7 = vld [vmem:[#allocation5 + $0x440] sm:$0xff] }
  0xa2   :  { %v8272_v6 = vcombine.high %v254_v1, %v258_v2  ;;  %v265_v8 = vld [vmem:[#allocation5 + $0x460] sm:$0xff]  ;;  %v262_v10 = vld [vmem:[#allocation5 + $0x448] sm:$0xff] }
  0xa3   :  { %v9401_v9 = vld [vmem:[#allocation2] ss:$28 sps:$4 sm:$0xff]  }
  0xa4   :  { %2908 = vmatpush1.bf16.msra.mxu0 %v8205_v11  ;;  %3080 = vmatpush1.bf16.msra.mxu1 %v8207_v12  ;;  %v266_v11 = vld [vmem:[#allocation5 + $0x468] sm:$0xff]  ;;  %v8269_v12 = vcombine.low %v253_v63, %v257_v0  ;;  %v269_v15 = vld [vmem:[#allocation5 + $0x480] sm:$0xff] }
  0xa5   :  { %2909 = vmatprep.subr.bf16.mxu0 %v8214_v13  ;;  %3081 = vmatprep.subr.bf16.mxu1 %v8216_v14  ;;  %v8271_v13 = vcombine.low %v254_v1, %v258_v2  ;;  %v8278_v14 = vcombine.high %v261_v7, %v265_v8  ;;  %v8280_v16 = vcombine.high %v262_v10, %v266_v11  ;;  %v273_v17 = vld [vmem:[#allocation5 + $0x4a0] sm:$0xff]  ;;  %v286_v34 = vld [vmem:[#allocation5 + $0x508] sm:$0xff] }
  0xa6   :  { %v8286_v23 = vcombine.high %v269_v15, %v273_v17  ;;  %v277_v24 = vld [vmem:[#allocation5 + $0x4c0] sm:$0xff]  ;;  %v294_v42 = vld [vmem:[#allocation5 + $0x548] sm:$0xff] }
  0xa7   :  { %v281_v25 = vld [vmem:[#allocation5 + $0x4e0] sm:$0xff]  ;;  %v302_v50 = vld [vmem:[#allocation5 + $0x588] sm:$0xff] }
  0xa8   :  { %2910 = vmatpush1.bf16.msra.mxu0 %v8213_v19  ;;  %3082 = vmatpush1.bf16.msra.mxu1 %v8215_v20  ;;  %v270_v19 = vld [vmem:[#allocation5 + $0x488] sm:$0xff]  ;;  %v8294_v31 = vcombine.high %v277_v24, %v281_v25  ;;  %v285_v32 = vld [vmem:[#allocation5 + $0x500] sm:$0xff] }
  0xa9   :  { %2911 = vmatprep.subr.bf16.mxu0 %v8222_v21  ;;  %3083 = vmatprep.subr.bf16.mxu1 %v8224_v22  ;;  %v274_v20 = vld [vmem:[#allocation5 + $0x4a8] sm:$0xff]  ;;  %v8277_v21 = vcombine.low %v261_v7, %v265_v8  ;;  %v8279_v22 = vcombine.low %v262_v10, %v266_v11  ;;  %v289_v33 = vld [vmem:[#allocation5 + $0x520] sm:$0xff] }
  0xaa   :  { %v8288_v26 = vcombine.high %v270_v19, %v274_v20  ;;  %v8302_v39 = vcombine.high %v285_v32, %v289_v33  ;;  %v293_v40 = vld [vmem:[#allocation5 + $0x540] sm:$0xff]  ;;  %v310_v58 = vld [vmem:[#allocation5 + $0x5c8] sm:$0xff] }
  0xab   :  { %v297_v41 = vld [vmem:[#allocation5 + $0x560] sm:$0xff]  ;;  %v318_v2 = vld [vmem:[#allocation5 + $0x608] sm:$0xff] }
  0xac   :  { %2912 = vmatpush1.bf16.msra.mxu0 %v8221_v27  ;;  %3084 = vmatpush1.bf16.msra.mxu1 %v8223_v28  ;;  %v278_v27 = vld [vmem:[#allocation5 + $0x4c8] sm:$0xff]  ;;  %v8310_v47 = vcombine.high %v293_v40, %v297_v41  ;;  %v301_v48 = vld [vmem:[#allocation5 + $0x580] sm:$0xff] }
  0xad   :  { %2913 = vmatprep.subr.bf16.mxu0 %v8230_v29  ;;  %3085 = vmatprep.subr.bf16.mxu1 %v8232_v30  ;;  %v282_v28 = vld [vmem:[#allocation5 + $0x4e8] sm:$0xff]  ;;  %v8285_v29 = vcombine.low %v269_v15, %v273_v17  ;;  %v8287_v30 = vcombine.low %v270_v19, %v274_v20  ;;  %v305_v49 = vld [vmem:[#allocation5 + $0x5a0] sm:$0xff] }
  0xae   :  { %v8318_v55 = vcombine.high %v301_v48, %v305_v49  ;;  %v309_v56 = vld [vmem:[#allocation5 + $0x5c0] sm:$0xff]  ;;  %v326_v10 = vld [vmem:[#allocation5 + $0x648] sm:$0xff] }
  0xaf   :  { %v313_v57 = vld [vmem:[#allocation5 + $0x5e0] sm:$0xff]  ;;  %v334_v19 = vld [vmem:[#allocation5 + $0x688] sm:$0xff] }
  0xb0   :  { %2914 = vmatpush1.bf16.msra.mxu0 %v8229_v35  ;;  %3086 = vmatpush1.bf16.msra.mxu1 %v8231_v36  ;;  %v8296_v35 = vcombine.high %v278_v27, %v282_v28  ;;  %v290_v36 = vld [vmem:[#allocation5 + $0x528] sm:$0xff]  ;;  %v8326_v63 = vcombine.high %v309_v56, %v313_v57  ;;  %v317_v0 = vld [vmem:[#allocation5 + $0x600] sm:$0xff] }
  0xb1   :  { %2915 = vmatprep.subr.bf16.mxu0 %v8238_v37  ;;  %3087 = vmatprep.subr.bf16.mxu1 %v8240_v38  ;;  %v8293_v37 = vcombine.low %v277_v24, %v281_v25  ;;  %v8295_v38 = vcombine.low %v278_v27, %v282_v28  ;;  %v321_v1 = vld [vmem:[#allocation5 + $0x620] sm:$0xff]  ;;  %v338_v20 = vld [vmem:[#allocation5 + $0x6a8] sm:$0xff] }
  0xb2   :  { %v8334_v7 = vcombine.high %v317_v0, %v321_v1  ;;  %v325_v8 = vld [vmem:[#allocation5 + $0x640] sm:$0xff]  ;;  %v8352_v27 = vcombine.high %v334_v19, %v338_v20  ;;  %v346_v28 = vld [vmem:[#allocation5 + $0x6e8] sm:$0xff] }
  0xb3   :  { %v337_v17 = vld [vmem:[#allocation5 + $0x6a0] sm:$0xff] }
  0xb4   :  { %2916 = vmatpush1.bf16.msra.mxu0 %v8237_v43  ;;  %3088 = vmatpush1.bf16.msra.mxu1 %v8239_v44  ;;  %v8304_v43 = vcombine.high %v286_v34, %v290_v36  ;;  %v298_v44 = vld [vmem:[#allocation5 + $0x568] sm:$0xff]  ;;  %v341_v24 = vld [vmem:[#allocation5 + $0x6c0] sm:$0xff] }
  0xb5   :  { %2917 = vmatprep.subr.bf16.mxu0 %v8246_v45  ;;  %3089 = vmatprep.subr.bf16.mxu1 %v8248_v46  ;;  %v8301_v45 = vcombine.low %v285_v32, %v289_v33  ;;  %v8303_v46 = vcombine.low %v286_v34, %v290_v36  ;;  %v345_v25 = vld [vmem:[#allocation5 + $0x6e0] sm:$0xff]  ;;  %v350_v34 = vld [vmem:[#allocation5 + $0x708] sm:$0xff] }
  0xb6   :  { %v349_v32 = vld [vmem:[#allocation5 + $0x700] sm:$0xff]  ;;  %v354_v36 = vld [vmem:[#allocation5 + $0x728] sm:$0xff] }
  0xb7   :  { %v353_v33 = vld [vmem:[#allocation5 + $0x720] sm:$0xff] }
  0xb8   :  { %2918 = vmatpush1.bf16.msra.mxu0 %v8245_v51  ;;  %3090 = vmatpush1.bf16.msra.mxu1 %v8247_v52  ;;  %v8312_v51 = vcombine.high %v294_v42, %v298_v44  ;;  %v306_v52 = vld [vmem:[#allocation5 + $0x5a8] sm:$0xff] }
  0xb9   :  { %2919 = vmatprep.subr.bf16.mxu0 %v8254_v53  ;;  %3091 = vmatprep.subr.bf16.mxu1 %v8256_v54  ;;  %v8309_v53 = vcombine.low %v293_v40, %v297_v41  ;;  %v8311_v54 = vcombine.low %v294_v42, %v298_v44  ;;  %v357_v40 = vld [vmem:[#allocation5 + $0x740] sm:$0xff]  ;;  %v358_v42 = vld [vmem:[#allocation5 + $0x748] sm:$0xff] }
  0xba   :  { %v361_v41 = vld [vmem:[#allocation5 + $0x760] sm:$0xff]  ;;  %v362_v44 = vld [vmem:[#allocation5 + $0x768] sm:$0xff] }
  0xbc   :  { %2920 = vmatpush1.bf16.msra.mxu0 %v8253_v59  ;;  %3092 = vmatpush1.bf16.msra.mxu1 %v8255_v60  ;;  %v8320_v59 = vcombine.high %v302_v50, %v306_v52  ;;  %v314_v60 = vld [vmem:[#allocation5 + $0x5e8] sm:$0xff] }
  0xbd   :  { %2921 = vmatprep.subr.bf16.mxu0 %v8262_v61  ;;  %3093 = vmatprep.subr.bf16.mxu1 %v8264_v62  ;;  %v8317_v61 = vcombine.low %v301_v48, %v305_v49  ;;  %v8319_v62 = vcombine.low %v302_v50, %v306_v52  ;;  %v365_v48 = vld [vmem:[#allocation5 + $0x780] sm:$0xff]  ;;  %v366_v50 = vld [vmem:[#allocation5 + $0x788] sm:$0xff] }
  0xbe   :  { %v369_v49 = vld [vmem:[#allocation5 + $0x7a0] sm:$0xff]  ;;  %v370_v52 = vld [vmem:[#allocation5 + $0x7a8] sm:$0xff] }
  0xc0   :  { %2922 = vmatpush1.bf16.msra.mxu0 %v8261_v3  ;;  %3094 = vmatpush1.bf16.msra.mxu1 %v8263_v4  ;;  %v8328_v3 = vcombine.high %v310_v58, %v314_v60  ;;  %v322_v4 = vld [vmem:[#allocation5 + $0x628] sm:$0xff] }
  0xc1   :  { %2934 = vmatprep.subr.bf16.mxu0 %v8270_v5  ;;  %3106 = vmatprep.subr.bf16.mxu1 %v8272_v6  ;;  %v8325_v5 = vcombine.low %v309_v56, %v313_v57  ;;  %v8327_v6 = vcombine.low %v310_v58, %v314_v60  ;;  %v8336_v11 = vcombine.high %v318_v2, %v322_v4  ;;  %v373_v56 = vld [vmem:[#allocation5 + $0x7c0] sm:$0xff]  ;;  %v374_v58 = vld [vmem:[#allocation5 + $0x7c8] sm:$0xff] }
  0xc2   :  { %v377_v57 = vld [vmem:[#allocation5 + $0x7e0] sm:$0xff]  ;;  %v378_v60 = vld [vmem:[#allocation5 + $0x7e8] sm:$0xff] }
  0xc3   :  { %2924 = vmatmul.mubr.bf16.vlgmr.msra.gmra.mrb[0].mxu0 %v9401_v9  ;;  %3096 = vmatmul.mubr.bf16.vlgmr.msra.gmra.mrb[0].mxu1 %v9401_v9  ;;  %v329_v9 = vld [vmem:[#allocation5 + $0x660] sm:$0xff] }
  0xc4   :  { %2935 = vmatpush1.bf16.msra.mxu0 %v8269_v12  ;;  %3107 = vmatpush1.bf16.msra.mxu1 %v8271_v13  ;;  %v330_v12 = vld [vmem:[#allocation5 + $0x668] sm:$0xff]  ;;  %v8333_v13 = vcombine.low %v317_v0, %v321_v1  ;;  %v8342_v15 = vcombine.high %v325_v8, %v329_v9  ;;  %v381_v0 = vld [vmem:[#allocation5 + $0x800] sm:$0xff] }
  0xc5   :  { %2936 = vmatprep.subr.bf16.mxu0 %v8278_v14  ;;  %3108 = vmatprep.subr.bf16.mxu1 %v8280_v16  ;;  %v8335_v14 = vcombine.low %v318_v2, %v322_v4  ;;  %v333_v16 = vld [vmem:[#allocation5 + $0x680] sm:$0xff]  ;;  %v382_v2 = vld [vmem:[#allocation5 + $0x808] sm:$0xff] }
  0xc6   :  { %2966 = vmatprep.mubr.bf16.mxu0 %v9402_v18  ;;  %3138 = vmatprep.mubr.bf16.mxu1 %v9402_v18  ;;  %v8344_v18 = vcombine.high %v326_v10, %v330_v12  ;;  %v385_v1 = vld [vmem:[#allocation5 + $0x820] sm:$0xff]  ;;  %v386_v4 = vld [vmem:[#allocation5 + $0x828] sm:$0xff] }
  0xc8   :  { %2937 = vmatpush1.bf16.msra.mxu0 %v8277_v21  ;;  %3109 = vmatpush1.bf16.msra.mxu1 %v8279_v22  ;;  %v8341_v21 = vcombine.low %v325_v8, %v329_v9  ;;  %v8343_v22 = vcombine.low %v326_v10, %v330_v12  ;;  %v9404_v8 = vld [vmem:[#allocation2 + $0x8] ss:$28 sps:$4 sm:$0xff]   ;;  %v389_v9 = vld [vmem:[#allocation5 + $0x840] sm:$0xff]  ;;  %v8400_v12 = vcombine.high %v382_v2, %v386_v4 }
  0xc9   :  { %2938 = vmatprep.subr.bf16.mxu0 %v8286_v23  ;;  %3110 = vmatprep.subr.bf16.mxu1 %v8288_v26  ;;  %v8350_v23 = vcombine.high %v333_v16, %v337_v17  ;;  %v342_v26 = vld [vmem:[#allocation5 + $0x6c8] sm:$0xff]  ;;  %v393_v10 = vld [vmem:[#allocation5 + $0x860] sm:$0xff] }
  0xcc   :  { %2939 = vmatpush1.bf16.msra.mxu0 %v8285_v29  ;;  %3111 = vmatpush1.bf16.msra.mxu1 %v8287_v30  ;;  %v8349_v29 = vcombine.low %v333_v16, %v337_v17  ;;  %v8351_v30 = vcombine.low %v334_v19, %v338_v20  ;;  %v8399_v16 = vcombine.low %v382_v2, %v386_v4  ;;  %v398_v19 = vld [vmem:[#allocation5 + $0x888] sm:$0xff]  ;;  %v449_v4 = vld [vmem:[#allocation5 + $0xa20] sm:$0xff] }
  0xcd   :  { %2940 = vmatprep.subr.bf16.mxu0 %v8294_v31  ;;  %3112 = vmatprep.subr.bf16.mxu1 %v8296_v35  ;;  %v8358_v31 = vcombine.high %v341_v24, %v345_v25  ;;  %v8360_v35 = vcombine.high %v342_v26, %v346_v28  ;;  %v8406_v17 = vcombine.high %v389_v9, %v393_v10  ;;  %v402_v20 = vld [vmem:[#allocation5 + $0x8a8] sm:$0xff] }
  0xd0   :  { %2941 = vmatpush1.bf16.msra.mxu0 %v8293_v37  ;;  %3113 = vmatpush1.bf16.msra.mxu1 %v8295_v38  ;;  %v8357_v37 = vcombine.low %v341_v24, %v345_v25  ;;  %v8359_v38 = vcombine.low %v342_v26, %v346_v28  ;;  %v405_v26 = vld [vmem:[#allocation5 + $0x8c0] sm:$0xff]  ;;  %v8416_v28 = vcombine.high %v398_v19, %v402_v20 }
  0xd1   :  { %2942 = vmatprep.subr.bf16.mxu0 %v8302_v39  ;;  %3114 = vmatprep.subr.bf16.mxu1 %v8304_v43  ;;  %v8366_v39 = vcombine.high %v349_v32, %v353_v33  ;;  %v8368_v43 = vcombine.high %v350_v34, %v354_v36 }
  0xd4   :  { %2943 = vmatpush1.bf16.msra.mxu0 %v8301_v45  ;;  %3115 = vmatpush1.bf16.msra.mxu1 %v8303_v46  ;;  %v8365_v45 = vcombine.low %v349_v32, %v353_v33  ;;  %v8367_v46 = vcombine.low %v350_v34, %v354_v36  ;;  %v8415_v32 = vcombine.low %v398_v19, %v402_v20  ;;  %v417_v36 = vld [vmem:[#allocation5 + $0x920] sm:$0xff] }
  0xd5   :  { %2944 = vmatprep.subr.bf16.mxu0 %v8310_v47  ;;  %3116 = vmatprep.subr.bf16.mxu1 %v8312_v51  ;;  %v8374_v47 = vcombine.high %v357_v40, %v361_v41  ;;  %v8376_v51 = vcombine.high %v358_v42, %v362_v44  ;;  %v461_v19 = vld [vmem:[#allocation5 + $0xa80] sm:$0xff] }
  0xd6   :  { %v465_v20 = vld [vmem:[#allocation5 + $0xaa0] sm:$0xff] }
  0xd8   :  { %2945 = vmatpush1.bf16.msra.mxu0 %v8309_v53  ;;  %3117 = vmatpush1.bf16.msra.mxu1 %v8311_v54  ;;  %v8373_v53 = vcombine.low %v357_v40, %v361_v41  ;;  %v8375_v54 = vcombine.low %v358_v42, %v362_v44  ;;  %v425_v44 = vld [vmem:[#allocation5 + $0x960] sm:$0xff] }
  0xd9   :  { %2946 = vmatprep.subr.bf16.mxu0 %v8318_v55  ;;  %3118 = vmatprep.subr.bf16.mxu1 %v8320_v59  ;;  %v8382_v55 = vcombine.high %v365_v48, %v369_v49  ;;  %v8384_v59 = vcombine.high %v366_v50, %v370_v52 }
  0xdc   :  { %2947 = vmatpush1.bf16.msra.mxu0 %v8317_v61  ;;  %3119 = vmatpush1.bf16.msra.mxu1 %v8319_v62  ;;  %v8381_v61 = vcombine.low %v365_v48, %v369_v49  ;;  %v8383_v62 = vcombine.low %v366_v50, %v370_v52  ;;  %v433_v52 = vld [vmem:[#allocation5 + $0x9a0] sm:$0xff] }
  0xdd   :  { %2948 = vmatprep.subr.bf16.mxu0 %v8326_v63  ;;  %3120 = vmatprep.subr.bf16.mxu1 %v8328_v3  ;;  %v8390_v63 = vcombine.high %v373_v56, %v377_v57  ;;  %v8392_v3 = vcombine.high %v374_v58, %v378_v60 }
  0xe0   :  { %2949 = vmatpush1.bf16.msra.mxu0 %v8325_v5  ;;  %3121 = vmatpush1.bf16.msra.mxu1 %v8327_v6  ;;  %v8389_v5 = vcombine.low %v373_v56, %v377_v57  ;;  %v8391_v6 = vcombine.low %v374_v58, %v378_v60  ;;  %v441_v60 = vld [vmem:[#allocation5 + $0x9e0] sm:$0xff] }
  0xe1   :  { %2950 = vmatprep.subr.bf16.mxu0 %v8334_v7  ;;  %3122 = vmatprep.subr.bf16.mxu1 %v8336_v11  ;;  %v8398_v7 = vcombine.high %v381_v0, %v385_v1  ;;  %v390_v11 = vld [vmem:[#allocation5 + $0x848] sm:$0xff] }
  0xe4   :  { %2951 = vmatpush1.bf16.msra.mxu0 %v8333_v13  ;;  %3123 = vmatpush1.bf16.msra.mxu1 %v8335_v14  ;;  %v394_v13 = vld [vmem:[#allocation5 + $0x868] sm:$0xff]  ;;  %v8397_v14 = vcombine.low %v381_v0, %v385_v1 }
  0xe5   :  { %2952 = vmatprep.subr.bf16.mxu0 %v8342_v15  ;;  %3124 = vmatprep.subr.bf16.mxu1 %v8344_v18  ;;  %v397_v15 = vld [vmem:[#allocation5 + $0x880] sm:$0xff]  ;;  %v8407_v24 = vcombine.low %v390_v11, %v394_v13 }
  0xe6   :  { %v401_v18 = vld [vmem:[#allocation5 + $0x8a0] sm:$0xff] }
  0xe7   :  { %v8414_v25 = vcombine.high %v397_v15, %v401_v18 }
  0xe8   :  { %2953 = vmatpush1.bf16.msra.mxu0 %v8341_v21  ;;  %3125 = vmatpush1.bf16.msra.mxu1 %v8343_v22  ;;  %v8408_v21 = vcombine.high %v390_v11, %v394_v13  ;;  %v9405_v22 = vld [vmem:[#allocation2 + $0x14] ss:$28 sps:$4 sm:$0xff]   ;;  %v453_v11 = vld [vmem:[#allocation5 + $0xa40] sm:$0xff]  ;;  %v454_v13 = vld [vmem:[#allocation5 + $0xa48] sm:$0xff] }
  0xe9   :  { %2954 = vmatprep.subr.bf16.mxu0 %v8350_v23  ;;  %3126 = vmatprep.subr.bf16.mxu1 %v8352_v27  ;;  %v8405_v23 = vcombine.low %v389_v9, %v393_v10  ;;  %v409_v27 = vld [vmem:[#allocation5 + $0x8e0] sm:$0xff] }
  0xea   :  { %v8422_v33 = vcombine.high %v405_v26, %v409_v27 }
  0xec   :  { %2955 = vmatpush1.bf16.msra.mxu0 %v8349_v29  ;;  %3127 = vmatpush1.bf16.msra.mxu1 %v8351_v30  ;;  %v406_v29 = vld [vmem:[#allocation5 + $0x8c8] sm:$0xff] }
  0xed   :  { %2956 = vmatprep.subr.bf16.mxu0 %v8358_v31  ;;  %3128 = vmatprep.subr.bf16.mxu1 %v8360_v35  ;;  %v410_v30 = vld [vmem:[#allocation5 + $0x8e8] sm:$0xff]  ;;  %v8413_v31 = vcombine.low %v397_v15, %v401_v18  ;;  %v413_v35 = vld [vmem:[#allocation5 + $0x900] sm:$0xff] }
  0xee   :  { %v8424_v34 = vcombine.high %v406_v29, %v410_v30  ;;  %v8423_v40 = vcombine.low %v406_v29, %v410_v30  ;;  %v8430_v41 = vcombine.high %v413_v35, %v417_v36  ;;  %v470_v29 = vld [vmem:[#allocation5 + $0xac8] sm:$0xff] }
  0xef   :  { %v474_v30 = vld [vmem:[#allocation5 + $0xae8] sm:$0xff] }
  0xf0   :  { %2957 = vmatpush1.bf16.msra.mxu0 %v8357_v37  ;;  %3129 = vmatpush1.bf16.msra.mxu1 %v8359_v38  ;;  %v414_v37 = vld [vmem:[#allocation5 + $0x908] sm:$0xff] }
  0xf1   :  { %2958 = vmatprep.subr.bf16.mxu0 %v8366_v39  ;;  %3130 = vmatprep.subr.bf16.mxu1 %v8368_v43  ;;  %v418_v38 = vld [vmem:[#allocation5 + $0x928] sm:$0xff]  ;;  %v8421_v39 = vcombine.low %v405_v26, %v409_v27  ;;  %v421_v43 = vld [vmem:[#allocation5 + $0x940] sm:$0xff] }
  0xf2   :  { %v8432_v42 = vcombine.high %v414_v37, %v418_v38  ;;  %v8431_v48 = vcombine.low %v414_v37, %v418_v38  ;;  %v8438_v49 = vcombine.high %v421_v43, %v425_v44  ;;  %v469_v27 = vld [vmem:[#allocation5 + $0xac0] sm:$0xff]  ;;  %v478_v37 = vld [vmem:[#allocation5 + $0xb08] sm:$0xff] }
  0xf3   :  { %v482_v38 = vld [vmem:[#allocation5 + $0xb28] sm:$0xff] }
  0xf4   :  { %2959 = vmatpush1.bf16.msra.mxu0 %v8365_v45  ;;  %3131 = vmatpush1.bf16.msra.mxu1 %v8367_v46  ;;  %v422_v45 = vld [vmem:[#allocation5 + $0x948] sm:$0xff] }
  0xf5   :  { %2960 = vmatprep.subr.bf16.mxu0 %v8374_v47  ;;  %3132 = vmatprep.subr.bf16.mxu1 %v8376_v51  ;;  %v426_v46 = vld [vmem:[#allocation5 + $0x968] sm:$0xff]  ;;  %v8429_v47 = vcombine.low %v413_v35, %v417_v36  ;;  %v429_v51 = vld [vmem:[#allocation5 + $0x980] sm:$0xff] }
  0xf6   :  { %v8440_v50 = vcombine.high %v422_v45, %v426_v46  ;;  %v8439_v56 = vcombine.low %v422_v45, %v426_v46  ;;  %v8446_v57 = vcombine.high %v429_v51, %v433_v52  ;;  %v477_v35 = vld [vmem:[#allocation5 + $0xb00] sm:$0xff]  ;;  %v486_v45 = vld [vmem:[#allocation5 + $0xb48] sm:$0xff] }
  0xf7   :  { %v481_v36 = vld [vmem:[#allocation5 + $0xb20] sm:$0xff]  ;;  %v490_v46 = vld [vmem:[#allocation5 + $0xb68] sm:$0xff] }
  0xf8   :  { %2961 = vmatpush1.bf16.msra.mxu0 %v8373_v53  ;;  %3133 = vmatpush1.bf16.msra.mxu1 %v8375_v54  ;;  %v430_v53 = vld [vmem:[#allocation5 + $0x988] sm:$0xff] }
  0xf9   :  { %2962 = vmatprep.subr.bf16.mxu0 %v8382_v55  ;;  %3134 = vmatprep.subr.bf16.mxu1 %v8384_v59  ;;  %v434_v54 = vld [vmem:[#allocation5 + $0x9a8] sm:$0xff]  ;;  %v8437_v55 = vcombine.low %v421_v43, %v425_v44  ;;  %v437_v59 = vld [vmem:[#allocation5 + $0x9c0] sm:$0xff] }
  0xfa   :  { %v8448_v58 = vcombine.high %v430_v53, %v434_v54  ;;  %v8447_v0 = vcombine.low %v430_v53, %v434_v54  ;;  %v8454_v1 = vcombine.high %v437_v59, %v441_v60  ;;  %v485_v43 = vld [vmem:[#allocation5 + $0xb40] sm:$0xff]  ;;  %v494_v53 = vld [vmem:[#allocation5 + $0xb88] sm:$0xff] }
  0xfb   :  { %v489_v44 = vld [vmem:[#allocation5 + $0xb60] sm:$0xff]  ;;  %v498_v54 = vld [vmem:[#allocation5 + $0xba8] sm:$0xff] }
  0xfc   :  { %2963 = vmatpush1.bf16.msra.mxu0 %v8381_v61  ;;  %3135 = vmatpush1.bf16.msra.mxu1 %v8383_v62  ;;  %v438_v61 = vld [vmem:[#allocation5 + $0x9c8] sm:$0xff] }
  0xfd   :  { %2964 = vmatprep.subr.bf16.mxu0 %v8390_v63  ;;  %3136 = vmatprep.subr.bf16.mxu1 %v8392_v3  ;;  %v442_v62 = vld [vmem:[#allocation5 + $0x9e8] sm:$0xff]  ;;  %v8445_v63 = vcombine.low %v429_v51, %v433_v52  ;;  %v445_v3 = vld [vmem:[#allocation5 + $0xa00] sm:$0xff] }
  0xfe   :  { %v8456_v2 = vcombine.high %v438_v61, %v442_v62  ;;  %v8462_v9 = vcombine.high %v445_v3, %v449_v4  ;;  %v8461_v15 = vcombine.low %v445_v3, %v449_v4  ;;  %v493_v51 = vld [vmem:[#allocation5 + $0xb80] sm:$0xff] }
  0xff   :  { %v497_v52 = vld [vmem:[#allocation5 + $0xba0] sm:$0xff] }
 0x100   :  { %2965 = vmatpush1.bf16.msra.mxu0 %v8389_v5  ;;  %3137 = vmatpush1.bf16.msra.mxu1 %v8391_v6  ;;  %v446_v5 = vld [vmem:[#allocation5 + $0xa08] sm:$0xff]  ;;  %v509_v3 = vld [vmem:[#allocation5 + $0xc00] sm:$0xff] }
 0x101   :  { %2977 = vmatprep.subr.bf16.mxu0 %v8398_v7  ;;  %3149 = vmatprep.subr.bf16.mxu1 %v8400_v12  ;;  %v450_v6 = vld [vmem:[#allocation5 + $0xa28] sm:$0xff]  ;;  %v8453_v7 = vcombine.low %v437_v59, %v441_v60  ;;  %v457_v12 = vld [vmem:[#allocation5 + $0xa60] sm:$0xff] }
 0x102   :  { %v8464_v10 = vcombine.high %v446_v5, %v450_v6  ;;  %v501_v59 = vld [vmem:[#allocation5 + $0xbc0] sm:$0xff] }
 0x103   :  { %2967 = vmatmul.mubr.bf16.vlgmr.msra.gmra.mrb[0].mxu0 %v9404_v8  ;;  %3139 = vmatmul.mubr.bf16.vlgmr.msra.gmra.mrb[0].mxu1 %v9404_v8  ;;  %v8455_v8 = vcombine.low %v438_v61, %v442_v62  ;;  %v505_v60 = vld [vmem:[#allocation5 + $0xbe0] sm:$0xff]  ;;  %v502_v61 = vld [vmem:[#allocation5 + $0xbc8] sm:$0xff] }
 0x104   :  { %2978 = vmatpush1.bf16.msra.mxu0 %v8397_v14  ;;  %3150 = vmatpush1.bf16.msra.mxu1 %v8399_v16  ;;  %v458_v14 = vld [vmem:[#allocation5 + $0xa68] sm:$0xff]  ;;  %v8463_v16 = vcombine.low %v446_v5, %v450_v6  ;;  %v513_v4 = vld [vmem:[#allocation5 + $0xc20] sm:$0xff] }
 0x105   :  { %2979 = vmatprep.subr.bf16.mxu0 %v8406_v17  ;;  %3151 = vmatprep.subr.bf16.mxu1 %v8408_v21  ;;  %v8470_v17 = vcombine.high %v453_v11, %v457_v12  ;;  %v8472_v18 = vcombine.high %v454_v13, %v458_v14  ;;  %v462_v21 = vld [vmem:[#allocation5 + $0xa88] sm:$0xff] }
 0x106   :  { %3009 = vmatprep.mubr.bf16.mxu0 %v9405_v22  ;;  %3181 = vmatprep.mubr.bf16.mxu1 %v9405_v22  ;;  %v466_v22 = vld [vmem:[#allocation5 + $0xaa8] sm:$0xff] }
 0x107   :  { %v8480_v26 = vcombine.high %v462_v21, %v466_v22  ;;  %v506_v62 = vld [vmem:[#allocation5 + $0xbe8] sm:$0xff] }
 0x108   :  { %2980 = vmatpush1.bf16.msra.mxu0 %v8405_v23  ;;  %3152 = vmatpush1.bf16.msra.mxu1 %v8407_v24  ;;  %v8469_v23 = vcombine.low %v453_v11, %v457_v12  ;;  %v8471_v24 = vcombine.low %v454_v13, %v458_v14  ;;  %v510_v5 = vld [vmem:[#allocation5 + $0xc08] sm:$0xff]  ;;  %v517_v11 = vld [vmem:[#allocation5 + $0xc40] sm:$0xff]  ;;  %v9407_v13 = vld [vmem:[#allocation2 + $0x10] ss:$28 sps:$4 sm:$0xff]  }
 0x109   :  { %2981 = vmatprep.subr.bf16.mxu0 %v8414_v25  ;;  %3153 = vmatprep.subr.bf16.mxu1 %v8416_v28  ;;  %v8478_v25 = vcombine.high %v461_v19, %v465_v20  ;;  %v473_v28 = vld [vmem:[#allocation5 + $0xae0] sm:$0xff]  ;;  %v514_v6 = vld [vmem:[#allocation5 + $0xc28] sm:$0xff] }
 0x10a   :  { %v521_v12 = vld [vmem:[#allocation5 + $0xc60] sm:$0xff]  ;;  %v518_v14 = vld [vmem:[#allocation5 + $0xc48] sm:$0xff] }
 0x10c   :  { %2982 = vmatpush1.bf16.msra.mxu0 %v8413_v31  ;;  %3154 = vmatpush1.bf16.msra.mxu1 %v8415_v32  ;;  %v8477_v31 = vcombine.low %v461_v19, %v465_v20  ;;  %v8479_v32 = vcombine.low %v462_v21, %v466_v22  ;;  %v525_v20 = vld [vmem:[#allocation5 + $0xc80] sm:$0xff]  ;;  %v526_v22 = vld [vmem:[#allocation5 + $0xc88] sm:$0xff] }
 0x10d   :  { %2983 = vmatprep.subr.bf16.mxu0 %v8422_v33  ;;  %3155 = vmatprep.subr.bf16.mxu1 %v8424_v34  ;;  %v8486_v33 = vcombine.high %v469_v27, %v473_v28  ;;  %v8488_v34 = vcombine.high %v470_v29, %v474_v30  ;;  %v529_v21 = vld [vmem:[#allocation5 + $0xca0] sm:$0xff] }
 0x110   :  { %2984 = vmatpush1.bf16.msra.mxu0 %v8421_v39  ;;  %3156 = vmatpush1.bf16.msra.mxu1 %v8423_v40  ;;  %v8485_v39 = vcombine.low %v469_v27, %v473_v28  ;;  %v8487_v40 = vcombine.low %v470_v29, %v474_v30  ;;  %v533_v28 = vld [vmem:[#allocation5 + $0xcc0] sm:$0xff]  ;;  %v9680_v30 = vmov 0  }
 0x111   :  { %2985 = vmatprep.subr.bf16.mxu0 %v8430_v41  ;;  %3157 = vmatprep.subr.bf16.mxu1 %v8432_v42  ;;  %v8494_v41 = vcombine.high %v477_v35, %v481_v36  ;;  %v8496_v42 = vcombine.high %v478_v37, %v482_v38  ;;  %v537_v29 = vld [vmem:[#allocation5 + $0xce0] sm:$0xff] }
 0x114   :  { %2986 = vmatpush1.bf16.msra.mxu0 %v8429_v47  ;;  %3158 = vmatpush1.bf16.msra.mxu1 %v8431_v48  ;;  %v8493_v47 = vcombine.low %v477_v35, %v481_v36  ;;  %v8495_v48 = vcombine.low %v478_v37, %v482_v38  ;;  %v8550_v35 = vcombine.high %v533_v28, %v537_v29  ;;  %v541_v37 = vld [vmem:[#allocation5 + $0xd00] sm:$0xff] }
 0x115   :  { %2987 = vmatprep.subr.bf16.mxu0 %v8438_v49  ;;  %3159 = vmatprep.subr.bf16.mxu1 %v8440_v50  ;;  %v8502_v49 = vcombine.high %v485_v43, %v489_v44  ;;  %v8504_v50 = vcombine.high %v486_v45, %v490_v46  ;;  %v545_v38 = vld [vmem:[#allocation5 + $0xd20] sm:$0xff] }
 0x118   :  { %2988 = vmatpush1.bf16.msra.mxu0 %v8437_v55  ;;  %3160 = vmatpush1.bf16.msra.mxu1 %v8439_v56  ;;  %v8501_v55 = vcombine.low %v485_v43, %v489_v44  ;;  %v8503_v56 = vcombine.low %v486_v45, %v490_v46  ;;  %v8558_v43 = vcombine.high %v541_v37, %v545_v38  ;;  %v549_v45 = vld [vmem:[#allocation5 + $0xd40] sm:$0xff] }
 0x119   :  { %2989 = vmatprep.subr.bf16.mxu0 %v8446_v57  ;;  %3161 = vmatprep.subr.bf16.mxu1 %v8448_v58  ;;  %v8510_v57 = vcombine.high %v493_v51, %v497_v52  ;;  %v8512_v58 = vcombine.high %v494_v53, %v498_v54  ;;  %v553_v46 = vld [vmem:[#allocation5 + $0xd60] sm:$0xff] }
 0x11c   :  { %2990 = vmatpush1.bf16.msra.mxu0 %v8445_v63  ;;  %3162 = vmatpush1.bf16.msra.mxu1 %v8447_v0  ;;  %v8509_v63 = vcombine.low %v493_v51, %v497_v52  ;;  %v8511_v0 = vcombine.low %v494_v53, %v498_v54  ;;  %v8566_v51 = vcombine.high %v549_v45, %v553_v46  ;;  %v557_v53 = vld [vmem:[#allocation5 + $0xd80] sm:$0xff] }
 0x11d   :  { %2991 = vmatprep.subr.bf16.mxu0 %v8454_v1  ;;  %3163 = vmatprep.subr.bf16.mxu1 %v8456_v2  ;;  %v8518_v1 = vcombine.high %v501_v59, %v505_v60  ;;  %v8520_v2 = vcombine.high %v502_v61, %v506_v62  ;;  %v561_v54 = vld [vmem:[#allocation5 + $0xda0] sm:$0xff] }
 0x120   :  { %2992 = vmatpush1.bf16.msra.mxu0 %v8453_v7  ;;  %3164 = vmatpush1.bf16.msra.mxu1 %v8455_v8  ;;  %v8517_v7 = vcombine.low %v501_v59, %v505_v60  ;;  %v8519_v8 = vcombine.low %v502_v61, %v506_v62  ;;  %v8574_v59 = vcombine.high %v557_v53, %v561_v54  ;;  %v565_v61 = vld [vmem:[#allocation5 + $0xdc0] sm:$0xff] }
 0x121   :  { %2993 = vmatprep.subr.bf16.mxu0 %v8462_v9  ;;  %3165 = vmatprep.subr.bf16.mxu1 %v8464_v10  ;;  %v8526_v9 = vcombine.high %v509_v3, %v513_v4  ;;  %v8528_v10 = vcombine.high %v510_v5, %v514_v6  ;;  %v569_v62 = vld [vmem:[#allocation5 + $0xde0] sm:$0xff] }
 0x124   :  { %2994 = vmatpush1.bf16.msra.mxu0 %v8461_v15  ;;  %3166 = vmatpush1.bf16.msra.mxu1 %v8463_v16  ;;  %v522_v15 = vld [vmem:[#allocation5 + $0xc68] sm:$0xff]  ;;  %v8525_v16 = vcombine.low %v509_v3, %v513_v4  ;;  %v8582_v3 = vcombine.high %v565_v61, %v569_v62 }
 0x125   :  { %2995 = vmatprep.subr.bf16.mxu0 %v8470_v17  ;;  %3167 = vmatprep.subr.bf16.mxu1 %v8472_v18  ;;  %v8527_v17 = vcombine.low %v510_v5, %v514_v6  ;;  %v8534_v18 = vcombine.high %v517_v11, %v521_v12  ;;  %v8536_v19 = vcombine.high %v518_v14, %v522_v15  ;;  %v127_v5 = vld [vmem:[#allocation5 + $0x10] sm:$0xff] }
 0x126   :  { %v131_v6 = vld [vmem:[#allocation5 + $0x30] sm:$0xff] }
 0x128   :  { %2996 = vmatpush1.bf16.msra.mxu0 %v8469_v23  ;;  %3168 = vmatpush1.bf16.msra.mxu1 %v8471_v24  ;;  %v530_v23 = vld [vmem:[#allocation5 + $0xca8] sm:$0xff]  ;;  %v8533_v24 = vcombine.low %v517_v11, %v521_v12  ;;  %v8146_v11 = vcombine.high %v127_v5, %v131_v6 }
 0x129   :  { %2997 = vmatprep.subr.bf16.mxu0 %v8478_v25  ;;  %3169 = vmatprep.subr.bf16.mxu1 %v8480_v26  ;;  %v8535_v25 = vcombine.low %v518_v14, %v522_v15  ;;  %v8542_v26 = vcombine.high %v525_v20, %v529_v21  ;;  %v8544_v27 = vcombine.high %v526_v22, %v530_v23  ;;  %v139_v14 = vld [vmem:[#allocation5 + $0x70] sm:$0xff]  ;;  %v9408_v15 = vld [vmem:[#allocation2 + $0x18] ss:$28 sps:$4 sm:$0xff]  }
 0x12c   :  { %2998 = vmatpush1.bf16.msra.mxu0 %v8477_v31  ;;  %3170 = vmatpush1.bf16.msra.mxu1 %v8479_v32  ;;  %v534_v31 = vld [vmem:[#allocation5 + $0xcc8] sm:$0xff] }
 0x12d   :  { %2999 = vmatprep.subr.bf16.mxu0 %v8486_v33  ;;  %3171 = vmatprep.subr.bf16.mxu1 %v8488_v34  ;;  %v538_v32 = vld [vmem:[#allocation5 + $0xce8] sm:$0xff]  ;;  %v8541_v33 = vcombine.low %v525_v20, %v529_v21  ;;  %v8543_v34 = vcombine.low %v526_v22, %v530_v23  ;;  %v143_v22 = vld [vmem:[#allocation5 + $0x90] sm:$0xff] }
 0x12e   :  { %v8552_v36 = vcombine.high %v534_v31, %v538_v32  ;;  %v147_v23 = vld [vmem:[#allocation5 + $0xb0] sm:$0xff] }
 0x130   :  { %3000 = vmatpush1.bf16.msra.mxu0 %v8485_v39  ;;  %3172 = vmatpush1.bf16.msra.mxu1 %v8487_v40  ;;  %v542_v39 = vld [vmem:[#allocation5 + $0xd08] sm:$0xff] }
 0x131   :  { %3001 = vmatprep.subr.bf16.mxu0 %v8494_v41  ;;  %3173 = vmatprep.subr.bf16.mxu1 %v8496_v42  ;;  %v546_v40 = vld [vmem:[#allocation5 + $0xd28] sm:$0xff]  ;;  %v8549_v41 = vcombine.low %v533_v28, %v537_v29  ;;  %v8551_v42 = vcombine.low %v534_v31, %v538_v32  ;;  %v8162_v28 = vcombine.high %v143_v22, %v147_v23  ;;  %v151_v31 = vld [vmem:[#allocation5 + $0xd0] sm:$0xff] }
 0x132   :  { %v8560_v44 = vcombine.high %v542_v39, %v546_v40  ;;  %v155_v32 = vld [vmem:[#allocation5 + $0xf0] sm:$0xff] }
 0x134   :  { %3002 = vmatpush1.bf16.msra.mxu0 %v8493_v47  ;;  %3174 = vmatpush1.bf16.msra.mxu1 %v8495_v48  ;;  %v550_v47 = vld [vmem:[#allocation5 + $0xd48] sm:$0xff] }
 0x135   :  { %3003 = vmatprep.subr.bf16.mxu0 %v8502_v49  ;;  %3175 = vmatprep.subr.bf16.mxu1 %v8504_v50  ;;  %v554_v48 = vld [vmem:[#allocation5 + $0xd68] sm:$0xff]  ;;  %v8557_v49 = vcombine.low %v541_v37, %v545_v38  ;;  %v8559_v50 = vcombine.low %v542_v39, %v546_v40  ;;  %v8170_v38 = vcombine.high %v151_v31, %v155_v32  ;;  %v159_v40 = vld [vmem:[#allocation5 + $0x110] sm:$0xff] }
 0x136   :  { %v8568_v52 = vcombine.high %v550_v47, %v554_v48 }
 0x138   :  { %3004 = vmatpush1.bf16.msra.mxu0 %v8501_v55  ;;  %3176 = vmatpush1.bf16.msra.mxu1 %v8503_v56  ;;  %v558_v55 = vld [vmem:[#allocation5 + $0xd88] sm:$0xff] }
 0x139   :  { %3005 = vmatprep.subr.bf16.mxu0 %v8510_v57  ;;  %3177 = vmatprep.subr.bf16.mxu1 %v8512_v58  ;;  %v562_v56 = vld [vmem:[#allocation5 + $0xda8] sm:$0xff]  ;;  %v8565_v57 = vcombine.low %v549_v45, %v553_v46  ;;  %v8567_v58 = vcombine.low %v550_v47, %v554_v48  ;;  %v167_v48 = vld [vmem:[#allocation5 + $0x150] sm:$0xff] }
 0x13a   :  { %v8576_v60 = vcombine.high %v558_v55, %v562_v56 }
 0x13c   :  { %3006 = vmatpush1.bf16.msra.mxu0 %v8509_v63  ;;  %3178 = vmatpush1.bf16.msra.mxu1 %v8511_v0  ;;  %v566_v63 = vld [vmem:[#allocation5 + $0xdc8] sm:$0xff] }
 0x13d   :  { %3007 = vmatprep.subr.bf16.mxu0 %v8518_v1  ;;  %3179 = vmatprep.subr.bf16.mxu1 %v8520_v2  ;;  %v570_v0 = vld [vmem:[#allocation5 + $0xde8] sm:$0xff]  ;;  %v8573_v1 = vcombine.low %v557_v53, %v561_v54  ;;  %v8575_v2 = vcombine.low %v558_v55, %v562_v56  ;;  %v175_v56 = vld [vmem:[#allocation5 + $0x190] sm:$0xff] }
 0x13e   :  { %v8584_v4 = vcombine.high %v566_v63, %v570_v0 }
 0x140   :  { %3008 = vmatpush1.bf16.msra.mxu0 %v8517_v7  ;;  %3180 = vmatpush1.bf16.msra.mxu1 %v8519_v8  ;;  %v128_v7 = vld [vmem:[#allocation5 + $0x18] sm:$0xff] }
 0x141   :  { %3020 = vmatprep.subr.bf16.mxu0 %v8526_v9  ;;  %3192 = vmatprep.subr.bf16.mxu1 %v8528_v10  ;;  %v132_v8 = vld [vmem:[#allocation5 + $0x38] sm:$0xff]  ;;  %v8581_v9 = vcombine.low %v565_v61, %v569_v62  ;;  %v8583_v10 = vcombine.low %v566_v63, %v570_v0  ;;  %v183_v0 = vld [vmem:[#allocation5 + $0x1d0] sm:$0xff] }
 0x142   :  { %v8148_v12 = vcombine.high %v128_v7, %v132_v8 }
 0x143   :  { %3010 = vmatmul.mubr.bf16.vlgmr.msra.gmra.mrb[0].mxu0 %v9407_v13  ;;  %3182 = vmatmul.mubr.bf16.vlgmr.msra.gmra.mrb[0].mxu1 %v9407_v13  ;;  %v135_v13 = vld [vmem:[#allocation5 + $0x50] sm:$0xff] }
 0x144   :  { %3021 = vmatpush1.bf16.msra.mxu0 %v8525_v16  ;;  %3193 = vmatpush1.bf16.msra.mxu1 %v8527_v17  ;;  %v136_v16 = vld [vmem:[#allocation5 + $0x58] sm:$0xff]  ;;  %v8154_v20 = vcombine.high %v135_v13, %v139_v14 }
 0x145   :  { %3022 = vmatprep.subr.bf16.mxu0 %v8534_v18  ;;  %3194 = vmatprep.subr.bf16.mxu1 %v8536_v19  ;;  %v140_v17 = vld [vmem:[#allocation5 + $0x78] sm:$0xff]  ;;  %v8145_v18 = vcombine.low %v127_v5, %v131_v6  ;;  %v8147_v19 = vcombine.low %v128_v7, %v132_v8  ;;  %v191_v8 = vld [vmem:[#allocation5 + $0x210] sm:$0xff] }
 0x146   :  { %3052 = vmatprep.mubr.bf16.mxu0 %v9680_v30  ;;  %3224 = vmatprep.mubr.bf16.mxu1 %v9680_v30  ;;  %v8156_v21 = vcombine.high %v136_v16, %v140_v17 }
 0x148   :  { %3023 = vmatpush1.bf16.msra.mxu0 %v8533_v24  ;;  %3195 = vmatpush1.bf16.msra.mxu1 %v8535_v25  ;;  %v144_v24 = vld [vmem:[#allocation5 + $0x98] sm:$0xff] }
 0x149   :  { %3024 = vmatprep.subr.bf16.mxu0 %v8542_v26  ;;  %3196 = vmatprep.subr.bf16.mxu1 %v8544_v27  ;;  %v148_v25 = vld [vmem:[#allocation5 + $0xb8] sm:$0xff]  ;;  %v8153_v26 = vcombine.low %v135_v13, %v139_v14  ;;  %v8155_v27 = vcombine.low %v136_v16, %v140_v17  ;;  %v199_v16 = vld [vmem:[#allocation5 + $0x250] sm:$0xff] }
 0x14a   :  { %v8164_v29 = vcombine.high %v144_v24, %v148_v25  ;;  %v8163_v37 = vcombine.low %v144_v24, %v148_v25  ;;  %v203_v17 = vld [vmem:[#allocation5 + $0x270] sm:$0xff] }
 0x14b   :  { %v207_v24 = vld [vmem:[#allocation5 + $0x290] sm:$0xff] }
 0x14c   :  { %3025 = vmatpush1.bf16.msra.mxu0 %v8541_v33  ;;  %3197 = vmatpush1.bf16.msra.mxu1 %v8543_v34  ;;  %v9473_v33 = vld [vmem:[#allocation2 + $0x4] ss:$28 sps:$4 sm:$0xff]   ;;  %v152_v34 = vld [vmem:[#allocation5 + $0xd8] sm:$0xff]  ;;  %v211_v25 = vld [vmem:[#allocation5 + $0x2b0] sm:$0xff] }
 0x14d   :  { %3026 = vmatprep.subr.bf16.mxu0 %v8550_v35  ;;  %3198 = vmatprep.subr.bf16.mxu1 %v8552_v36  ;;  %v156_v35 = vld [vmem:[#allocation5 + $0xf8] sm:$0xff]  ;;  %v8161_v36 = vcombine.low %v143_v22, %v147_v23  ;;  %v8218_v22 = vcombine.high %v199_v16, %v203_v17 }
 0x14e   :  { %v8172_v39 = vcombine.high %v152_v34, %v156_v35  ;;  %v8171_v45 = vcombine.low %v152_v34, %v156_v35  ;;  %v219_v34 = vld [vmem:[#allocation5 + $0x2f0] sm:$0xff]  ;;  %v216_v35 = vld [vmem:[#allocation5 + $0x2d8] sm:$0xff] }
 0x150   :  { %3027 = vmatpush1.bf16.msra.mxu0 %v8549_v41  ;;  %3199 = vmatpush1.bf16.msra.mxu1 %v8551_v42  ;;  %v163_v41 = vld [vmem:[#allocation5 + $0x130] sm:$0xff]  ;;  %v160_v42 = vld [vmem:[#allocation5 + $0x118] sm:$0xff] }
 0x151   :  { %3028 = vmatprep.subr.bf16.mxu0 %v8558_v43  ;;  %3200 = vmatprep.subr.bf16.mxu1 %v8560_v44  ;;  %v164_v43 = vld [vmem:[#allocation5 + $0x138] sm:$0xff]  ;;  %v8169_v44 = vcombine.low %v151_v31, %v155_v32  ;;  %v8178_v46 = vcombine.high %v159_v40, %v163_v41  ;;  %v8226_v31 = vcombine.high %v207_v24, %v211_v25 }
 0x152   :  { %v8180_v47 = vcombine.high %v160_v42, %v164_v43  ;;  %v8179_v53 = vcombine.low %v160_v42, %v164_v43  ;;  %v227_v42 = vld [vmem:[#allocation5 + $0x330] sm:$0xff]  ;;  %v224_v43 = vld [vmem:[#allocation5 + $0x318] sm:$0xff] }
 0x154   :  { %3029 = vmatpush1.bf16.msra.mxu0 %v8557_v49  ;;  %3201 = vmatpush1.bf16.msra.mxu1 %v8559_v50  ;;  %v171_v49 = vld [vmem:[#allocation5 + $0x170] sm:$0xff]  ;;  %v168_v50 = vld [vmem:[#allocation5 + $0x158] sm:$0xff] }
 0x155   :  { %3030 = vmatprep.subr.bf16.mxu0 %v8566_v51  ;;  %3202 = vmatprep.subr.bf16.mxu1 %v8568_v52  ;;  %v172_v51 = vld [vmem:[#allocation5 + $0x178] sm:$0xff]  ;;  %v8177_v52 = vcombine.low %v159_v40, %v163_v41  ;;  %v8186_v54 = vcombine.high %v167_v48, %v171_v49  ;;  %v223_v41 = vld [vmem:[#allocation5 + $0x310] sm:$0xff] }
 0x156   :  { %v8188_v55 = vcombine.high %v168_v50, %v172_v51  ;;  %v8187_v61 = vcombine.low %v168_v50, %v172_v51  ;;  %v235_v50 = vld [vmem:[#allocation5 + $0x370] sm:$0xff]  ;;  %v232_v51 = vld [vmem:[#allocation5 + $0x358] sm:$0xff] }
 0x158   :  { %3031 = vmatpush1.bf16.msra.mxu0 %v8565_v57  ;;  %3203 = vmatpush1.bf16.msra.mxu1 %v8567_v58  ;;  %v179_v57 = vld [vmem:[#allocation5 + $0x1b0] sm:$0xff]  ;;  %v176_v58 = vld [vmem:[#allocation5 + $0x198] sm:$0xff] }
 0x159   :  { %3032 = vmatprep.subr.bf16.mxu0 %v8574_v59  ;;  %3204 = vmatprep.subr.bf16.mxu1 %v8576_v60  ;;  %v180_v59 = vld [vmem:[#allocation5 + $0x1b8] sm:$0xff]  ;;  %v8185_v60 = vcombine.low %v167_v48, %v171_v49  ;;  %v8194_v62 = vcombine.high %v175_v56, %v179_v57  ;;  %v231_v49 = vld [vmem:[#allocation5 + $0x350] sm:$0xff] }
 0x15a   :  { %v8196_v63 = vcombine.high %v176_v58, %v180_v59  ;;  %v8195_v5 = vcombine.low %v176_v58, %v180_v59  ;;  %v243_v58 = vld [vmem:[#allocation5 + $0x3b0] sm:$0xff]  ;;  %v240_v59 = vld [vmem:[#allocation5 + $0x398] sm:$0xff] }
 0x15c   :  { %3033 = vmatpush1.bf16.msra.mxu0 %v8573_v1  ;;  %3205 = vmatpush1.bf16.msra.mxu1 %v8575_v2  ;;  %v187_v1 = vld [vmem:[#allocation5 + $0x1f0] sm:$0xff]  ;;  %v184_v2 = vld [vmem:[#allocation5 + $0x1d8] sm:$0xff] }
 0x15d   :  { %3034 = vmatprep.subr.bf16.mxu0 %v8582_v3  ;;  %3206 = vmatprep.subr.bf16.mxu1 %v8584_v4  ;;  %v188_v3 = vld [vmem:[#allocation5 + $0x1f8] sm:$0xff]  ;;  %v8193_v4 = vcombine.low %v175_v56, %v179_v57  ;;  %v8202_v6 = vcombine.high %v183_v0, %v187_v1  ;;  %v239_v57 = vld [vmem:[#allocation5 + $0x390] sm:$0xff] }
 0x15e   :  { %v8204_v7 = vcombine.high %v184_v2, %v188_v3  ;;  %v8203_v13 = vcombine.low %v184_v2, %v188_v3  ;;  %v251_v2 = vld [vmem:[#allocation5 + $0x3f0] sm:$0xff]  ;;  %v248_v3 = vld [vmem:[#allocation5 + $0x3d8] sm:$0xff] }
 0x160   :  { %3035 = vmatpush1.bf16.msra.mxu0 %v8581_v9  ;;  %3207 = vmatpush1.bf16.msra.mxu1 %v8583_v10  ;;  %v195_v9 = vld [vmem:[#allocation5 + $0x230] sm:$0xff]  ;;  %v192_v10 = vld [vmem:[#allocation5 + $0x218] sm:$0xff] }
 0x161   :  { %3235 = vmatprep.subr.bf16.mxu0 %v8146_v11  ;;  %3407 = vmatprep.subr.bf16.mxu1 %v8148_v12  ;;  %v196_v11 = vld [vmem:[#allocation5 + $0x238] sm:$0xff]  ;;  %v8201_v12 = vcombine.low %v183_v0, %v187_v1  ;;  %v8210_v14 = vcombine.high %v191_v8, %v195_v9  ;;  %v247_v1 = vld [vmem:[#allocation5 + $0x3d0] sm:$0xff] }
 0x163   :  { %3053 = vmatmul.mubr.bf16.vlgmr.msra.gmra.mrb[0].mxu0 %v9408_v15  ;;  %3225 = vmatmul.mubr.bf16.vlgmr.msra.gmra.mrb[0].mxu1 %v9408_v15  ;;  %v8212_v15 = vcombine.high %v192_v10, %v196_v11 }
 0x164   :  { %3236 = vmatpush1.bf16.msra.mxu0 %v8145_v18  ;;  %3408 = vmatpush1.bf16.msra.mxu1 %v8147_v19  ;;  %v200_v18 = vld [vmem:[#allocation5 + $0x258] sm:$0xff] }
 0x165   :  { %3237 = vmatprep.subr.bf16.mxu0 %v8154_v20  ;;  %3409 = vmatprep.subr.bf16.mxu1 %v8156_v21  ;;  %v204_v19 = vld [vmem:[#allocation5 + $0x278] sm:$0xff]  ;;  %v8209_v20 = vcombine.low %v191_v8, %v195_v9  ;;  %v8211_v21 = vcombine.low %v192_v10, %v196_v11  ;;  %v255_v9 = vld [vmem:[#allocation5 + $0x410] sm:$0xff] }
 0x166   :  { %3267 = vmatprep.mubr.bf16.mxu0 %v9473_v33  ;;  %3439 = vmatprep.mubr.bf16.mxu1 %v9473_v33  ;;  %v8220_v23 = vcombine.high %v200_v18, %v204_v19  ;;  %v215_v33 = vld [vmem:[#allocation5 + $0x2d0] sm:$0xff]  ;;  %v256_v11 = vld [vmem:[#allocation5 + $0x418] sm:$0xff] }
 0x167   :  { %v259_v10 = vld [vmem:[#allocation5 + $0x430] sm:$0xff] }
 0x168   :  { %3238 = vmatpush1.bf16.msra.mxu0 %v8153_v26  ;;  %3410 = vmatpush1.bf16.msra.mxu1 %v8155_v27  ;;  %v208_v26 = vld [vmem:[#allocation5 + $0x298] sm:$0xff] }
 0x169   :  { %3239 = vmatprep.subr.bf16.mxu0 %v8162_v28  ;;  %3411 = vmatprep.subr.bf16.mxu1 %v8164_v29  ;;  %v212_v27 = vld [vmem:[#allocation5 + $0x2b8] sm:$0xff]  ;;  %v8217_v28 = vcombine.low %v199_v16, %v203_v17  ;;  %v8219_v29 = vcombine.low %v200_v18, %v204_v19  ;;  %v263_v17 = vld [vmem:[#allocation5 + $0x450] sm:$0xff] }
 0x16a   :  { %v8228_v32 = vcombine.high %v208_v26, %v212_v27  ;;  %v267_v18 = vld [vmem:[#allocation5 + $0x470] sm:$0xff]  ;;  %v264_v19 = vld [vmem:[#allocation5 + $0x458] sm:$0xff] }
 0x16c   :  { %3240 = vmatpush1.bf16.msra.mxu0 %v8161_v36  ;;  %3412 = vmatpush1.bf16.msra.mxu1 %v8163_v37  ;;  %v220_v36 = vld [vmem:[#allocation5 + $0x2f8] sm:$0xff]  ;;  %v8225_v37 = vcombine.low %v207_v24, %v211_v25  ;;  %v271_v25 = vld [vmem:[#allocation5 + $0x490] sm:$0xff] }
 0x16d   :  { %3241 = vmatprep.subr.bf16.mxu0 %v8170_v38  ;;  %3413 = vmatprep.subr.bf16.mxu1 %v8172_v39  ;;  %v8227_v38 = vcombine.low %v208_v26, %v212_v27  ;;  %v8234_v39 = vcombine.high %v215_v33, %v219_v34  ;;  %v8236_v40 = vcombine.high %v216_v35, %v220_v36  ;;  %v275_v26 = vld [vmem:[#allocation5 + $0x4b0] sm:$0xff]  ;;  %v9474_v27 = vld [vmem:[#allocation2] ss:$28 sps:$4 sm:$0xff]  }
 0x170   :  { %3242 = vmatpush1.bf16.msra.mxu0 %v8169_v44  ;;  %3414 = vmatpush1.bf16.msra.mxu1 %v8171_v45  ;;  %v228_v44 = vld [vmem:[#allocation5 + $0x338] sm:$0xff]  ;;  %v8233_v45 = vcombine.low %v215_v33, %v219_v34  ;;  %v8290_v33 = vcombine.high %v271_v25, %v275_v26 }
 0x171   :  { %3243 = vmatprep.subr.bf16.mxu0 %v8178_v46  ;;  %3415 = vmatprep.subr.bf16.mxu1 %v8180_v47  ;;  %v8235_v46 = vcombine.low %v216_v35, %v220_v36  ;;  %v8242_v47 = vcombine.high %v223_v41, %v227_v42  ;;  %v8244_v48 = vcombine.high %v224_v43, %v228_v44  ;;  %v279_v35 = vld [vmem:[#allocation5 + $0x4d0] sm:$0xff] }
 0x172   :  { %v283_v36 = vld [vmem:[#allocation5 + $0x4f0] sm:$0xff] }
 0x174   :  { %3244 = vmatpush1.bf16.msra.mxu0 %v8177_v52  ;;  %3416 = vmatpush1.bf16.msra.mxu1 %v8179_v53  ;;  %v236_v52 = vld [vmem:[#allocation5 + $0x378] sm:$0xff]  ;;  %v8241_v53 = vcombine.low %v223_v41, %v227_v42  ;;  %v8298_v42 = vcombine.high %v279_v35, %v283_v36 }
 0x175   :  { %3245 = vmatprep.subr.bf16.mxu0 %v8186_v54  ;;  %3417 = vmatprep.subr.bf16.mxu1 %v8188_v55  ;;  %v8243_v54 = vcombine.low %v224_v43, %v228_v44  ;;  %v8250_v55 = vcombine.high %v231_v49, %v235_v50  ;;  %v8252_v56 = vcombine.high %v232_v51, %v236_v52  ;;  %v287_v44 = vld [vmem:[#allocation5 + $0x510] sm:$0xff] }
 0x178   :  { %3246 = vmatpush1.bf16.msra.mxu0 %v8185_v60  ;;  %3418 = vmatpush1.bf16.msra.mxu1 %v8187_v61  ;;  %v244_v60 = vld [vmem:[#allocation5 + $0x3b8] sm:$0xff]  ;;  %v8249_v61 = vcombine.low %v231_v49, %v235_v50 }
 0x179   :  { %3247 = vmatprep.subr.bf16.mxu0 %v8194_v62  ;;  %3419 = vmatprep.subr.bf16.mxu1 %v8196_v63  ;;  %v8251_v62 = vcombine.low %v232_v51, %v236_v52  ;;  %v8258_v63 = vcombine.high %v239_v57, %v243_v58  ;;  %v8260_v0 = vcombine.high %v240_v59, %v244_v60  ;;  %v295_v52 = vld [vmem:[#allocation5 + $0x550] sm:$0xff] }
 0x17c   :  { %3248 = vmatpush1.bf16.msra.mxu0 %v8193_v4  ;;  %3420 = vmatpush1.bf16.msra.mxu1 %v8195_v5  ;;  %v252_v4 = vld [vmem:[#allocation5 + $0x3f8] sm:$0xff]  ;;  %v8257_v5 = vcombine.low %v239_v57, %v243_v58 }
 0x17d   :  { %3249 = vmatprep.subr.bf16.mxu0 %v8202_v6  ;;  %3421 = vmatprep.subr.bf16.mxu1 %v8204_v7  ;;  %v8259_v6 = vcombine.low %v240_v59, %v244_v60  ;;  %v8266_v7 = vcombine.high %v247_v1, %v251_v2  ;;  %v8268_v8 = vcombine.high %v248_v3, %v252_v4  ;;  %v303_v60 = vld [vmem:[#allocation5 + $0x590] sm:$0xff] }
 0x180   :  { %3250 = vmatpush1.bf16.msra.mxu0 %v8201_v12  ;;  %3422 = vmatpush1.bf16.msra.mxu1 %v8203_v13  ;;  %v260_v12 = vld [vmem:[#allocation5 + $0x438] sm:$0xff]  ;;  %v8265_v13 = vcombine.low %v247_v1, %v251_v2 }
 0x181   :  { %3251 = vmatprep.subr.bf16.mxu0 %v8210_v14  ;;  %3423 = vmatprep.subr.bf16.mxu1 %v8212_v15  ;;  %v8267_v14 = vcombine.low %v248_v3, %v252_v4  ;;  %v8274_v15 = vcombine.high %v255_v9, %v259_v10  ;;  %v8276_v16 = vcombine.high %v256_v11, %v260_v12  ;;  %v311_v4 = vld [vmem:[#allocation5 + $0x5d0] sm:$0xff] }
 0x184   :  { %3252 = vmatpush1.bf16.msra.mxu0 %v8209_v20  ;;  %3424 = vmatpush1.bf16.msra.mxu1 %v8211_v21  ;;  %v268_v20 = vld [vmem:[#allocation5 + $0x478] sm:$0xff]  ;;  %v8273_v21 = vcombine.low %v255_v9, %v259_v10 }
 0x185   :  { %3253 = vmatprep.subr.bf16.mxu0 %v8218_v22  ;;  %3425 = vmatprep.subr.bf16.mxu1 %v8220_v23  ;;  %v8275_v22 = vcombine.low %v256_v11, %v260_v12  ;;  %v8282_v23 = vcombine.high %v263_v17, %v267_v18  ;;  %v8284_v24 = vcombine.high %v264_v19, %v268_v20  ;;  %v319_v12 = vld [vmem:[#allocation5 + $0x610] sm:$0xff] }
 0x188   :  { %3254 = vmatpush1.bf16.msra.mxu0 %v8217_v28  ;;  %3426 = vmatpush1.bf16.msra.mxu1 %v8219_v29  ;;  %v272_v28 = vld [vmem:[#allocation5 + $0x498] sm:$0xff] }
 0x189   :  { %3255 = vmatprep.subr.bf16.mxu0 %v8226_v31  ;;  %3427 = vmatprep.subr.bf16.mxu1 %v8228_v32  ;;  %v276_v29 = vld [vmem:[#allocation5 + $0x4b8] sm:$0xff]  ;;  %v8281_v31 = vcombine.low %v263_v17, %v267_v18  ;;  %v8283_v32 = vcombine.low %v264_v19, %v268_v20  ;;  %v327_v20 = vld [vmem:[#allocation5 + $0x650] sm:$0xff] }
 0x18a   :  { %v8292_v34 = vcombine.high %v272_v28, %v276_v29  ;;  %v8291_v41 = vcombine.low %v272_v28, %v276_v29  ;;  %v335_v28 = vld [vmem:[#allocation5 + $0x690] sm:$0xff] }
 0x18b   :  { %v339_v29 = vld [vmem:[#allocation5 + $0x6b0] sm:$0xff] }
 0x18c   :  { %3256 = vmatpush1.bf16.msra.mxu0 %v8225_v37  ;;  %3428 = vmatpush1.bf16.msra.mxu1 %v8227_v38  ;;  %v9475_v37 = vld [vmem:[#allocation2 + $0xc] ss:$28 sps:$4 sm:$0xff]   ;;  %v280_v38 = vld [vmem:[#allocation5 + $0x4d8] sm:$0xff] }
 0x18d   :  { %3257 = vmatprep.subr.bf16.mxu0 %v8234_v39  ;;  %3429 = vmatprep.subr.bf16.mxu1 %v8236_v40  ;;  %v284_v39 = vld [vmem:[#allocation5 + $0x4f8] sm:$0xff]  ;;  %v8289_v40 = vcombine.low %v271_v25, %v275_v26 }
 0x18e   :  { %v8300_v43 = vcombine.high %v280_v38, %v284_v39  ;;  %v8299_v49 = vcombine.low %v280_v38, %v284_v39  ;;  %v347_v38 = vld [vmem:[#allocation5 + $0x6f0] sm:$0xff]  ;;  %v344_v39 = vld [vmem:[#allocation5 + $0x6d8] sm:$0xff] }
 0x190   :  { %3258 = vmatpush1.bf16.msra.mxu0 %v8233_v45  ;;  %3430 = vmatpush1.bf16.msra.mxu1 %v8235_v46  ;;  %v291_v45 = vld [vmem:[#allocation5 + $0x530] sm:$0xff]  ;;  %v288_v46 = vld [vmem:[#allocation5 + $0x518] sm:$0xff] }
 0x191   :  { %3259 = vmatprep.subr.bf16.mxu0 %v8242_v47  ;;  %3431 = vmatprep.subr.bf16.mxu1 %v8244_v48  ;;  %v292_v47 = vld [vmem:[#allocation5 + $0x538] sm:$0xff]  ;;  %v8297_v48 = vcombine.low %v279_v35, %v283_v36  ;;  %v8306_v50 = vcombine.high %v287_v44, %v291_v45  ;;  %v8354_v35 = vcombine.high %v335_v28, %v339_v29 }
 0x192   :  { %v8308_v51 = vcombine.high %v288_v46, %v292_v47  ;;  %v8307_v57 = vcombine.low %v288_v46, %v292_v47  ;;  %v355_v46 = vld [vmem:[#allocation5 + $0x730] sm:$0xff]  ;;  %v352_v47 = vld [vmem:[#allocation5 + $0x718] sm:$0xff] }
 0x194   :  { %3260 = vmatpush1.bf16.msra.mxu0 %v8241_v53  ;;  %3432 = vmatpush1.bf16.msra.mxu1 %v8243_v54  ;;  %v299_v53 = vld [vmem:[#allocation5 + $0x570] sm:$0xff]  ;;  %v296_v54 = vld [vmem:[#allocation5 + $0x558] sm:$0xff] }
 0x195   :  { %3261 = vmatprep.subr.bf16.mxu0 %v8250_v55  ;;  %3433 = vmatprep.subr.bf16.mxu1 %v8252_v56  ;;  %v300_v55 = vld [vmem:[#allocation5 + $0x578] sm:$0xff]  ;;  %v8305_v56 = vcombine.low %v287_v44, %v291_v45  ;;  %v8314_v58 = vcombine.high %v295_v52, %v299_v53  ;;  %v351_v45 = vld [vmem:[#allocation5 + $0x710] sm:$0xff] }
 0x196   :  { %v8316_v59 = vcombine.high %v296_v54, %v300_v55  ;;  %v8315_v1 = vcombine.low %v296_v54, %v300_v55  ;;  %v363_v54 = vld [vmem:[#allocation5 + $0x770] sm:$0xff]  ;;  %v360_v55 = vld [vmem:[#allocation5 + $0x758] sm:$0xff] }
 0x198   :  { %3262 = vmatpush1.bf16.msra.mxu0 %v8249_v61  ;;  %3434 = vmatpush1.bf16.msra.mxu1 %v8251_v62  ;;  %v307_v61 = vld [vmem:[#allocation5 + $0x5b0] sm:$0xff]  ;;  %v304_v62 = vld [vmem:[#allocation5 + $0x598] sm:$0xff] }
 0x199   :  { %3263 = vmatprep.subr.bf16.mxu0 %v8258_v63  ;;  %3435 = vmatprep.subr.bf16.mxu1 %v8260_v0  ;;  %v308_v63 = vld [vmem:[#allocation5 + $0x5b8] sm:$0xff]  ;;  %v8313_v0 = vcombine.low %v295_v52, %v299_v53  ;;  %v8322_v2 = vcombine.high %v303_v60, %v307_v61  ;;  %v359_v53 = vld [vmem:[#allocation5 + $0x750] sm:$0xff] }
 0x19a   :  { %v8324_v3 = vcombine.high %v304_v62, %v308_v63  ;;  %v8323_v9 = vcombine.low %v304_v62, %v308_v63  ;;  %v371_v62 = vld [vmem:[#allocation5 + $0x7b0] sm:$0xff]  ;;  %v368_v63 = vld [vmem:[#allocation5 + $0x798] sm:$0xff] }
 0x19c   :  { %3264 = vmatpush1.bf16.msra.mxu0 %v8257_v5  ;;  %3436 = vmatpush1.bf16.msra.mxu1 %v8259_v6  ;;  %v315_v5 = vld [vmem:[#allocation5 + $0x5f0] sm:$0xff]  ;;  %v312_v6 = vld [vmem:[#allocation5 + $0x5d8] sm:$0xff] }
 0x19d   :  { %3265 = vmatprep.subr.bf16.mxu0 %v8266_v7  ;;  %3437 = vmatprep.subr.bf16.mxu1 %v8268_v8  ;;  %v316_v7 = vld [vmem:[#allocation5 + $0x5f8] sm:$0xff]  ;;  %v8321_v8 = vcombine.low %v303_v60, %v307_v61  ;;  %v8330_v10 = vcombine.high %v311_v4, %v315_v5  ;;  %v367_v61 = vld [vmem:[#allocation5 + $0x790] sm:$0xff] }
 0x19e   :  { %v8332_v11 = vcombine.high %v312_v6, %v316_v7  ;;  %v8331_v17 = vcombine.low %v312_v6, %v316_v7  ;;  %v379_v6 = vld [vmem:[#allocation5 + $0x7f0] sm:$0xff]  ;;  %v376_v7 = vld [vmem:[#allocation5 + $0x7d8] sm:$0xff] }
 0x1a0   :  { %3266 = vmatpush1.bf16.msra.mxu0 %v8265_v13  ;;  %3438 = vmatpush1.bf16.msra.mxu1 %v8267_v14  ;;  %v323_v13 = vld [vmem:[#allocation5 + $0x630] sm:$0xff]  ;;  %v320_v14 = vld [vmem:[#allocation5 + $0x618] sm:$0xff] }
 0x1a1   :  { %3278 = vmatprep.subr.bf16.mxu0 %v8274_v15  ;;  %3450 = vmatprep.subr.bf16.mxu1 %v8276_v16  ;;  %v324_v15 = vld [vmem:[#allocation5 + $0x638] sm:$0xff]  ;;  %v8329_v16 = vcombine.low %v311_v4, %v315_v5  ;;  %v8338_v18 = vcombine.high %v319_v12, %v323_v13  ;;  %v375_v5 = vld [vmem:[#allocation5 + $0x7d0] sm:$0xff] }
 0x1a2   :  { %v8340_v19 = vcombine.high %v320_v14, %v324_v15  ;;  %v8339_v25 = vcombine.low %v320_v14, %v324_v15  ;;  %v387_v14 = vld [vmem:[#allocation5 + $0x830] sm:$0xff]  ;;  %v384_v15 = vld [vmem:[#allocation5 + $0x818] sm:$0xff] }
 0x1a3   :  { %3268 = vmatmul.mubr.bf16.vlgmr.msra.gmra.mrb[4].mxu0 %v9474_v27  ;;  %3440 = vmatmul.mubr.bf16.vlgmr.msra.gmra.mrb[4].mxu1 %v9474_v27 }
 0x1a4   :  { %3279 = vmatpush1.bf16.msra.mxu0 %v8273_v21  ;;  %3451 = vmatpush1.bf16.msra.mxu1 %v8275_v22  ;;  %v331_v21 = vld [vmem:[#allocation5 + $0x670] sm:$0xff]  ;;  %v328_v22 = vld [vmem:[#allocation5 + $0x658] sm:$0xff] }
 0x1a5   :  { %3280 = vmatprep.subr.bf16.mxu0 %v8282_v23  ;;  %3452 = vmatprep.subr.bf16.mxu1 %v8284_v24  ;;  %v332_v23 = vld [vmem:[#allocation5 + $0x678] sm:$0xff]  ;;  %v8337_v24 = vcombine.low %v319_v12, %v323_v13  ;;  %v8346_v26 = vcombine.high %v327_v20, %v331_v21  ;;  %v383_v13 = vld [vmem:[#allocation5 + $0x810] sm:$0xff] }
 0x1a6   :  { %3310 = vmatprep.mubr.bf16.mxu0 %v9475_v37  ;;  %3482 = vmatprep.mubr.bf16.mxu1 %v9475_v37  ;;  %v8348_v27 = vcombine.high %v328_v22, %v332_v23  ;;  %v343_v37 = vld [vmem:[#allocation5 + $0x6d0] sm:$0xff] }
 0x1a8   :  { %3281 = vmatpush1.bf16.msra.mxu0 %v8281_v31  ;;  %3453 = vmatpush1.bf16.msra.mxu1 %v8283_v32  ;;  %v336_v31 = vld [vmem:[#allocation5 + $0x698] sm:$0xff] }
 0x1a9   :  { %3282 = vmatprep.subr.bf16.mxu0 %v8290_v33  ;;  %3454 = vmatprep.subr.bf16.mxu1 %v8292_v34  ;;  %v340_v32 = vld [vmem:[#allocation5 + $0x6b8] sm:$0xff]  ;;  %v8345_v33 = vcombine.low %v327_v20, %v331_v21  ;;  %v8347_v34 = vcombine.low %v328_v22, %v332_v23  ;;  %v391_v21 = vld [vmem:[#allocation5 + $0x850] sm:$0xff] }
 0x1aa   :  { %v8356_v36 = vcombine.high %v336_v31, %v340_v32  ;;  %v395_v22 = vld [vmem:[#allocation5 + $0x870] sm:$0xff]  ;;  %v392_v23 = vld [vmem:[#allocation5 + $0x858] sm:$0xff] }
 0x1ac   :  { %3283 = vmatpush1.bf16.msra.mxu0 %v8289_v40  ;;  %3455 = vmatpush1.bf16.msra.mxu1 %v8291_v41  ;;  %v348_v40 = vld [vmem:[#allocation5 + $0x6f8] sm:$0xff]  ;;  %v8353_v41 = vcombine.low %v335_v28, %v339_v29  ;;  %v399_v29 = vld [vmem:[#allocation5 + $0x890] sm:$0xff] }
 0x1ad   :  { %3284 = vmatprep.subr.bf16.mxu0 %v8298_v42  ;;  %3456 = vmatprep.subr.bf16.mxu1 %v8300_v43  ;;  %v8355_v42 = vcombine.low %v336_v31, %v340_v32  ;;  %v8362_v43 = vcombine.high %v343_v37, %v347_v38  ;;  %v8364_v44 = vcombine.high %v344_v39, %v348_v40  ;;  %v403_v31 = vld [vmem:[#allocation5 + $0x8b0] sm:$0xff] }
 0x1ae   :  { %v9476_v32 = vld [vmem:[#allocation2 + $0x8] ss:$28 sps:$4 sm:$0xff]  }
 0x1b0   :  { %3285 = vmatpush1.bf16.msra.mxu0 %v8297_v48  ;;  %3457 = vmatpush1.bf16.msra.mxu1 %v8299_v49  ;;  %v356_v48 = vld [vmem:[#allocation5 + $0x738] sm:$0xff]  ;;  %v8361_v49 = vcombine.low %v343_v37, %v347_v38  ;;  %v8418_v37 = vcombine.high %v399_v29, %v403_v31 }
 0x1b1   :  { %3286 = vmatprep.subr.bf16.mxu0 %v8306_v50  ;;  %3458 = vmatprep.subr.bf16.mxu1 %v8308_v51  ;;  %v8363_v50 = vcombine.low %v344_v39, %v348_v40  ;;  %v8370_v51 = vcombine.high %v351_v45, %v355_v46  ;;  %v8372_v52 = vcombine.high %v352_v47, %v356_v48  ;;  %v407_v39 = vld [vmem:[#allocation5 + $0x8d0] sm:$0xff] }
 0x1b2   :  { %v411_v40 = vld [vmem:[#allocation5 + $0x8f0] sm:$0xff] }
 0x1b4   :  { %3287 = vmatpush1.bf16.msra.mxu0 %v8305_v56  ;;  %3459 = vmatpush1.bf16.msra.mxu1 %v8307_v57  ;;  %v364_v56 = vld [vmem:[#allocation5 + $0x778] sm:$0xff]  ;;  %v8369_v57 = vcombine.low %v351_v45, %v355_v46  ;;  %v8426_v46 = vcombine.high %v407_v39, %v411_v40 }
 0x1b5   :  { %3288 = vmatprep.subr.bf16.mxu0 %v8314_v58  ;;  %3460 = vmatprep.subr.bf16.mxu1 %v8316_v59  ;;  %v8371_v58 = vcombine.low %v352_v47, %v356_v48  ;;  %v8378_v59 = vcombine.high %v359_v53, %v363_v54  ;;  %v8380_v60 = vcombine.high %v360_v55, %v364_v56  ;;  %v415_v48 = vld [vmem:[#allocation5 + $0x910] sm:$0xff] }
 0x1b8   :  { %3289 = vmatpush1.bf16.msra.mxu0 %v8313_v0  ;;  %3461 = vmatpush1.bf16.msra.mxu1 %v8315_v1  ;;  %v372_v0 = vld [vmem:[#allocation5 + $0x7b8] sm:$0xff]  ;;  %v8377_v1 = vcombine.low %v359_v53, %v363_v54 }
 0x1b9   :  { %3290 = vmatprep.subr.bf16.mxu0 %v8322_v2  ;;  %3462 = vmatprep.subr.bf16.mxu1 %v8324_v3  ;;  %v8379_v2 = vcombine.low %v360_v55, %v364_v56  ;;  %v8386_v3 = vcombine.high %v367_v61, %v371_v62  ;;  %v8388_v4 = vcombine.high %v368_v63, %v372_v0  ;;  %v423_v56 = vld [vmem:[#allocation5 + $0x950] sm:$0xff] }
 0x1bc   :  { %3291 = vmatpush1.bf16.msra.mxu0 %v8321_v8  ;;  %3463 = vmatpush1.bf16.msra.mxu1 %v8323_v9  ;;  %v380_v8 = vld [vmem:[#allocation5 + $0x7f8] sm:$0xff]  ;;  %v8385_v9 = vcombine.low %v367_v61, %v371_v62 }
 0x1bd   :  { %3292 = vmatprep.subr.bf16.mxu0 %v8330_v10  ;;  %3464 = vmatprep.subr.bf16.mxu1 %v8332_v11  ;;  %v8387_v10 = vcombine.low %v368_v63, %v372_v0  ;;  %v8394_v11 = vcombine.high %v375_v5, %v379_v6  ;;  %v8396_v12 = vcombine.high %v376_v7, %v380_v8  ;;  %v431_v0 = vld [vmem:[#allocation5 + $0x990] sm:$0xff] }
 0x1c0   :  { %3293 = vmatpush1.bf16.msra.mxu0 %v8329_v16  ;;  %3465 = vmatpush1.bf16.msra.mxu1 %v8331_v17  ;;  %v388_v16 = vld [vmem:[#allocation5 + $0x838] sm:$0xff]  ;;  %v8393_v17 = vcombine.low %v375_v5, %v379_v6 }
 0x1c1   :  { %3294 = vmatprep.subr.bf16.mxu0 %v8338_v18  ;;  %3466 = vmatprep.subr.bf16.mxu1 %v8340_v19  ;;  %v8395_v18 = vcombine.low %v376_v7, %v380_v8  ;;  %v8402_v19 = vcombine.high %v383_v13, %v387_v14  ;;  %v8404_v20 = vcombine.high %v384_v15, %v388_v16  ;;  %v439_v8 = vld [vmem:[#allocation5 + $0x9d0] sm:$0xff] }
 0x1c4   :  { %3295 = vmatpush1.bf16.msra.mxu0 %v8337_v24  ;;  %3467 = vmatpush1.bf16.msra.mxu1 %v8339_v25  ;;  %v396_v24 = vld [vmem:[#allocation5 + $0x878] sm:$0xff]  ;;  %v8401_v25 = vcombine.low %v383_v13, %v387_v14 }
 0x1c5   :  { %3296 = vmatprep.subr.bf16.mxu0 %v8346_v26  ;;  %3468 = vmatprep.subr.bf16.mxu1 %v8348_v27  ;;  %v8403_v26 = vcombine.low %v384_v15, %v388_v16  ;;  %v8410_v27 = vcombine.high %v391_v21, %v395_v22  ;;  %v8412_v28 = vcombine.high %v392_v23, %v396_v24  ;;  %v447_v16 = vld [vmem:[#allocation5 + $0xa10] sm:$0xff] }
 0x1c8   :  { %3297 = vmatpush1.bf16.msra.mxu0 %v8345_v33  ;;  %3469 = vmatpush1.bf16.msra.mxu1 %v8347_v34  ;;  %v400_v33 = vld [vmem:[#allocation5 + $0x898] sm:$0xff] }
 0x1c9   :  { %3298 = vmatprep.subr.bf16.mxu0 %v8354_v35  ;;  %3470 = vmatprep.subr.bf16.mxu1 %v8356_v36  ;;  %v404_v34 = vld [vmem:[#allocation5 + $0x8b8] sm:$0xff]  ;;  %v8409_v35 = vcombine.low %v391_v21, %v395_v22  ;;  %v8411_v36 = vcombine.low %v392_v23, %v396_v24  ;;  %v455_v24 = vld [vmem:[#allocation5 + $0xa50] sm:$0xff] }
 0x1ca   :  { %v8420_v38 = vcombine.high %v400_v33, %v404_v34  ;;  %v8419_v45 = vcombine.low %v400_v33, %v404_v34  ;;  %v463_v33 = vld [vmem:[#allocation5 + $0xa90] sm:$0xff] }
 0x1cb   :  { %v467_v34 = vld [vmem:[#allocation5 + $0xab0] sm:$0xff] }
 0x1cc   :  { %3299 = vmatpush1.bf16.msra.mxu0 %v8353_v41  ;;  %3471 = vmatpush1.bf16.msra.mxu1 %v8355_v42  ;;  %v9477_v41 = vld [vmem:[#allocation2 + $0x14] ss:$28 sps:$4 sm:$0xff]  }
 0x1cd   :  { %3300 = vmatprep.subr.bf16.mxu0 %v8362_v43  ;;  %3472 = vmatprep.subr.bf16.mxu1 %v8364_v44  ;;  %v408_v42 = vld [vmem:[#allocation5 + $0x8d8] sm:$0xff]  ;;  %v8417_v44 = vcombine.low %v399_v29, %v403_v31 }
 0x1ce   :  { %v412_v43 = vld [vmem:[#allocation5 + $0x8f8] sm:$0xff] }
 0x1cf   :  { %v8428_v47 = vcombine.high %v408_v42, %v412_v43  ;;  %v8427_v53 = vcombine.low %v408_v42, %v412_v43  ;;  %v475_v42 = vld [vmem:[#allocation5 + $0xaf0] sm:$0xff]  ;;  %v472_v43 = vld [vmem:[#allocation5 + $0xad8] sm:$0xff] }
 0x1d0   :  { %3301 = vmatpush1.bf16.msra.mxu0 %v8361_v49  ;;  %3473 = vmatpush1.bf16.msra.mxu1 %v8363_v50  ;;  %v419_v49 = vld [vmem:[#allocation5 + $0x930] sm:$0xff]  ;;  %v416_v50 = vld [vmem:[#allocation5 + $0x918] sm:$0xff] }
 0x1d1   :  { %3302 = vmatprep.subr.bf16.mxu0 %v8370_v51  ;;  %3474 = vmatprep.subr.bf16.mxu1 %v8372_v52  ;;  %v420_v51 = vld [vmem:[#allocation5 + $0x938] sm:$0xff]  ;;  %v8425_v52 = vcombine.low %v407_v39, %v411_v40  ;;  %v8434_v54 = vcombine.high %v415_v48, %v419_v49  ;;  %v8482_v39 = vcombine.high %v463_v33, %v467_v34 }
 0x1d2   :  { %v8436_v55 = vcombine.high %v416_v50, %v420_v51  ;;  %v8435_v61 = vcombine.low %v416_v50, %v420_v51  ;;  %v483_v50 = vld [vmem:[#allocation5 + $0xb30] sm:$0xff]  ;;  %v480_v51 = vld [vmem:[#allocation5 + $0xb18] sm:$0xff] }
 0x1d4   :  { %3303 = vmatpush1.bf16.msra.mxu0 %v8369_v57  ;;  %3475 = vmatpush1.bf16.msra.mxu1 %v8371_v58  ;;  %v427_v57 = vld [vmem:[#allocation5 + $0x970] sm:$0xff]  ;;  %v424_v58 = vld [vmem:[#allocation5 + $0x958] sm:$0xff] }
 0x1d5   :  { %3304 = vmatprep.subr.bf16.mxu0 %v8378_v59  ;;  %3476 = vmatprep.subr.bf16.mxu1 %v8380_v60  ;;  %v428_v59 = vld [vmem:[#allocation5 + $0x978] sm:$0xff]  ;;  %v8433_v60 = vcombine.low %v415_v48, %v419_v49  ;;  %v8442_v62 = vcombine.high %v423_v56, %v427_v57  ;;  %v479_v49 = vld [vmem:[#allocation5 + $0xb10] sm:$0xff] }
 0x1d6   :  { %v8444_v63 = vcombine.high %v424_v58, %v428_v59  ;;  %v8443_v5 = vcombine.low %v424_v58, %v428_v59  ;;  %v491_v58 = vld [vmem:[#allocation5 + $0xb70] sm:$0xff]  ;;  %v488_v59 = vld [vmem:[#allocation5 + $0xb58] sm:$0xff] }
 0x1d8   :  { %3305 = vmatpush1.bf16.msra.mxu0 %v8377_v1  ;;  %3477 = vmatpush1.bf16.msra.mxu1 %v8379_v2  ;;  %v435_v1 = vld [vmem:[#allocation5 + $0x9b0] sm:$0xff]  ;;  %v432_v2 = vld [vmem:[#allocation5 + $0x998] sm:$0xff] }
 0x1d9   :  { %3306 = vmatprep.subr.bf16.mxu0 %v8386_v3  ;;  %3478 = vmatprep.subr.bf16.mxu1 %v8388_v4  ;;  %v436_v3 = vld [vmem:[#allocation5 + $0x9b8] sm:$0xff]  ;;  %v8441_v4 = vcombine.low %v423_v56, %v427_v57  ;;  %v8450_v6 = vcombine.high %v431_v0, %v435_v1  ;;  %v487_v57 = vld [vmem:[#allocation5 + $0xb50] sm:$0xff] }
 0x1da   :  { %v8452_v7 = vcombine.high %v432_v2, %v436_v3  ;;  %v8451_v13 = vcombine.low %v432_v2, %v436_v3  ;;  %v499_v2 = vld [vmem:[#allocation5 + $0xbb0] sm:$0xff]  ;;  %v496_v3 = vld [vmem:[#allocation5 + $0xb98] sm:$0xff] }
 0x1dc   :  { %3307 = vmatpush1.bf16.msra.mxu0 %v8385_v9  ;;  %3479 = vmatpush1.bf16.msra.mxu1 %v8387_v10  ;;  %v443_v9 = vld [vmem:[#allocation5 + $0x9f0] sm:$0xff]  ;;  %v440_v10 = vld [vmem:[#allocation5 + $0x9d8] sm:$0xff] }
 0x1dd   :  { %3308 = vmatprep.subr.bf16.mxu0 %v8394_v11  ;;  %3480 = vmatprep.subr.bf16.mxu1 %v8396_v12  ;;  %v444_v11 = vld [vmem:[#allocation5 + $0x9f8] sm:$0xff]  ;;  %v8449_v12 = vcombine.low %v431_v0, %v435_v1  ;;  %v8458_v14 = vcombine.high %v439_v8, %v443_v9  ;;  %v495_v1 = vld [vmem:[#allocation5 + $0xb90] sm:$0xff] }
 0x1de   :  { %v8460_v15 = vcombine.high %v440_v10, %v444_v11  ;;  %v8459_v21 = vcombine.low %v440_v10, %v444_v11  ;;  %v507_v10 = vld [vmem:[#allocation5 + $0xbf0] sm:$0xff]  ;;  %v504_v11 = vld [vmem:[#allocation5 + $0xbd8] sm:$0xff] }
 0x1e0   :  { %3309 = vmatpush1.bf16.msra.mxu0 %v8393_v17  ;;  %3481 = vmatpush1.bf16.msra.mxu1 %v8395_v18  ;;  %v451_v17 = vld [vmem:[#allocation5 + $0xa30] sm:$0xff]  ;;  %v448_v18 = vld [vmem:[#allocation5 + $0xa18] sm:$0xff] }
 0x1e1   :  { %3321 = vmatprep.subr.bf16.mxu0 %v8402_v19  ;;  %3493 = vmatprep.subr.bf16.mxu1 %v8404_v20  ;;  %v452_v19 = vld [vmem:[#allocation5 + $0xa38] sm:$0xff]  ;;  %v8457_v20 = vcombine.low %v439_v8, %v443_v9  ;;  %v8466_v22 = vcombine.high %v447_v16, %v451_v17  ;;  %v503_v9 = vld [vmem:[#allocation5 + $0xbd0] sm:$0xff] }
 0x1e2   :  { %v8468_v23 = vcombine.high %v448_v18, %v452_v19  ;;  %v8467_v29 = vcombine.low %v448_v18, %v452_v19  ;;  %v515_v18 = vld [vmem:[#allocation5 + $0xc30] sm:$0xff]  ;;  %v512_v19 = vld [vmem:[#allocation5 + $0xc18] sm:$0xff] }
 0x1e3   :  { %3311 = vmatmul.mubr.bf16.vlgmr.msra.gmra.mrb[4].mxu0 %v9476_v32  ;;  %3483 = vmatmul.mubr.bf16.vlgmr.msra.gmra.mrb[4].mxu1 %v9476_v32 }
 0x1e4   :  { %3322 = vmatpush1.bf16.msra.mxu0 %v8401_v25  ;;  %3494 = vmatpush1.bf16.msra.mxu1 %v8403_v26  ;;  %v459_v25 = vld [vmem:[#allocation5 + $0xa70] sm:$0xff]  ;;  %v456_v26 = vld [vmem:[#allocation5 + $0xa58] sm:$0xff] }
 0x1e5   :  { %3323 = vmatprep.subr.bf16.mxu0 %v8410_v27  ;;  %3495 = vmatprep.subr.bf16.mxu1 %v8412_v28  ;;  %v460_v27 = vld [vmem:[#allocation5 + $0xa78] sm:$0xff]  ;;  %v8465_v28 = vcombine.low %v447_v16, %v451_v17  ;;  %v8474_v31 = vcombine.high %v455_v24, %v459_v25  ;;  %v511_v17 = vld [vmem:[#allocation5 + $0xc10] sm:$0xff] }
 0x1e6   :  { %3353 = vmatprep.mubr.bf16.mxu0 %v9477_v41  ;;  %3525 = vmatprep.mubr.bf16.mxu1 %v9477_v41  ;;  %v8476_v32 = vcombine.high %v456_v26, %v460_v27  ;;  %v471_v41 = vld [vmem:[#allocation5 + $0xad0] sm:$0xff] }
 0x1e8   :  { %3324 = vmatpush1.bf16.msra.mxu0 %v8409_v35  ;;  %3496 = vmatpush1.bf16.msra.mxu1 %v8411_v36  ;;  %v464_v35 = vld [vmem:[#allocation5 + $0xa98] sm:$0xff] }
 0x1e9   :  { %3325 = vmatprep.subr.bf16.mxu0 %v8418_v37  ;;  %3497 = vmatprep.subr.bf16.mxu1 %v8420_v38  ;;  %v468_v36 = vld [vmem:[#allocation5 + $0xab8] sm:$0xff]  ;;  %v8473_v37 = vcombine.low %v455_v24, %v459_v25  ;;  %v8475_v38 = vcombine.low %v456_v26, %v460_v27  ;;  %v519_v25 = vld [vmem:[#allocation5 + $0xc50] sm:$0xff] }
 0x1ea   :  { %v8484_v40 = vcombine.high %v464_v35, %v468_v36  ;;  %v523_v26 = vld [vmem:[#allocation5 + $0xc70] sm:$0xff]  ;;  %v520_v27 = vld [vmem:[#allocation5 + $0xc58] sm:$0xff] }
 0x1ec   :  { %3326 = vmatpush1.bf16.msra.mxu0 %v8417_v44  ;;  %3498 = vmatpush1.bf16.msra.mxu1 %v8419_v45  ;;  %v476_v44 = vld [vmem:[#allocation5 + $0xaf8] sm:$0xff]  ;;  %v8481_v45 = vcombine.low %v463_v33, %v467_v34  ;;  %v527_v34 = vld [vmem:[#allocation5 + $0xc90] sm:$0xff] }
 0x1ed   :  { %3327 = vmatprep.subr.bf16.mxu0 %v8426_v46  ;;  %3499 = vmatprep.subr.bf16.mxu1 %v8428_v47  ;;  %v8483_v46 = vcombine.low %v464_v35, %v468_v36  ;;  %v8490_v47 = vcombine.high %v471_v41, %v475_v42  ;;  %v8492_v48 = vcombine.high %v472_v43, %v476_v44  ;;  %v531_v35 = vld [vmem:[#allocation5 + $0xcb0] sm:$0xff] }
 0x1ee   :  { %v9478_v36 = vld [vmem:[#allocation2 + $0x10] ss:$28 sps:$4 sm:$0xff]  }
 0x1f0   :  { %3328 = vmatpush1.bf16.msra.mxu0 %v8425_v52  ;;  %3500 = vmatpush1.bf16.msra.mxu1 %v8427_v53  ;;  %v484_v52 = vld [vmem:[#allocation5 + $0xb38] sm:$0xff]  ;;  %v8489_v53 = vcombine.low %v471_v41, %v475_v42  ;;  %v8546_v41 = vcombine.high %v527_v34, %v531_v35 }
 0x1f1   :  { %3329 = vmatprep.subr.bf16.mxu0 %v8434_v54  ;;  %3501 = vmatprep.subr.bf16.mxu1 %v8436_v55  ;;  %v8491_v54 = vcombine.low %v472_v43, %v476_v44  ;;  %v8498_v55 = vcombine.high %v479_v49, %v483_v50  ;;  %v8500_v56 = vcombine.high %v480_v51, %v484_v52  ;;  %v535_v43 = vld [vmem:[#allocation5 + $0xcd0] sm:$0xff] }
 0x1f2   :  { %v539_v44 = vld [vmem:[#allocation5 + $0xcf0] sm:$0xff] }
 0x1f4   :  { %3330 = vmatpush1.bf16.msra.mxu0 %v8433_v60  ;;  %3502 = vmatpush1.bf16.msra.mxu1 %v8435_v61  ;;  %v492_v60 = vld [vmem:[#allocation5 + $0xb78] sm:$0xff]  ;;  %v8497_v61 = vcombine.low %v479_v49, %v483_v50  ;;  %v8554_v50 = vcombine.high %v535_v43, %v539_v44 }
 0x1f5   :  { %3331 = vmatprep.subr.bf16.mxu0 %v8442_v62  ;;  %3503 = vmatprep.subr.bf16.mxu1 %v8444_v63  ;;  %v8499_v62 = vcombine.low %v480_v51, %v484_v52  ;;  %v8506_v63 = vcombine.high %v487_v57, %v491_v58  ;;  %v8508_v0 = vcombine.high %v488_v59, %v492_v60  ;;  %v543_v52 = vld [vmem:[#allocation5 + $0xd10] sm:$0xff] }
 0x1f8   :  { %3332 = vmatpush1.bf16.msra.mxu0 %v8441_v4  ;;  %3504 = vmatpush1.bf16.msra.mxu1 %v8443_v5  ;;  %v500_v4 = vld [vmem:[#allocation5 + $0xbb8] sm:$0xff]  ;;  %v8505_v5 = vcombine.low %v487_v57, %v491_v58  ;;  %v8553_v57 = vcombine.low %v535_v43, %v539_v44 }
 0x1f9   :  { %3333 = vmatprep.subr.bf16.mxu0 %v8450_v6  ;;  %3505 = vmatprep.subr.bf16.mxu1 %v8452_v7  ;;  %v8507_v6 = vcombine.low %v488_v59, %v492_v60  ;;  %v8514_v7 = vcombine.high %v495_v1, %v499_v2  ;;  %v8516_v8 = vcombine.high %v496_v3, %v500_v4  ;;  %v551_v60 = vld [vmem:[#allocation5 + $0xd50] sm:$0xff] }
 0x1fc   :  { %3334 = vmatpush1.bf16.msra.mxu0 %v8449_v12  ;;  %3506 = vmatpush1.bf16.msra.mxu1 %v8451_v13  ;;  %v508_v12 = vld [vmem:[#allocation5 + $0xbf8] sm:$0xff]  ;;  %v8513_v13 = vcombine.low %v495_v1, %v499_v2  ;;  %v573_v2 = vld [vmem:[#allocation7] sm:$0xff] }
 0x1fd   :  { %3335 = vmatprep.subr.bf16.mxu0 %v8458_v14  ;;  %3507 = vmatprep.subr.bf16.mxu1 %v8460_v15  ;;  %v8515_v14 = vcombine.low %v496_v3, %v500_v4  ;;  %v8522_v15 = vcombine.high %v503_v9, %v507_v10  ;;  %v8524_v16 = vcombine.high %v504_v11, %v508_v12 }
 0x200   :  { %3336 = vmatpush1.bf16.msra.mxu0 %v8457_v20  ;;  %3508 = vmatpush1.bf16.msra.mxu1 %v8459_v21  ;;  %v516_v20 = vld [vmem:[#allocation5 + $0xc38] sm:$0xff]  ;;  %v8521_v21 = vcombine.low %v503_v9, %v507_v10  ;;  %v559_v9 = vld [vmem:[#allocation5 + $0xd90] sm:$0xff] }
 0x201   :  { %3337 = vmatprep.subr.bf16.mxu0 %v8466_v22  ;;  %3509 = vmatprep.subr.bf16.mxu1 %v8468_v23  ;;  %v8523_v22 = vcombine.low %v504_v11, %v508_v12  ;;  %v8530_v23 = vcombine.high %v511_v17, %v515_v18  ;;  %v8532_v24 = vcombine.high %v512_v19, %v516_v20  ;;  %v563_v10 = vld [vmem:[#allocation5 + $0xdb0] sm:$0xff]  ;;  %v560_v12 = vld [vmem:[#allocation5 + $0xd98] sm:$0xff] }
 0x204   :  { %3338 = vmatpush1.bf16.msra.mxu0 %v8465_v28  ;;  %3510 = vmatpush1.bf16.msra.mxu1 %v8467_v29  ;;  %v524_v28 = vld [vmem:[#allocation5 + $0xc78] sm:$0xff]  ;;  %v8529_v29 = vcombine.low %v511_v17, %v515_v18 }
 0x205   :  { %3339 = vmatprep.subr.bf16.mxu0 %v8474_v31  ;;  %3511 = vmatprep.subr.bf16.mxu1 %v8476_v32  ;;  %v8531_v31 = vcombine.low %v512_v19, %v516_v20  ;;  %v8538_v32 = vcombine.high %v519_v25, %v523_v26  ;;  %v8540_v33 = vcombine.high %v520_v27, %v524_v28 }
 0x206   :  { %v8578_v19 = vcombine.high %v559_v9, %v563_v10 }
 0x208   :  { %3340 = vmatpush1.bf16.msra.mxu0 %v8473_v37  ;;  %3512 = vmatpush1.bf16.msra.mxu1 %v8475_v38  ;;  %v528_v37 = vld [vmem:[#allocation5 + $0xc98] sm:$0xff] }
 0x209   :  { %3341 = vmatprep.subr.bf16.mxu0 %v8482_v39  ;;  %3513 = vmatprep.subr.bf16.mxu1 %v8484_v40  ;;  %v532_v38 = vld [vmem:[#allocation5 + $0xcb8] sm:$0xff]  ;;  %v8537_v39 = vcombine.low %v519_v25, %v523_v26  ;;  %v8539_v40 = vcombine.low %v520_v27, %v524_v28 }
 0x20a   :  { %v8548_v42 = vcombine.high %v528_v37, %v532_v38  ;;  %v8547_v49 = vcombine.low %v528_v37, %v532_v38  ;;  %v568_v27 = vld [vmem:[#allocation5 + $0xdd8] sm:$0xff] }
 0x20b   :  { %v572_v28 = vld [vmem:[#allocation5 + $0xdf8] sm:$0xff] }
 0x20c   :  { %3342 = vmatpush1.bf16.msra.mxu0 %v8481_v45  ;;  %3514 = vmatpush1.bf16.msra.mxu1 %v8483_v46  ;;  %v536_v45 = vld [vmem:[#allocation5 + $0xcd8] sm:$0xff] }
 0x20d   :  { %3343 = vmatprep.subr.bf16.mxu0 %v8490_v47  ;;  %3515 = vmatprep.subr.bf16.mxu1 %v8492_v48  ;;  %v540_v46 = vld [vmem:[#allocation5 + $0xcf8] sm:$0xff]  ;;  %v575_v47 = vlaneseq  ;;  %v8545_v48 = vcombine.low %v527_v34, %v531_v35  ;;  %v8577_v34 = vcombine.low %v559_v9, %v563_v10  ;;  %v3612_v9 = vld [vmem:[#allocation8 + $0x48] sm:$0xff] }
 0x20e   :  { %v8556_v51 = vcombine.high %v536_v45, %v540_v46  ;;  %v8555_v58 = vcombine.low %v536_v45, %v540_v46  ;;  %v8588_v45 = vcombine.high %v568_v27, %v572_v28  ;;  %v3603_v46 = vld [vmem:[#allocation8] sm:$0xff]  ;;  %v3616_v10 = vld [vmem:[#allocation8 + $0x68] sm:$0xff] }
 0x210   :  { %3344 = vmatpush1.bf16.msra.mxu0 %v8489_v53  ;;  %3516 = vmatpush1.bf16.msra.mxu1 %v8491_v54  ;;  %v547_v53 = vld [vmem:[#allocation5 + $0xd30] sm:$0xff]  ;;  %v544_v54 = vld [vmem:[#allocation5 + $0xd18] sm:$0xff] }
 0x211   :  { %3345 = vmatprep.subr.bf16.mxu0 %v8498_v55  ;;  %3517 = vmatprep.subr.bf16.mxu1 %v8500_v56  ;;  %v548_v55 = vld [vmem:[#allocation5 + $0xd38] sm:$0xff]  ;;  %v9812_v56 = vshrl.u32 %v575_v47, 7  ;;  %v8561_v1 = vcombine.low %v543_v52, %v547_v53  ;;  %v3607_v47 = vld [vmem:[#allocation8 + $0x20] sm:$0xff] }
 0x212   :  { %v8564_v59 = vcombine.high %v544_v54, %v548_v55 }
 0x213   :  { %v585_v3 = vsub.s32 2, %v9812_v56  ;;  %v581_v4 = vsub.s32 1, %v9812_v56 }
 0x214   :  { %3346 = vmatpush1.bf16.msra.mxu0 %v8497_v61  ;;  %3518 = vmatpush1.bf16.msra.mxu1 %v8499_v62  ;;  %v555_v61 = vld [vmem:[#allocation5 + $0xd70] sm:$0xff]  ;;  %v577_v62 = vsub.s32 0, %v9812_v56 }
 0x215   :  { %3347 = vmatprep.subr.bf16.mxu0 %v8506_v63  ;;  %3519 = vmatprep.subr.bf16.mxu1 %v8508_v0  ;;  %v552_v63 = vld [vmem:[#allocation5 + $0xd58] sm:$0xff] }
 0x216   :  { %v556_v0 = vld [vmem:[#allocation5 + $0xd78] sm:$0xff]  ;;  %v578_v11 = vrot.slane %v573_v2, %v577_v62 }
 0x217   :  { %v8571_v18 = vcombine.low %v552_v63, %v556_v0 }
 0x218   :  { %3348 = vmatpush1.bf16.msra.mxu0 %v8505_v5  ;;  %3520 = vmatpush1.bf16.msra.mxu1 %v8507_v6  ;;  %v8563_v5 = vcombine.low %v544_v54, %v548_v55  ;;  %v589_v6 = vsub.s32 3, %v9812_v56 }
 0x219   :  { %3349 = vmatprep.subr.bf16.mxu0 %v8514_v7  ;;  %3521 = vmatprep.subr.bf16.mxu1 %v8516_v8  ;;  %v8570_v7 = vcombine.high %v551_v60, %v555_v61  ;;  %v8572_v8 = vcombine.high %v552_v63, %v556_v0 }
 0x21a   :  { %v590_v17 = vrot.slane %v573_v2, %v589_v6 }
 0x21c   :  { %3350 = vmatpush1.bf16.msra.mxu0 %v8513_v13  ;;  %3522 = vmatpush1.bf16.msra.mxu1 %v8515_v14  ;;  %v564_v13 = vld [vmem:[#allocation5 + $0xdb8] sm:$0xff]  ;;  %v586_v14 = vrot.slane %v573_v2, %v585_v3 }
 0x21d   :  { %3351 = vmatprep.subr.bf16.mxu0 %v8522_v15  ;;  %3523 = vmatprep.subr.bf16.mxu1 %v8524_v16  ;;  %v582_v15 = vrot.slane %v573_v2, %v581_v4  ;;  %v8569_v16 = vcombine.low %v551_v60, %v555_v61  ;;  %v8579_v35 = vcombine.low %v560_v12, %v564_v13 }
 0x21e   :  { %v8590_v61 = vcombine.high %v3603_v46, %v3607_v47 }
 0x220   :  { %3352 = vmatpush1.bf16.msra.mxu0 %v8521_v21  ;;  %3524 = vmatpush1.bf16.msra.mxu1 %v8523_v22  ;;  %v8580_v21 = vcombine.high %v560_v12, %v564_v13  ;;  %v567_v22 = vld [vmem:[#allocation5 + $0xdd0] sm:$0xff]  ;;  %v3619_v13 = vld [vmem:[#allocation8 + $0x80] sm:$0xff] }
 0x221   :  { %3364 = vmatprep.subr.bf16.mxu0 %v8530_v23  ;;  %3536 = vmatprep.subr.bf16.mxu1 %v8532_v24  ;;  %v571_v23 = vld [vmem:[#allocation5 + $0xdf0] sm:$0xff] }
 0x222   :  { %v8585_v44 = vcombine.low %v567_v22, %v571_v23 }
 0x223   :  { %3354 = vmatmul.mubr.bf16.vlgmr.msra.gmra.mrb[4].mxu0 %v9478_v36  ;;  %3526 = vmatmul.mubr.bf16.vlgmr.msra.gmra.mrb[4].mxu1 %v9478_v36 }
 0x224   :  { %3365 = vmatpush1.bf16.msra.mxu0 %v8529_v29  ;;  %3537 = vmatpush1.bf16.msra.mxu1 %v8531_v31 }
 0x225   :  { %3366 = vmatprep.subr.bf16.mxu0 %v8538_v32  ;;  %3538 = vmatprep.subr.bf16.mxu1 %v8540_v33 }
 0x226   :  { %3396 = vmatprep.mubr.bf16.mxu0 %v9680_v30  ;;  %3568 = vmatprep.mubr.bf16.mxu1 %v9680_v30  ;;  %v8562_v30 = vcombine.high %v543_v52, %v547_v53  ;;  %v3604_v52 = vld [vmem:[#allocation8 + $0x8] sm:$0xff] }
 0x227   :  { %v3608_v53 = vld [vmem:[#allocation8 + $0x28] sm:$0xff] }
 0x228   :  { %3367 = vmatpush1.bf16.msra.mxu0 %v8537_v39  ;;  %3539 = vmatpush1.bf16.msra.mxu1 %v8539_v40  ;;  %v8586_v40 = vcombine.high %v567_v22, %v571_v23  ;;  %v3627_v23 = vld [vmem:[#allocation8 + $0xc0] sm:$0xff] }
 0x229   :  { %3368 = vmatprep.subr.bf16.mxu0 %v8546_v41  ;;  %3540 = vmatprep.subr.bf16.mxu1 %v8548_v42 }
 0x22c   :  { %3369 = vmatpush1.bf16.msra.mxu0 %v8545_v48  ;;  %3541 = vmatpush1.bf16.msra.mxu1 %v8547_v49 }
 0x22d   :  { %3370 = vmatprep.subr.bf16.mxu0 %v8554_v50  ;;  %3542 = vmatprep.subr.bf16.mxu1 %v8556_v51  ;;  %v8587_v51 = vcombine.low %v568_v27, %v572_v28 }
 0x230   :  { %3371 = vmatpush1.bf16.msra.mxu0 %v8553_v57  ;;  %3543 = vmatpush1.bf16.msra.mxu1 %v8555_v58 }
 0x231   :  { %3372 = vmatprep.subr.bf16.mxu0 %v8562_v30  ;;  %3544 = vmatprep.subr.bf16.mxu1 %v8564_v59 }
 0x234   :  { %3373 = vmatpush1.bf16.msra.mxu0 %v8561_v1  ;;  %3545 = vmatpush1.bf16.msra.mxu1 %v8563_v5  ;;  %v8592_v1 = vcombine.high %v3604_v52, %v3608_v53  ;;  %v3611_v5 = vld [vmem:[#allocation8 + $0x40] sm:$0xff] }
 0x235   :  { %3374 = vmatprep.subr.bf16.mxu0 %v8570_v7  ;;  %3546 = vmatprep.subr.bf16.mxu1 %v8572_v8  ;;  %v3615_v7 = vld [vmem:[#allocation8 + $0x60] sm:$0xff]  ;;  %v8589_v8 = vcombine.low %v3603_v46, %v3607_v47 }
 0x236   :  { %v3054_v20 = vpop.f32.mrb[0].mxu0  ;;  %v3226_v25 = vpop.f32.mrb[0].mxu1  ;;  %v8598_v12 = vcombine.high %v3611_v5, %v3615_v7 }
 0x237   :  { %v9254_v24 = vadd.f32 %v3054_v20, %v578_v11  ;;  %v3056_v26 = vpop.f32.mrb[1].mxu0  ;;  %v9258_v29 = vadd.f32 %v3226_v25, %v586_v14  ;;  %v3228_v32 = vpop.f32.mrb[1].mxu1  ;;  %v8599_v20 = vcombine.low %v3612_v9, %v3616_v10  ;;  %v3628_v25 = vld [vmem:[#allocation8 + $0xc8] sm:$0xff] }
 0x238   :  { %v9255_v31 = vadd.f32 %v3056_v26, %v582_v15  ;;  %v3058_v33 = vpop.f32.mrb[2].mxu0  ;;  %3375 = vmatpush1.bf16.msra.mxu0 %v8569_v16  ;;  %v9259_v36 = vadd.f32 %v3228_v32, %v590_v17  ;;  %v3230_v38 = vpop.f32.mrb[2].mxu1  ;;  %3547 = vmatpush1.bf16.msra.mxu1 %v8571_v18  ;;  %v8600_v16 = vcombine.high %v3612_v9, %v3616_v10  ;;  %v3624_v18 = vld [vmem:[#allocation8 + $0xa8] sm:$0xff]  ;;  %v3635_v32 = vld [vmem:[#allocation8 + $0x100] sm:$0xff] }
 0x239   :  { %v9256_v37 = vadd.f32 %v3058_v33, %v578_v11  ;;  %v3060_v39 = vpop.f32.mrb[3].mxu0  ;;  %3376 = vmatprep.subr.bf16.mxu0 %v8578_v19  ;;  %v9260_v41 = vadd.f32 %v3230_v38, %v586_v14  ;;  %v3232_v43 = vpop.f32.mrb[3].mxu1  ;;  %3548 = vmatprep.subr.bf16.mxu1 %v8580_v21  ;;  %v3579_v48 = vmax.f32 %v9254_v24, 0.0  ;;  %v3581_v54 = vmax.f32 %v9258_v29, 0.0  ;;  %v3623_v14 = vld [vmem:[#allocation8 + $0xa0] sm:$0xff]  ;;  %v3632_v26 = vld [vmem:[#allocation8 + $0xe8] sm:$0xff] }
 0x23a   :  { %v9257_v42 = vadd.f32 %v3060_v39, %v582_v15  ;;  %v9261_v50 = vadd.f32 %v3232_v43, %v590_v17  ;;  %v3580_v55 = vmax.f32 %v9255_v31, 0.0  ;;  %v3582_v30 = vmax.f32 %v9259_v36, 0.0  ;;  %v9479_v15 = vld [vmem:[#allocation2 + $0x18] ss:$28 sps:$4 sm:$0xff]   ;;  %v3620_v17 = vld [vmem:[#allocation8 + $0x88] sm:$0xff]  ;;  %v3631_v24 = vld [vmem:[#allocation8 + $0xe0] sm:$0xff] }
 0x23b   :  { %v3587_v49 = vmax.f32 %v9256_v37, 0.0  ;;  %v3589_v57 = vmax.f32 %v9260_v41, 0.0  ;;  %v8591_v11 = vcombine.low %v3604_v52, %v3608_v53  ;;  %v8597_v19 = vcombine.low %v3611_v5, %v3615_v7  ;;  %v3639_v33 = vld [vmem:[#allocation8 + $0x120] sm:$0xff]  ;;  %v3648_v43 = vld [vmem:[#allocation8 + $0x168] sm:$0xff] }
 0x23c   :  { %v3588_v58 = vmax.f32 %v9257_v42, 0.0  ;;  %3377 = vmatpush1.bf16.msra.mxu0 %v8577_v34  ;;  %v3590_v60 = vmax.f32 %v9261_v50, 0.0  ;;  %3549 = vmatpush1.bf16.msra.mxu1 %v8579_v35  ;;  %v8606_v21 = vcombine.high %v3619_v13, %v3623_v14  ;;  %v8608_v22 = vcombine.high %v3620_v17, %v3624_v18  ;;  %v3636_v34 = vld [vmem:[#allocation8 + $0x108] sm:$0xff]  ;;  %v3647_v41 = vld [vmem:[#allocation8 + $0x160] sm:$0xff] }
 0x23d   :  { %v9826_v59 = vpack.c.bf16 %v3587_v49, %v3579_v48  ;;  %3378 = vmatprep.subr.bf16.mxu0 %v8586_v40  ;;  %v9828_v63 = vpack.c.bf16 %v3589_v57, %v3581_v54  ;;  %3550 = vmatprep.subr.bf16.mxu1 %v8588_v45  ;;  %v8605_v27 = vcombine.low %v3619_v13, %v3623_v14  ;;  %v3640_v35 = vld [vmem:[#allocation8 + $0x128] sm:$0xff]  ;;  %v3643_v40 = vld [vmem:[#allocation8 + $0x140] sm:$0xff] }
 0x23e   :  { %v9830_v0 = vpack.c.bf16 %v3588_v58, %v3580_v55  ;;  %v9832_v2 = vpack.c.bf16 %v3590_v60, %v3582_v30  ;;  %v8607_v28 = vcombine.low %v3620_v17, %v3624_v18  ;;  %v8614_v29 = vcombine.high %v3627_v23, %v3631_v24  ;;  %v3644_v42 = vld [vmem:[#allocation8 + $0x148] sm:$0xff]  ;;  %v3651_v48 = vld [vmem:[#allocation8 + $0x180] sm:$0xff] }
 0x23f   :  { %v8616_v31 = vcombine.high %v3628_v25, %v3632_v26  ;;  %v8613_v36 = vcombine.low %v3627_v23, %v3631_v24  ;;  %v8615_v37 = vcombine.low %v3628_v25, %v3632_v26  ;;  %v8622_v38 = vcombine.high %v3635_v32, %v3639_v33  ;;  %v3655_v49 = vld [vmem:[#allocation8 + $0x1a0] sm:$0xff]  ;;  %v3652_v50 = vld [vmem:[#allocation8 + $0x188] sm:$0xff] }
 0x240   :  { %3379 = vmatpush1.bf16.msra.mxu0 %v8585_v44  ;;  %3551 = vmatpush1.bf16.msra.mxu1 %v8587_v51  ;;  %v8624_v39 = vcombine.high %v3636_v34, %v3640_v35  ;;  %v8621_v44 = vcombine.low %v3635_v32, %v3639_v33  ;;  %v8623_v45 = vcombine.low %v3636_v34, %v3640_v35  ;;  %v3656_v51 = vld [vmem:[#allocation8 + $0x1a8] sm:$0xff]  ;;  %v3659_v57 = vld [vmem:[#allocation8 + $0x1c0] sm:$0xff] }
 0x241   :  { %6717 = vmatprep.subr.bf16.mxu0 %v8590_v61  ;;  %6889 = vmatprep.subr.bf16.mxu1 %v8592_v1  ;;  %v8630_v46 = vcombine.high %v3643_v40, %v3647_v41  ;;  %v8632_v47 = vcombine.high %v3644_v42, %v3648_v43  ;;  %v8629_v52 = vcombine.low %v3643_v40, %v3647_v41  ;;  %v3663_v58 = vld [vmem:[#allocation8 + $0x1e0] sm:$0xff]  ;;  %v3660_v30 = vld [vmem:[#allocation8 + $0x1c8] sm:$0xff] }
 0x242   :  { %v8631_v53 = vcombine.low %v3644_v42, %v3648_v43  ;;  %v8638_v54 = vcombine.high %v3651_v48, %v3655_v49  ;;  %v8640_v55 = vcombine.high %v3652_v50, %v3656_v51  ;;  %v3664_v60 = vld [vmem:[#allocation8 + $0x1e8] sm:$0xff]  ;;  %v8637_v61 = vcombine.low %v3651_v48, %v3655_v49  ;;  %v3671_v9 = vld [vmem:[#allocation8 + $0x220] sm:$0xff] }
 0x243   :  { %3397 = vmatmul.mubr.bf16.vlgmr.msra.gmra.mrb[4].mxu0 %v9479_v15  ;;  %3569 = vmatmul.mubr.bf16.vlgmr.msra.gmra.mrb[4].mxu1 %v9479_v15  ;;  %v8639_v1 = vcombine.low %v3652_v50, %v3656_v51  ;;  %v8646_v5 = vcombine.high %v3659_v57, %v3663_v58  ;;  %v8648_v7 = vcombine.high %v3660_v30, %v3664_v60  ;;  %v3668_v10 = vld [vmem:[#allocation8 + $0x208] sm:$0xff]  ;;  %v3679_v17 = vld [vmem:[#allocation8 + $0x260] sm:$0xff] }
 0x244   :  { %6718 = vmatpush1.bf16.msra.mxu0 %v8589_v8  ;;  %6749 = vmatprep.mubr.bf16.mxu0 %v9830_v0  ;;  %v3667_v8 = vld [vmem:[#allocation8 + $0x200] sm:$0xff]  ;;  %v8647_v13 = vcombine.low %v3660_v30, %v3664_v60  ;;  %v3676_v18 = vld [vmem:[#allocation8 + $0x248] sm:$0xff] }
 0x245   :  { %6890 = vmatpush1.bf16.msra.mxu1 %v8591_v11  ;;  %6921 = vmatprep.mubr.bf16.mxu1 %v9830_v0  ;;  %v3672_v11 = vld [vmem:[#allocation8 + $0x228] sm:$0xff]  ;;  %v8654_v14 = vcombine.high %v3667_v8, %v3671_v9  ;;  %v3683_v24 = vld [vmem:[#allocation8 + $0x280] sm:$0xff] }
 0x246   :  { %6719 = vmatprep.subr.bf16.mxu0 %v8598_v12  ;;  %6891 = vmatprep.subr.bf16.mxu1 %v8600_v16  ;;  %v8645_v12 = vcombine.low %v3659_v57, %v3663_v58  ;;  %v8656_v15 = vcombine.high %v3668_v10, %v3672_v11  ;;  %v3675_v16 = vld [vmem:[#allocation8 + $0x240] sm:$0xff]  ;;  %v3684_v26 = vld [vmem:[#allocation8 + $0x288] sm:$0xff] }
 0x247   :  { %v3687_v25 = vld [vmem:[#allocation8 + $0x2a0] sm:$0xff]  ;;  %v3692_v35 = vld [vmem:[#allocation8 + $0x2c8] sm:$0xff] }
 0x248   :  { %6720 = vmatpush1.bf16.msra.mxu0 %v8597_v19  ;;  %v3680_v19 = vld [vmem:[#allocation8 + $0x268] sm:$0xff]  ;;  %v3691_v33 = vld [vmem:[#allocation8 + $0x2c0] sm:$0xff] }
 0x249   :  { %6892 = vmatpush1.bf16.msra.mxu1 %v8599_v20  ;;  %6721 = vmatprep.subr.bf16.mxu0 %v8606_v21  ;;  %v8653_v20 = vcombine.low %v3667_v8, %v3671_v9  ;;  %v8655_v21 = vcombine.low %v3668_v10, %v3672_v11  ;;  %v8664_v23 = vcombine.high %v3676_v18, %v3680_v19  ;;  %v3695_v34 = vld [vmem:[#allocation8 + $0x2e0] sm:$0xff]  ;;  %v3700_v43 = vld [vmem:[#allocation8 + $0x308] sm:$0xff] }
 0x24a   :  { %6893 = vmatprep.subr.bf16.mxu1 %v8608_v22  ;;  %v8662_v22 = vcombine.high %v3675_v16, %v3679_v17  ;;  %v3699_v41 = vld [vmem:[#allocation8 + $0x300] sm:$0xff]  ;;  %v3708_v51 = vld [vmem:[#allocation8 + $0x348] sm:$0xff] }
 0x24b   :  { %v3703_v42 = vld [vmem:[#allocation8 + $0x320] sm:$0xff]  ;;  %v3716_v60 = vld [vmem:[#allocation8 + $0x388] sm:$0xff] }
 0x24c   :  { %6722 = vmatpush1.bf16.msra.mxu0 %v8605_v27  ;;  %v3688_v27 = vld [vmem:[#allocation8 + $0x2a8] sm:$0xff]  ;;  %v3707_v49 = vld [vmem:[#allocation8 + $0x340] sm:$0xff] }
 0x24d   :  { %6894 = vmatpush1.bf16.msra.mxu1 %v8607_v28  ;;  %6723 = vmatprep.subr.bf16.mxu0 %v8614_v29  ;;  %v8661_v28 = vcombine.low %v3675_v16, %v3679_v17  ;;  %v8663_v29 = vcombine.low %v3676_v18, %v3680_v19  ;;  %v8672_v32 = vcombine.high %v3684_v26, %v3688_v27  ;;  %v3711_v50 = vld [vmem:[#allocation8 + $0x360] sm:$0xff]  ;;  %v3724_v11 = vld [vmem:[#allocation8 + $0x3c8] sm:$0xff] }
 0x24e   :  { %6895 = vmatprep.subr.bf16.mxu1 %v8616_v31  ;;  %v8670_v31 = vcombine.high %v3683_v24, %v3687_v25  ;;  %v3715_v58 = vld [vmem:[#allocation8 + $0x380] sm:$0xff]  ;;  %v3732_v19 = vld [vmem:[#allocation8 + $0x408] sm:$0xff] }
 0x24f   :  { %v3719_v30 = vld [vmem:[#allocation8 + $0x3a0] sm:$0xff] }
 0x250   :  { %6724 = vmatpush1.bf16.msra.mxu0 %v8613_v36  ;;  %v3696_v36 = vld [vmem:[#allocation8 + $0x2e8] sm:$0xff]  ;;  %v3723_v9 = vld [vmem:[#allocation8 + $0x3c0] sm:$0xff] }
 0x251   :  { %6896 = vmatpush1.bf16.msra.mxu1 %v8615_v37  ;;  %6725 = vmatprep.subr.bf16.mxu0 %v8622_v38  ;;  %v8669_v37 = vcombine.low %v3683_v24, %v3687_v25  ;;  %v8671_v38 = vcombine.low %v3684_v26, %v3688_v27  ;;  %v8680_v40 = vcombine.high %v3692_v35, %v3696_v36  ;;  %v3727_v10 = vld [vmem:[#allocation8 + $0x3e0] sm:$0xff] }
 0x252   :  { %6897 = vmatprep.subr.bf16.mxu1 %v8624_v39  ;;  %v8678_v39 = vcombine.high %v3691_v33, %v3695_v34  ;;  %v3731_v17 = vld [vmem:[#allocation8 + $0x400] sm:$0xff] }
 0x253   :  { %v3735_v18 = vld [vmem:[#allocation8 + $0x420] sm:$0xff] }
 0x254   :  { %6726 = vmatpush1.bf16.msra.mxu0 %v8621_v44  ;;  %v3704_v44 = vld [vmem:[#allocation8 + $0x328] sm:$0xff]  ;;  %v3739_v25 = vld [vmem:[#allocation8 + $0x440] sm:$0xff]  ;;  %v8717_v27 = vcombine.low %v3731_v17, %v3735_v18 }
 0x255   :  { %6898 = vmatpush1.bf16.msra.mxu1 %v8623_v45  ;;  %6727 = vmatprep.subr.bf16.mxu0 %v8630_v46  ;;  %v8677_v45 = vcombine.low %v3691_v33, %v3695_v34  ;;  %v8679_v46 = vcombine.low %v3692_v35, %v3696_v36  ;;  %v8688_v48 = vcombine.high %v3700_v43, %v3704_v44  ;;  %v3743_v26 = vld [vmem:[#allocation8 + $0x460] sm:$0xff]  ;;  %v3748_v36 = vld [vmem:[#allocation8 + $0x488] sm:$0xff] }
 0x256   :  { %6899 = vmatprep.subr.bf16.mxu1 %v8632_v47  ;;  %v8686_v47 = vcombine.high %v3699_v41, %v3703_v42  ;;  %v3747_v33 = vld [vmem:[#allocation8 + $0x480] sm:$0xff] }
 0x257   :  { %v3751_v34 = vld [vmem:[#allocation8 + $0x4a0] sm:$0xff] }
 0x258   :  { %6728 = vmatpush1.bf16.msra.mxu0 %v8629_v52  ;;  %v3712_v52 = vld [vmem:[#allocation8 + $0x368] sm:$0xff] }
 0x259   :  { %6900 = vmatpush1.bf16.msra.mxu1 %v8631_v53  ;;  %6729 = vmatprep.subr.bf16.mxu0 %v8638_v54  ;;  %v8685_v53 = vcombine.low %v3699_v41, %v3703_v42  ;;  %v8687_v54 = vcombine.low %v3700_v43, %v3704_v44  ;;  %v8696_v57 = vcombine.high %v3708_v51, %v3712_v52  ;;  %v3755_v42 = vld [vmem:[#allocation8 + $0x4c0] sm:$0xff]  ;;  %v3756_v44 = vld [vmem:[#allocation8 + $0x4c8] sm:$0xff] }
 0x25a   :  { %6901 = vmatprep.subr.bf16.mxu1 %v8640_v55  ;;  %v8694_v55 = vcombine.high %v3707_v49, %v3711_v50  ;;  %v3759_v43 = vld [vmem:[#allocation8 + $0x4e0] sm:$0xff] }
 0x25c   :  { %6730 = vmatpush1.bf16.msra.mxu0 %v8637_v61  ;;  %v3720_v61 = vld [vmem:[#allocation8 + $0x3a8] sm:$0xff] }
 0x25d   :  { %6902 = vmatpush1.bf16.msra.mxu1 %v8639_v1  ;;  %6731 = vmatprep.subr.bf16.mxu0 %v8646_v5  ;;  %v8693_v1 = vcombine.low %v3707_v49, %v3711_v50  ;;  %v8695_v5 = vcombine.low %v3708_v51, %v3712_v52  ;;  %v8704_v8 = vcombine.high %v3716_v60, %v3720_v61  ;;  %v3763_v50 = vld [vmem:[#allocation8 + $0x500] sm:$0xff]  ;;  %v3764_v52 = vld [vmem:[#allocation8 + $0x508] sm:$0xff] }
 0x25e   :  { %6903 = vmatprep.subr.bf16.mxu1 %v8648_v7  ;;  %v8702_v7 = vcombine.high %v3715_v58, %v3719_v30  ;;  %v3767_v51 = vld [vmem:[#allocation8 + $0x520] sm:$0xff] }
 0x260   :  { %6732 = vmatpush1.bf16.msra.mxu0 %v8645_v12  ;;  %v3728_v12 = vld [vmem:[#allocation8 + $0x3e8] sm:$0xff] }
 0x261   :  { %6904 = vmatpush1.bf16.msra.mxu1 %v8647_v13  ;;  %6733 = vmatprep.subr.bf16.mxu0 %v8654_v14  ;;  %v8701_v13 = vcombine.low %v3715_v58, %v3719_v30  ;;  %v8703_v14 = vcombine.low %v3716_v60, %v3720_v61  ;;  %v8712_v16 = vcombine.high %v3724_v11, %v3728_v12  ;;  %v3771_v30 = vld [vmem:[#allocation8 + $0x540] sm:$0xff]  ;;  %v3772_v61 = vld [vmem:[#allocation8 + $0x548] sm:$0xff] }
 0x262   :  { %6905 = vmatprep.subr.bf16.mxu1 %v8656_v15  ;;  %v8710_v15 = vcombine.high %v3723_v9, %v3727_v10  ;;  %v3775_v60 = vld [vmem:[#allocation8 + $0x560] sm:$0xff] }
 0x264   :  { %6734 = vmatpush1.bf16.msra.mxu0 %v8653_v20  ;;  %v3736_v20 = vld [vmem:[#allocation8 + $0x428] sm:$0xff] }
 0x265   :  { %6906 = vmatpush1.bf16.msra.mxu1 %v8655_v21  ;;  %6735 = vmatprep.subr.bf16.mxu0 %v8662_v22  ;;  %v8709_v21 = vcombine.low %v3723_v9, %v3727_v10  ;;  %v8711_v22 = vcombine.low %v3724_v11, %v3728_v12  ;;  %v8720_v24 = vcombine.high %v3732_v19, %v3736_v20  ;;  %v3779_v10 = vld [vmem:[#allocation8 + $0x580] sm:$0xff]  ;;  %v3780_v12 = vld [vmem:[#allocation8 + $0x588] sm:$0xff] }
 0x266   :  { %6907 = vmatprep.subr.bf16.mxu1 %v8664_v23  ;;  %v8718_v23 = vcombine.high %v3731_v17, %v3735_v18  ;;  %v3783_v11 = vld [vmem:[#allocation8 + $0x5a0] sm:$0xff] }
 0x267   :  { %v3787_v18 = vld [vmem:[#allocation8 + $0x5c0] sm:$0xff] }
 0x268   :  { %6736 = vmatpush1.bf16.msra.mxu0 %v8661_v28  ;;  %v3740_v28 = vld [vmem:[#allocation8 + $0x448] sm:$0xff] }
 0x269   :  { %6908 = vmatpush1.bf16.msra.mxu1 %v8663_v29  ;;  %6737 = vmatprep.subr.bf16.mxu0 %v8670_v31  ;;  %v3744_v29 = vld [vmem:[#allocation8 + $0x468] sm:$0xff]  ;;  %v8719_v31 = vcombine.low %v3732_v19, %v3736_v20  ;;  %v3791_v19 = vld [vmem:[#allocation8 + $0x5e0] sm:$0xff] }
 0x26a   :  { %6909 = vmatprep.subr.bf16.mxu1 %v8672_v32  ;;  %v8726_v32 = vcombine.high %v3739_v25, %v3743_v26  ;;  %v8728_v35 = vcombine.high %v3740_v28, %v3744_v29  ;;  %v3788_v20 = vld [vmem:[#allocation8 + $0x5c8] sm:$0xff] }
 0x26c   :  { %6738 = vmatpush1.bf16.msra.mxu0 %v8669_v37  ;;  %v3752_v37 = vld [vmem:[#allocation8 + $0x4a8] sm:$0xff] }
 0x26d   :  { %6910 = vmatpush1.bf16.msra.mxu1 %v8671_v38  ;;  %6739 = vmatprep.subr.bf16.mxu0 %v8678_v39  ;;  %v8725_v38 = vcombine.low %v3739_v25, %v3743_v26  ;;  %v8727_v39 = vcombine.low %v3740_v28, %v3744_v29  ;;  %v8736_v41 = vcombine.high %v3748_v36, %v3752_v37  ;;  %v3795_v26 = vld [vmem:[#allocation8 + $0x600] sm:$0xff]  ;;  %v3796_v28 = vld [vmem:[#allocation8 + $0x608] sm:$0xff] }
 0x26e   :  { %6911 = vmatprep.subr.bf16.mxu1 %v8680_v40  ;;  %v8734_v40 = vcombine.high %v3747_v33, %v3751_v34  ;;  %v3800_v29 = vld [vmem:[#allocation8 + $0x628] sm:$0xff] }
 0x270   :  { %6740 = vmatpush1.bf16.msra.mxu0 %v8677_v45  ;;  %v3760_v45 = vld [vmem:[#allocation8 + $0x4e8] sm:$0xff] }
 0x271   :  { %6912 = vmatpush1.bf16.msra.mxu1 %v8679_v46  ;;  %6741 = vmatprep.subr.bf16.mxu0 %v8686_v47  ;;  %v8733_v46 = vcombine.low %v3747_v33, %v3751_v34  ;;  %v8735_v47 = vcombine.low %v3748_v36, %v3752_v37  ;;  %v8744_v49 = vcombine.high %v3756_v44, %v3760_v45  ;;  %v3807_v36 = vld [vmem:[#allocation8 + $0x660] sm:$0xff]  ;;  %v3804_v37 = vld [vmem:[#allocation8 + $0x648] sm:$0xff] }
 0x272   :  { %6913 = vmatprep.subr.bf16.mxu1 %v8688_v48  ;;  %v8742_v48 = vcombine.high %v3755_v42, %v3759_v43  ;;  %v8784_v34 = vcombine.high %v3796_v28, %v3800_v29 }
 0x274   :  { %6742 = vmatpush1.bf16.msra.mxu0 %v8685_v53  ;;  %v3768_v53 = vld [vmem:[#allocation8 + $0x528] sm:$0xff] }
 0x275   :  { %6914 = vmatpush1.bf16.msra.mxu1 %v8687_v54  ;;  %6743 = vmatprep.subr.bf16.mxu0 %v8694_v55  ;;  %v8741_v54 = vcombine.low %v3755_v42, %v3759_v43  ;;  %v8743_v55 = vcombine.low %v3756_v44, %v3760_v45  ;;  %v8752_v58 = vcombine.high %v3764_v52, %v3768_v53  ;;  %v3811_v43 = vld [vmem:[#allocation8 + $0x680] sm:$0xff]  ;;  %v3812_v45 = vld [vmem:[#allocation8 + $0x688] sm:$0xff] }
 0x276   :  { %6915 = vmatprep.subr.bf16.mxu1 %v8696_v57  ;;  %v8750_v57 = vcombine.high %v3763_v50, %v3767_v51  ;;  %v3815_v44 = vld [vmem:[#allocation8 + $0x6a0] sm:$0xff] }
 0x278   :  { %6744 = vmatpush1.bf16.msra.mxu0 %v8693_v1  ;;  %v3776_v1 = vld [vmem:[#allocation8 + $0x568] sm:$0xff] }
 0x279   :  { %6916 = vmatpush1.bf16.msra.mxu1 %v8695_v5  ;;  %6745 = vmatprep.subr.bf16.mxu0 %v8702_v7  ;;  %v8749_v5 = vcombine.low %v3763_v50, %v3767_v51  ;;  %v8751_v7 = vcombine.low %v3764_v52, %v3768_v53  ;;  %v8760_v9 = vcombine.high %v3772_v61, %v3776_v1  ;;  %v3819_v51 = vld [vmem:[#allocation8 + $0x6c0] sm:$0xff]  ;;  %v3820_v53 = vld [vmem:[#allocation8 + $0x6c8] sm:$0xff] }
 0x27a   :  { %6917 = vmatprep.subr.bf16.mxu1 %v8704_v8  ;;  %v8758_v8 = vcombine.high %v3771_v30, %v3775_v60  ;;  %v3823_v52 = vld [vmem:[#allocation8 + $0x6e0] sm:$0xff] }
 0x27c   :  { %6746 = vmatpush1.bf16.msra.mxu0 %v8701_v13  ;;  %v3784_v13 = vld [vmem:[#allocation8 + $0x5a8] sm:$0xff] }
 0x27d   :  { %6918 = vmatpush1.bf16.msra.mxu1 %v8703_v14  ;;  %6747 = vmatprep.subr.bf16.mxu0 %v8710_v15  ;;  %v8757_v14 = vcombine.low %v3771_v30, %v3775_v60  ;;  %v8759_v15 = vcombine.low %v3772_v61, %v3776_v1  ;;  %v8768_v17 = vcombine.high %v3780_v12, %v3784_v13  ;;  %v3827_v60 = vld [vmem:[#allocation8 + $0x700] sm:$0xff]  ;;  %v3828_v1 = vld [vmem:[#allocation8 + $0x708] sm:$0xff] }
 0x27e   :  { %6919 = vmatprep.subr.bf16.mxu1 %v8712_v16  ;;  %v8766_v16 = vcombine.high %v3779_v10, %v3783_v11  ;;  %v3831_v61 = vld [vmem:[#allocation8 + $0x720] sm:$0xff] }
 0x280   :  { %6748 = vmatpush1.bf16.msra.mxu0 %v8709_v21  ;;  %v3792_v21 = vld [vmem:[#allocation8 + $0x5e8] sm:$0xff] }
 0x281   :  { %6920 = vmatpush1.bf16.msra.mxu1 %v8711_v22  ;;  %6760 = vmatprep.subr.bf16.mxu0 %v8718_v23  ;;  %v8765_v22 = vcombine.low %v3779_v10, %v3783_v11  ;;  %v8767_v23 = vcombine.low %v3780_v12, %v3784_v13  ;;  %v8776_v25 = vcombine.high %v3788_v20, %v3792_v21  ;;  %v3835_v11 = vld [vmem:[#allocation8 + $0x740] sm:$0xff]  ;;  %v3836_v13 = vld [vmem:[#allocation8 + $0x748] sm:$0xff] }
 0x282   :  { %6932 = vmatprep.subr.bf16.mxu1 %v8720_v24  ;;  %v8774_v24 = vcombine.high %v3787_v18, %v3791_v19  ;;  %v3839_v12 = vld [vmem:[#allocation8 + $0x760] sm:$0xff] }
 0x283   :  { %6750 = vmatmul.mubr.bf16.vlgmr.msra.gmra.mrb[8].mxu0 %v9826_v59 }
 0x284   :  { %6922 = vmatmul.mubr.bf16.vlgmr.msra.gmra.mrb[8].mxu1 %v9826_v59  ;;  %6761 = vmatpush1.bf16.msra.mxu0 %v8717_v27  ;;  %v3799_v27 = vld [vmem:[#allocation8 + $0x620] sm:$0xff] }
 0x285   :  { %6792 = vmatprep.mubr.bf16.mxu0 %v9832_v2  ;;  %6933 = vmatpush1.bf16.msra.mxu1 %v8719_v31  ;;  %v8773_v31 = vcombine.low %v3787_v18, %v3791_v19  ;;  %v8782_v33 = vcombine.high %v3795_v26, %v3799_v27  ;;  %v3843_v19 = vld [vmem:[#allocation8 + $0x780] sm:$0xff] }
 0x286   :  { %6964 = vmatprep.mubr.bf16.mxu1 %v9832_v2  ;;  %6762 = vmatprep.subr.bf16.mxu0 %v8726_v32  ;;  %v8775_v32 = vcombine.low %v3788_v20, %v3792_v21  ;;  %v3847_v20 = vld [vmem:[#allocation8 + $0x7a0] sm:$0xff]  ;;  %v3844_v21 = vld [vmem:[#allocation8 + $0x788] sm:$0xff] }
 0x287   :  { %6934 = vmatprep.subr.bf16.mxu1 %v8728_v35  ;;  %v3803_v35 = vld [vmem:[#allocation8 + $0x640] sm:$0xff] }
 0x288   :  { %6763 = vmatpush1.bf16.msra.mxu0 %v8725_v38  ;;  %v3808_v38 = vld [vmem:[#allocation8 + $0x668] sm:$0xff] }
 0x289   :  { %6935 = vmatpush1.bf16.msra.mxu1 %v8727_v39  ;;  %6764 = vmatprep.subr.bf16.mxu0 %v8734_v40  ;;  %v8781_v39 = vcombine.low %v3795_v26, %v3799_v27  ;;  %v8783_v40 = vcombine.low %v3796_v28, %v3800_v29  ;;  %v8792_v42 = vcombine.high %v3804_v37, %v3808_v38  ;;  %v3851_v27 = vld [vmem:[#allocation8 + $0x7c0] sm:$0xff]  ;;  %v3852_v29 = vld [vmem:[#allocation8 + $0x7c8] sm:$0xff] }
 0x28a   :  { %6936 = vmatprep.subr.bf16.mxu1 %v8736_v41  ;;  %v8790_v41 = vcombine.high %v3803_v35, %v3807_v36  ;;  %v3855_v28 = vld [vmem:[#allocation8 + $0x7e0] sm:$0xff] }
 0x28c   :  { %6765 = vmatpush1.bf16.msra.mxu0 %v8733_v46  ;;  %v3816_v46 = vld [vmem:[#allocation8 + $0x6a8] sm:$0xff] }
 0x28d   :  { %6937 = vmatpush1.bf16.msra.mxu1 %v8735_v47  ;;  %6766 = vmatprep.subr.bf16.mxu0 %v8742_v48  ;;  %v8789_v47 = vcombine.low %v3803_v35, %v3807_v36  ;;  %v8791_v48 = vcombine.low %v3804_v37, %v3808_v38  ;;  %v8800_v50 = vcombine.high %v3812_v45, %v3816_v46  ;;  %v3859_v36 = vld [vmem:[#allocation8 + $0x800] sm:$0xff]  ;;  %v3860_v38 = vld [vmem:[#allocation8 + $0x808] sm:$0xff] }
 0x28e   :  { %6938 = vmatprep.subr.bf16.mxu1 %v8744_v49  ;;  %v8798_v49 = vcombine.high %v3811_v43, %v3815_v44  ;;  %v3863_v37 = vld [vmem:[#allocation8 + $0x820] sm:$0xff] }
 0x290   :  { %6767 = vmatpush1.bf16.msra.mxu0 %v8741_v54  ;;  %v3824_v54 = vld [vmem:[#allocation8 + $0x6e8] sm:$0xff] }
 0x291   :  { %6939 = vmatpush1.bf16.msra.mxu1 %v8743_v55  ;;  %6768 = vmatprep.subr.bf16.mxu0 %v8750_v57  ;;  %v8797_v55 = vcombine.low %v3811_v43, %v3815_v44  ;;  %v8799_v57 = vcombine.low %v3812_v45, %v3816_v46  ;;  %v8808_v30 = vcombine.high %v3820_v53, %v3824_v54  ;;  %v3867_v44 = vld [vmem:[#allocation8 + $0x840] sm:$0xff]  ;;  %v3868_v46 = vld [vmem:[#allocation8 + $0x848] sm:$0xff] }
 0x292   :  { %6940 = vmatprep.subr.bf16.mxu1 %v8752_v58  ;;  %v8806_v58 = vcombine.high %v3819_v51, %v3823_v52  ;;  %v3871_v45 = vld [vmem:[#allocation8 + $0x860] sm:$0xff] }
 0x294   :  { %6769 = vmatpush1.bf16.msra.mxu0 %v8749_v5  ;;  %v3832_v5 = vld [vmem:[#allocation8 + $0x728] sm:$0xff] }
 0x295   :  { %6941 = vmatpush1.bf16.msra.mxu1 %v8751_v7  ;;  %6770 = vmatprep.subr.bf16.mxu0 %v8758_v8  ;;  %v8805_v7 = vcombine.low %v3819_v51, %v3823_v52  ;;  %v8807_v8 = vcombine.low %v3820_v53, %v3824_v54  ;;  %v8816_v10 = vcombine.high %v3828_v1, %v3832_v5  ;;  %v3875_v52 = vld [vmem:[#allocation8 + $0x880] sm:$0xff]  ;;  %v3876_v54 = vld [vmem:[#allocation8 + $0x888] sm:$0xff] }
 0x296   :  { %6942 = vmatprep.subr.bf16.mxu1 %v8760_v9  ;;  %v8814_v9 = vcombine.high %v3827_v60, %v3831_v61  ;;  %v3879_v53 = vld [vmem:[#allocation8 + $0x8a0] sm:$0xff] }
 0x298   :  { %6771 = vmatpush1.bf16.msra.mxu0 %v8757_v14  ;;  %v3840_v14 = vld [vmem:[#allocation8 + $0x768] sm:$0xff] }
 0x299   :  { %6943 = vmatpush1.bf16.msra.mxu1 %v8759_v15  ;;  %6772 = vmatprep.subr.bf16.mxu0 %v8766_v16  ;;  %v8813_v15 = vcombine.low %v3827_v60, %v3831_v61  ;;  %v8815_v16 = vcombine.low %v3828_v1, %v3832_v5  ;;  %v8824_v18 = vcombine.high %v3836_v13, %v3840_v14  ;;  %v3883_v61 = vld [vmem:[#allocation8 + $0x8c0] sm:$0xff]  ;;  %v3884_v5 = vld [vmem:[#allocation8 + $0x8c8] sm:$0xff] }
 0x29a   :  { %6944 = vmatprep.subr.bf16.mxu1 %v8768_v17  ;;  %v8822_v17 = vcombine.high %v3835_v11, %v3839_v12  ;;  %v3887_v1 = vld [vmem:[#allocation8 + $0x8e0] sm:$0xff] }
 0x29c   :  { %6773 = vmatpush1.bf16.msra.mxu0 %v8765_v22  ;;  %v3848_v22 = vld [vmem:[#allocation8 + $0x7a8] sm:$0xff] }
 0x29d   :  { %6945 = vmatpush1.bf16.msra.mxu1 %v8767_v23  ;;  %6774 = vmatprep.subr.bf16.mxu0 %v8774_v24  ;;  %v8821_v23 = vcombine.low %v3835_v11, %v3839_v12  ;;  %v8823_v24 = vcombine.low %v3836_v13, %v3840_v14  ;;  %v8832_v26 = vcombine.high %v3844_v21, %v3848_v22  ;;  %v3891_v12 = vld [vmem:[#allocation8 + $0x900] sm:$0xff]  ;;  %v3892_v14 = vld [vmem:[#allocation8 + $0x908] sm:$0xff] }
 0x29e   :  { %6946 = vmatprep.subr.bf16.mxu1 %v8776_v25  ;;  %v8830_v25 = vcombine.high %v3843_v19, %v3847_v20  ;;  %v3895_v13 = vld [vmem:[#allocation8 + $0x920] sm:$0xff] }
 0x2a0   :  { %6775 = vmatpush1.bf16.msra.mxu0 %v8773_v31  ;;  %v3856_v31 = vld [vmem:[#allocation8 + $0x7e8] sm:$0xff] }
 0x2a1   :  { %6947 = vmatpush1.bf16.msra.mxu1 %v8775_v32  ;;  %6776 = vmatprep.subr.bf16.mxu0 %v8782_v33  ;;  %v8829_v32 = vcombine.low %v3843_v19, %v3847_v20  ;;  %v8831_v33 = vcombine.low %v3844_v21, %v3848_v22  ;;  %v8840_v35 = vcombine.high %v3852_v29, %v3856_v31  ;;  %v3899_v20 = vld [vmem:[#allocation8 + $0x940] sm:$0xff]  ;;  %v3900_v22 = vld [vmem:[#allocation8 + $0x948] sm:$0xff] }
 0x2a2   :  { %6948 = vmatprep.subr.bf16.mxu1 %v8784_v34  ;;  %v8838_v34 = vcombine.high %v3851_v27, %v3855_v28  ;;  %v3903_v21 = vld [vmem:[#allocation8 + $0x960] sm:$0xff] }
 0x2a4   :  { %6777 = vmatpush1.bf16.msra.mxu0 %v8781_v39  ;;  %v3864_v39 = vld [vmem:[#allocation8 + $0x828] sm:$0xff] }
 0x2a5   :  { %6949 = vmatpush1.bf16.msra.mxu1 %v8783_v40  ;;  %6778 = vmatprep.subr.bf16.mxu0 %v8790_v41  ;;  %v8837_v40 = vcombine.low %v3851_v27, %v3855_v28  ;;  %v8839_v41 = vcombine.low %v3852_v29, %v3856_v31  ;;  %v8848_v43 = vcombine.high %v3860_v38, %v3864_v39  ;;  %v3907_v28 = vld [vmem:[#allocation8 + $0x980] sm:$0xff]  ;;  %v3908_v31 = vld [vmem:[#allocation8 + $0x988] sm:$0xff] }
 0x2a6   :  { %6950 = vmatprep.subr.bf16.mxu1 %v8792_v42  ;;  %v8846_v42 = vcombine.high %v3859_v36, %v3863_v37  ;;  %v3911_v29 = vld [vmem:[#allocation8 + $0x9a0] sm:$0xff] }
 0x2a8   :  { %6779 = vmatpush1.bf16.msra.mxu0 %v8789_v47  ;;  %v3872_v47 = vld [vmem:[#allocation8 + $0x868] sm:$0xff] }
 0x2a9   :  { %6951 = vmatpush1.bf16.msra.mxu1 %v8791_v48  ;;  %6780 = vmatprep.subr.bf16.mxu0 %v8798_v49  ;;  %v8845_v48 = vcombine.low %v3859_v36, %v3863_v37  ;;  %v8847_v49 = vcombine.low %v3860_v38, %v3864_v39  ;;  %v8856_v51 = vcombine.high %v3868_v46, %v3872_v47  ;;  %v3915_v37 = vld [vmem:[#allocation8 + $0x9c0] sm:$0xff]  ;;  %v3916_v39 = vld [vmem:[#allocation8 + $0x9c8] sm:$0xff] }
 0x2aa   :  { %6952 = vmatprep.subr.bf16.mxu1 %v8800_v50  ;;  %v8854_v50 = vcombine.high %v3867_v44, %v3871_v45  ;;  %v3919_v38 = vld [vmem:[#allocation8 + $0x9e0] sm:$0xff] }
 0x2ac   :  { %6781 = vmatpush1.bf16.msra.mxu0 %v8797_v55  ;;  %v3880_v55 = vld [vmem:[#allocation8 + $0x8a8] sm:$0xff] }
 0x2ad   :  { %6953 = vmatpush1.bf16.msra.mxu1 %v8799_v57  ;;  %6782 = vmatprep.subr.bf16.mxu0 %v8806_v58  ;;  %v8853_v57 = vcombine.low %v3867_v44, %v3871_v45  ;;  %v8855_v58 = vcombine.low %v3868_v46, %v3872_v47  ;;  %v8864_v60 = vcombine.high %v3876_v54, %v3880_v55  ;;  %v3923_v45 = vld [vmem:[#allocation8 + $0xa00] sm:$0xff]  ;;  %v3924_v47 = vld [vmem:[#allocation8 + $0xa08] sm:$0xff] }
 0x2ae   :  { %6954 = vmatprep.subr.bf16.mxu1 %v8808_v30  ;;  %v8862_v30 = vcombine.high %v3875_v52, %v3879_v53  ;;  %v3927_v46 = vld [vmem:[#allocation8 + $0xa20] sm:$0xff] }
 0x2b0   :  { %6783 = vmatpush1.bf16.msra.mxu0 %v8805_v7  ;;  %v3888_v7 = vld [vmem:[#allocation8 + $0x8e8] sm:$0xff] }
 0x2b1   :  { %6955 = vmatpush1.bf16.msra.mxu1 %v8807_v8  ;;  %6784 = vmatprep.subr.bf16.mxu0 %v8814_v9  ;;  %v8861_v8 = vcombine.low %v3875_v52, %v3879_v53  ;;  %v8863_v9 = vcombine.low %v3876_v54, %v3880_v55  ;;  %v8872_v11 = vcombine.high %v3884_v5, %v3888_v7  ;;  %v3931_v53 = vld [vmem:[#allocation8 + $0xa40] sm:$0xff]  ;;  %v3932_v55 = vld [vmem:[#allocation8 + $0xa48] sm:$0xff] }
 0x2b2   :  { %6956 = vmatprep.subr.bf16.mxu1 %v8816_v10  ;;  %v8870_v10 = vcombine.high %v3883_v61, %v3887_v1  ;;  %v3935_v54 = vld [vmem:[#allocation8 + $0xa60] sm:$0xff] }
 0x2b4   :  { %6785 = vmatpush1.bf16.msra.mxu0 %v8813_v15  ;;  %v3896_v15 = vld [vmem:[#allocation8 + $0x928] sm:$0xff] }
 0x2b5   :  { %6957 = vmatpush1.bf16.msra.mxu1 %v8815_v16  ;;  %6786 = vmatprep.subr.bf16.mxu0 %v8822_v17  ;;  %v8869_v16 = vcombine.low %v3883_v61, %v3887_v1  ;;  %v8871_v17 = vcombine.low %v3884_v5, %v3888_v7  ;;  %v8880_v19 = vcombine.high %v3892_v14, %v3896_v15  ;;  %v3939_v1 = vld [vmem:[#allocation8 + $0xa80] sm:$0xff]  ;;  %v3940_v7 = vld [vmem:[#allocation8 + $0xa88] sm:$0xff] }
 0x2b6   :  { %6958 = vmatprep.subr.bf16.mxu1 %v8824_v18  ;;  %v8878_v18 = vcombine.high %v3891_v12, %v3895_v13  ;;  %v3943_v5 = vld [vmem:[#allocation8 + $0xaa0] sm:$0xff] }
 0x2b8   :  { %6787 = vmatpush1.bf16.msra.mxu0 %v8821_v23  ;;  %v3904_v23 = vld [vmem:[#allocation8 + $0x968] sm:$0xff] }
 0x2b9   :  { %6959 = vmatpush1.bf16.msra.mxu1 %v8823_v24  ;;  %6788 = vmatprep.subr.bf16.mxu0 %v8830_v25  ;;  %v8877_v24 = vcombine.low %v3891_v12, %v3895_v13  ;;  %v8879_v25 = vcombine.low %v3892_v14, %v3896_v15  ;;  %v8888_v27 = vcombine.high %v3900_v22, %v3904_v23  ;;  %v3947_v13 = vld [vmem:[#allocation8 + $0xac0] sm:$0xff]  ;;  %v3948_v15 = vld [vmem:[#allocation8 + $0xac8] sm:$0xff] }
 0x2ba   :  { %6960 = vmatprep.subr.bf16.mxu1 %v8832_v26  ;;  %v8886_v26 = vcombine.high %v3899_v20, %v3903_v21  ;;  %v3951_v14 = vld [vmem:[#allocation8 + $0xae0] sm:$0xff] }
 0x2bc   :  { %6789 = vmatpush1.bf16.msra.mxu0 %v8829_v32  ;;  %v3912_v32 = vld [vmem:[#allocation8 + $0x9a8] sm:$0xff] }
 0x2bd   :  { %6961 = vmatpush1.bf16.msra.mxu1 %v8831_v33  ;;  %6790 = vmatprep.subr.bf16.mxu0 %v8838_v34  ;;  %v8885_v33 = vcombine.low %v3899_v20, %v3903_v21  ;;  %v8887_v34 = vcombine.low %v3900_v22, %v3904_v23  ;;  %v8896_v36 = vcombine.high %v3908_v31, %v3912_v32  ;;  %v3955_v21 = vld [vmem:[#allocation8 + $0xb00] sm:$0xff]  ;;  %v3956_v23 = vld [vmem:[#allocation8 + $0xb08] sm:$0xff] }
 0x2be   :  { %6962 = vmatprep.subr.bf16.mxu1 %v8840_v35  ;;  %v8894_v35 = vcombine.high %v3907_v28, %v3911_v29  ;;  %v3959_v22 = vld [vmem:[#allocation8 + $0xb20] sm:$0xff] }
 0x2c0   :  { %6791 = vmatpush1.bf16.msra.mxu0 %v8837_v40  ;;  %v3920_v40 = vld [vmem:[#allocation8 + $0x9e8] sm:$0xff] }
 0x2c1   :  { %6963 = vmatpush1.bf16.msra.mxu1 %v8839_v41  ;;  %6803 = vmatprep.subr.bf16.mxu0 %v8846_v42  ;;  %v8893_v41 = vcombine.low %v3907_v28, %v3911_v29  ;;  %v8895_v42 = vcombine.low %v3908_v31, %v3912_v32  ;;  %v8904_v44 = vcombine.high %v3916_v39, %v3920_v40  ;;  %v3963_v29 = vld [vmem:[#allocation8 + $0xb40] sm:$0xff]  ;;  %v3964_v32 = vld [vmem:[#allocation8 + $0xb48] sm:$0xff] }
 0x2c2   :  { %6975 = vmatprep.subr.bf16.mxu1 %v8848_v43  ;;  %v8902_v43 = vcombine.high %v3915_v37, %v3919_v38  ;;  %v3967_v31 = vld [vmem:[#allocation8 + $0xb60] sm:$0xff] }
 0x2c3   :  { %6793 = vmatmul.mubr.bf16.vlgmr.msra.gmra.mrb[8].mxu0 %v9828_v63 }
 0x2c4   :  { %6965 = vmatmul.mubr.bf16.vlgmr.msra.gmra.mrb[8].mxu1 %v9828_v63  ;;  %6804 = vmatpush1.bf16.msra.mxu0 %v8845_v48  ;;  %v3928_v48 = vld [vmem:[#allocation8 + $0xa28] sm:$0xff] }
 0x2c5   :  { %6976 = vmatpush1.bf16.msra.mxu1 %v8847_v49  ;;  %6805 = vmatprep.subr.bf16.mxu0 %v8854_v50  ;;  %v8901_v49 = vcombine.low %v3915_v37, %v3919_v38  ;;  %v8903_v50 = vcombine.low %v3916_v39, %v3920_v40  ;;  %v8912_v52 = vcombine.high %v3924_v47, %v3928_v48  ;;  %v3971_v38 = vld [vmem:[#allocation8 + $0xb80] sm:$0xff]  ;;  %v3972_v40 = vld [vmem:[#allocation8 + $0xb88] sm:$0xff] }
 0x2c6   :  { %6977 = vmatprep.subr.bf16.mxu1 %v8856_v51  ;;  %v8910_v51 = vcombine.high %v3923_v45, %v3927_v46  ;;  %v3975_v39 = vld [vmem:[#allocation8 + $0xba0] sm:$0xff] }
 0x2c8   :  { %6806 = vmatpush1.bf16.msra.mxu0 %v8853_v57  ;;  %v3936_v57 = vld [vmem:[#allocation8 + $0xa68] sm:$0xff] }
 0x2c9   :  { %6978 = vmatpush1.bf16.msra.mxu1 %v8855_v58  ;;  %6807 = vmatprep.subr.bf16.mxu0 %v8862_v30  ;;  %v8909_v58 = vcombine.low %v3923_v45, %v3927_v46  ;;  %v8911_v30 = vcombine.low %v3924_v47, %v3928_v48  ;;  %v8920_v61 = vcombine.high %v3932_v55, %v3936_v57  ;;  %v3979_v46 = vld [vmem:[#allocation8 + $0xbc0] sm:$0xff]  ;;  %v3980_v48 = vld [vmem:[#allocation8 + $0xbc8] sm:$0xff] }
 0x2ca   :  { %6979 = vmatprep.subr.bf16.mxu1 %v8864_v60  ;;  %v8918_v60 = vcombine.high %v3931_v53, %v3935_v54  ;;  %v3983_v47 = vld [vmem:[#allocation8 + $0xbe0] sm:$0xff] }
 0x2cc   :  { %6808 = vmatpush1.bf16.msra.mxu0 %v8861_v8  ;;  %v3944_v8 = vld [vmem:[#allocation8 + $0xaa8] sm:$0xff] }
 0x2cd   :  { %6980 = vmatpush1.bf16.msra.mxu1 %v8863_v9  ;;  %6809 = vmatprep.subr.bf16.mxu0 %v8870_v10  ;;  %v8917_v9 = vcombine.low %v3931_v53, %v3935_v54  ;;  %v8919_v10 = vcombine.low %v3932_v55, %v3936_v57  ;;  %v8928_v12 = vcombine.high %v3940_v7, %v3944_v8  ;;  %v9842_v54 = vld [vmem:[#allocation8 + $0xc00] sm:$0xff]  ;;  %v9846_v57 = vld [vmem:[#allocation8 + $0xc08] sm:$0xff] }
 0x2ce   :  { %6981 = vmatprep.subr.bf16.mxu1 %v8872_v11  ;;  %v8926_v11 = vcombine.high %v3939_v1, %v3943_v5  ;;  %v9844_v55 = vld [vmem:[#allocation8 + $0xc20] sm:$0xff] }
 0x2d0   :  { %6810 = vmatpush1.bf16.msra.mxu0 %v8869_v16  ;;  %v3952_v16 = vld [vmem:[#allocation8 + $0xae8] sm:$0xff] }
 0x2d1   :  { %6982 = vmatpush1.bf16.msra.mxu1 %v8871_v17  ;;  %6811 = vmatprep.subr.bf16.mxu0 %v8878_v18  ;;  %v8925_v17 = vcombine.low %v3939_v1, %v3943_v5  ;;  %v8927_v18 = vcombine.low %v3940_v7, %v3944_v8  ;;  %v8936_v20 = vcombine.high %v3948_v15, %v3952_v16  ;;  %v593_v5 = vsub.s32 4, %v9812_v56 }
 0x2d2   :  { %6983 = vmatprep.subr.bf16.mxu1 %v8880_v19  ;;  %v8934_v19 = vcombine.high %v3947_v13, %v3951_v14  ;;  %v601_v7 = vsub.s32 6, %v9812_v56  ;;  %v597_v8 = vsub.s32 5, %v9812_v56 }
 0x2d4   :  { %6812 = vmatpush1.bf16.msra.mxu0 %v8877_v24  ;;  %v3960_v24 = vld [vmem:[#allocation8 + $0xb28] sm:$0xff] }
 0x2d5   :  { %6984 = vmatpush1.bf16.msra.mxu1 %v8879_v25  ;;  %6813 = vmatprep.subr.bf16.mxu0 %v8886_v26  ;;  %v8933_v25 = vcombine.low %v3947_v13, %v3951_v14  ;;  %v8935_v26 = vcombine.low %v3948_v15, %v3952_v16  ;;  %v8944_v28 = vcombine.high %v3956_v23, %v3960_v24 }
 0x2d6   :  { %6985 = vmatprep.subr.bf16.mxu1 %v8888_v27  ;;  %v8942_v27 = vcombine.high %v3955_v21, %v3959_v22 }
 0x2d8   :  { %6814 = vmatpush1.bf16.msra.mxu0 %v8885_v33  ;;  %v3968_v33 = vld [vmem:[#allocation8 + $0xb68] sm:$0xff] }
 0x2d9   :  { %6986 = vmatpush1.bf16.msra.mxu1 %v8887_v34  ;;  %6815 = vmatprep.subr.bf16.mxu0 %v8894_v35  ;;  %v8941_v34 = vcombine.low %v3955_v21, %v3959_v22  ;;  %v8943_v35 = vcombine.low %v3956_v23, %v3960_v24  ;;  %v8952_v37 = vcombine.high %v3964_v32, %v3968_v33 }
 0x2da   :  { %6987 = vmatprep.subr.bf16.mxu1 %v8896_v36  ;;  %v8950_v36 = vcombine.high %v3963_v29, %v3967_v31 }
 0x2dc   :  { %6816 = vmatpush1.bf16.msra.mxu0 %v8893_v41  ;;  %v3976_v41 = vld [vmem:[#allocation8 + $0xba8] sm:$0xff] }
 0x2dd   :  { %6988 = vmatpush1.bf16.msra.mxu1 %v8895_v42  ;;  %6817 = vmatprep.subr.bf16.mxu0 %v8902_v43  ;;  %v8949_v42 = vcombine.low %v3963_v29, %v3967_v31  ;;  %v8951_v43 = vcombine.low %v3964_v32, %v3968_v33  ;;  %v8960_v45 = vcombine.high %v3972_v40, %v3976_v41 }
 0x2de   :  { %6989 = vmatprep.subr.bf16.mxu1 %v8904_v44  ;;  %v8958_v44 = vcombine.high %v3971_v38, %v3975_v39 }
 0x2e0   :  { %6818 = vmatpush1.bf16.msra.mxu0 %v8901_v49  ;;  %v3984_v49 = vld [vmem:[#allocation8 + $0xbe8] sm:$0xff] }
 0x2e1   :  { %6990 = vmatpush1.bf16.msra.mxu1 %v8903_v50  ;;  %6819 = vmatprep.subr.bf16.mxu0 %v8910_v51  ;;  %v8957_v50 = vcombine.low %v3971_v38, %v3975_v39  ;;  %v8959_v51 = vcombine.low %v3972_v40, %v3976_v41  ;;  %v8968_v53 = vcombine.high %v3980_v48, %v3984_v49  ;;  %v3995_v38 = vld [vmem:[#allocation8 + $0xc40] sm:$0xff] }
 0x2e2   :  { %6991 = vmatprep.subr.bf16.mxu1 %v8912_v52  ;;  %v8966_v52 = vcombine.high %v3979_v46, %v3983_v47 }
 0x2e4   :  { %6820 = vmatpush1.bf16.msra.mxu0 %v8909_v58  ;;  %v9848_v58 = vld [vmem:[#allocation8 + $0xc28] sm:$0xff] }
 0x2e5   :  { %6992 = vmatpush1.bf16.msra.mxu1 %v8911_v30  ;;  %6821 = vmatprep.subr.bf16.mxu0 %v8918_v60  ;;  %v8965_v30 = vcombine.low %v3979_v46, %v3983_v47  ;;  %v8967_v60 = vcombine.low %v3980_v48, %v3984_v49  ;;  %v8976_v1 = vcombine.high %v9846_v57, %v9848_v58 }
 0x2e6   :  { %6993 = vmatprep.subr.bf16.mxu1 %v8920_v61  ;;  %v8974_v61 = vcombine.high %v9842_v54, %v9844_v55  ;;  %v8973_v47 = vcombine.low %v9842_v54, %v9844_v55  ;;  %v8975_v48 = vcombine.low %v9846_v57, %v9848_v58 }
 0x2e8   :  { %6822 = vmatpush1.bf16.msra.mxu0 %v8917_v9  ;;  %v605_v9 = vsub.s32 7, %v9812_v56 }
 0x2e9   :  { %6994 = vmatpush1.bf16.msra.mxu1 %v8919_v10  ;;  %6823 = vmatprep.subr.bf16.mxu0 %v8926_v11  ;;  %v9480_v10 = vld [vmem:[#allocation7] sm:$0xff] }
 0x2ea   :  { %6995 = vmatprep.subr.bf16.mxu1 %v8928_v12  ;;  %v594_v11 = vrot.slane %v9480_v10, %v593_v5  ;;  %v602_v12 = vrot.slane %v9480_v10, %v601_v7  ;;  %v598_v13 = vrot.slane %v9480_v10, %v597_v8  ;;  %v606_v14 = vrot.slane %v9480_v10, %v605_v9  ;;  %v4012_v10 = vld [vmem:[#allocation8 + $0xcc8] sm:$0xff] }
 0x2ec   :  { %6824 = vmatpush1.bf16.msra.mxu0 %v8925_v17 }
 0x2ed   :  { %6996 = vmatpush1.bf16.msra.mxu1 %v8927_v18  ;;  %6825 = vmatprep.subr.bf16.mxu0 %v8934_v19 }
 0x2ee   :  { %6997 = vmatprep.subr.bf16.mxu1 %v8936_v20 }
 0x2f0   :  { %6826 = vmatpush1.bf16.msra.mxu0 %v8933_v25 }
 0x2f1   :  { %6998 = vmatpush1.bf16.msra.mxu1 %v8935_v26  ;;  %6827 = vmatprep.subr.bf16.mxu0 %v8942_v27 }
 0x2f2   :  { %6999 = vmatprep.subr.bf16.mxu1 %v8944_v28 }
 0x2f4   :  { %6828 = vmatpush1.bf16.msra.mxu0 %v8941_v34 }
 0x2f5   :  { %7000 = vmatpush1.bf16.msra.mxu1 %v8943_v35  ;;  %6829 = vmatprep.subr.bf16.mxu0 %v8950_v36 }
 0x2f6   :  { %7001 = vmatprep.subr.bf16.mxu1 %v8952_v37 }
 0x2f8   :  { %6830 = vmatpush1.bf16.msra.mxu0 %v8949_v42  ;;  %v3999_v42 = vld [vmem:[#allocation8 + $0xc60] sm:$0xff] }
 0x2f9   :  { %7002 = vmatpush1.bf16.msra.mxu1 %v8951_v43  ;;  %6831 = vmatprep.subr.bf16.mxu0 %v8958_v44  ;;  %v3996_v43 = vld [vmem:[#allocation8 + $0xc48] sm:$0xff]  ;;  %v8981_v54 = vcombine.low %v3995_v38, %v3999_v42 }
 0x2fa   :  { %7003 = vmatprep.subr.bf16.mxu1 %v8960_v45  ;;  %v4000_v44 = vld [vmem:[#allocation8 + $0xc68] sm:$0xff] }
 0x2fb   :  { %v8983_v55 = vcombine.low %v3996_v43, %v4000_v44 }
 0x2fc   :  { %6832 = vmatpush1.bf16.msra.mxu0 %v8957_v50  ;;  %v4003_v50 = vld [vmem:[#allocation8 + $0xc80] sm:$0xff] }
 0x2fd   :  { %7004 = vmatpush1.bf16.msra.mxu1 %v8959_v51  ;;  %6833 = vmatprep.subr.bf16.mxu0 %v8966_v52  ;;  %v8982_v51 = vcombine.high %v3995_v38, %v3999_v42  ;;  %v8984_v52 = vcombine.high %v3996_v43, %v4000_v44  ;;  %v4043_v42 = vld [vmem:[#allocation8 + $0xdc0] sm:$0xff]  ;;  %v4044_v44 = vld [vmem:[#allocation8 + $0xdc8] sm:$0xff] }
 0x2fe   :  { %7005 = vmatprep.subr.bf16.mxu1 %v8968_v53  ;;  %v4007_v53 = vld [vmem:[#allocation8 + $0xca0] sm:$0xff] }
 0x2ff   :  { %v8990_v57 = vcombine.high %v4003_v50, %v4007_v53  ;;  %v4047_v43 = vld [vmem:[#allocation8 + $0xde0] sm:$0xff] }
 0x300   :  { %6834 = vmatpush1.bf16.msra.mxu0 %v8965_v30  ;;  %v4004_v30 = vld [vmem:[#allocation8 + $0xc88] sm:$0xff] }
 0x301   :  { %7006 = vmatpush1.bf16.msra.mxu1 %v8967_v60  ;;  %6846 = vmatprep.subr.bf16.mxu0 %v8974_v61  ;;  %v4008_v60 = vld [vmem:[#allocation8 + $0xca8] sm:$0xff]  ;;  %v4011_v61 = vld [vmem:[#allocation8 + $0xcc0] sm:$0xff] }
 0x302   :  { %7018 = vmatprep.subr.bf16.mxu1 %v8976_v1  ;;  %v8992_v58 = vcombine.high %v4004_v30, %v4008_v60  ;;  %v4015_v1 = vld [vmem:[#allocation8 + $0xce0] sm:$0xff] }
 0x316   :  { %v3398_v15 = vpop.f32.mrb[4].mxu0  ;;  %v3570_v17 = vpop.f32.mrb[4].mxu1 }
 0x317   :  { %v9262_v16 = vadd.f32 %v3398_v15, %v594_v11  ;;  %v3400_v18 = vpop.f32.mrb[5].mxu0  ;;  %v9266_v19 = vadd.f32 %v3570_v17, %v602_v12  ;;  %v3572_v21 = vpop.f32.mrb[5].mxu1  ;;  %v4023_v17 = vld [vmem:[#allocation8 + $0xd20] sm:$0xff] }
 0x318   :  { %v9263_v20 = vadd.f32 %v3400_v18, %v598_v13  ;;  %v3402_v22 = vpop.f32.mrb[6].mxu0  ;;  %v9267_v23 = vadd.f32 %v3572_v21, %v606_v14  ;;  %v3574_v25 = vpop.f32.mrb[6].mxu1  ;;  %v4020_v18 = vld [vmem:[#allocation8 + $0xd08] sm:$0xff] }
 0x319   :  { %v9264_v24 = vadd.f32 %v3402_v22, %v594_v11  ;;  %v3404_v26 = vpop.f32.mrb[7].mxu0  ;;  %v9268_v27 = vadd.f32 %v3574_v25, %v602_v12  ;;  %v3576_v29 = vpop.f32.mrb[7].mxu1  ;;  %v3583_v31 = vmax.f32 %v9262_v16, 0.0  ;;  %v3585_v34 = vmax.f32 %v9266_v19, 0.0  ;;  %v4016_v11 = vld [vmem:[#allocation8 + $0xce8] sm:$0xff]  ;;  %v4019_v16 = vld [vmem:[#allocation8 + $0xd00] sm:$0xff] }
 0x31a   :  { %v9265_v28 = vadd.f32 %v3404_v26, %v598_v13  ;;  %v9269_v33 = vadd.f32 %v3576_v29, %v606_v14  ;;  %v3584_v35 = vmax.f32 %v9263_v20, 0.0  ;;  %v3586_v39 = vmax.f32 %v9267_v23, 0.0  ;;  %v4024_v19 = vld [vmem:[#allocation8 + $0xd28] sm:$0xff]  ;;  %v4031_v25 = vld [vmem:[#allocation8 + $0xd60] sm:$0xff] }
 0x31b   :  { %v3591_v32 = vmax.f32 %v9264_v24, 0.0  ;;  %v3593_v36 = vmax.f32 %v9268_v27, 0.0  ;;  %v8989_v12 = vcombine.low %v4003_v50, %v4007_v53  ;;  %v8991_v13 = vcombine.low %v4004_v30, %v4008_v60  ;;  %v4027_v24 = vld [vmem:[#allocation8 + $0xd40] sm:$0xff]  ;;  %v4028_v26 = vld [vmem:[#allocation8 + $0xd48] sm:$0xff] }
 0x31c   :  { %v3592_v37 = vmax.f32 %v9265_v28, 0.0  ;;  %v3594_v41 = vmax.f32 %v9269_v33, 0.0  ;;  %v8998_v14 = vcombine.high %v4011_v61, %v4015_v1  ;;  %v9000_v15 = vcombine.high %v4012_v10, %v4016_v11  ;;  %v4032_v27 = vld [vmem:[#allocation8 + $0xd68] sm:$0xff]  ;;  %v4035_v33 = vld [vmem:[#allocation8 + $0xd80] sm:$0xff] }
 0x31d   :  { %v9866_v40 = vpack.c.bf16 %v3591_v32, %v3583_v31  ;;  %v9868_v45 = vpack.c.bf16 %v3593_v36, %v3585_v34  ;;  %v8997_v20 = vcombine.low %v4011_v61, %v4015_v1  ;;  %v8999_v21 = vcombine.low %v4012_v10, %v4016_v11  ;;  %v4039_v34 = vld [vmem:[#allocation8 + $0xda0] sm:$0xff]  ;;  %v4040_v36 = vld [vmem:[#allocation8 + $0xda8] sm:$0xff] }
 0x31e   :  { %v9870_v46 = vpack.c.bf16 %v3592_v37, %v3584_v35  ;;  %v9876_v49 = vpack.c.bf16 %v3594_v41, %v3586_v39  ;;  %v9006_v22 = vcombine.high %v4019_v16, %v4023_v17  ;;  %v9008_v23 = vcombine.high %v4020_v18, %v4024_v19  ;;  %v4036_v35 = vld [vmem:[#allocation8 + $0xd88] sm:$0xff]  ;;  %v4051_v53 = vld [vmem:[#allocation8 + $0xe00] sm:$0xff] }
 0x31f   :  { %v9005_v28 = vcombine.low %v4019_v16, %v4023_v17  ;;  %v9007_v29 = vcombine.low %v4020_v18, %v4024_v19  ;;  %v9014_v31 = vcombine.high %v4027_v24, %v4031_v25  ;;  %v9016_v32 = vcombine.high %v4028_v26, %v4032_v27  ;;  %v4055_v30 = vld [vmem:[#allocation8 + $0xe20] sm:$0xff]  ;;  %v4052_v60 = vld [vmem:[#allocation8 + $0xe08] sm:$0xff] }
 0x320   :  { %6835 = vmatprep.mubr.bf16.mxu0 %v9870_v46  ;;  %7007 = vmatprep.mubr.bf16.mxu1 %v9870_v46  ;;  %v9013_v37 = vcombine.low %v4027_v24, %v4031_v25  ;;  %v9015_v38 = vcombine.low %v4028_v26, %v4032_v27  ;;  %v9022_v39 = vcombine.high %v4035_v33, %v4039_v34  ;;  %v4059_v1 = vld [vmem:[#allocation8 + $0xe40] sm:$0xff]  ;;  %v4060_v11 = vld [vmem:[#allocation8 + $0xe48] sm:$0xff] }
 0x321   :  { %6836 = vmatmul.mubr.bf16.vlgmr.msra.gmra.mrb[8].mxu0 %v9866_v40  ;;  %7008 = vmatmul.mubr.bf16.vlgmr.msra.gmra.mrb[8].mxu1 %v9866_v40  ;;  %v9024_v41 = vcombine.high %v4036_v35, %v4040_v36  ;;  %v9023_v50 = vcombine.low %v4036_v35, %v4040_v36  ;;  %v4063_v10 = vld [vmem:[#allocation8 + $0xe60] sm:$0xff]  ;;  %v4068_v19 = vld [vmem:[#allocation8 + $0xe88] sm:$0xff] }
 0x322   :  { %6847 = vmatpush1.bf16.msra.mxu0 %v8973_v47  ;;  %7019 = vmatpush1.bf16.msra.mxu1 %v8975_v48  ;;  %v4048_v47 = vld [vmem:[#allocation8 + $0xde8] sm:$0xff]  ;;  %v9021_v48 = vcombine.low %v4035_v33, %v4039_v34  ;;  %v4067_v17 = vld [vmem:[#allocation8 + $0xe80] sm:$0xff] }
 0x323   :  { %6878 = vmatprep.mubr.bf16.mxu0 %v9876_v49  ;;  %7050 = vmatprep.mubr.bf16.mxu1 %v9876_v49  ;;  %v4071_v18 = vld [vmem:[#allocation8 + $0xea0] sm:$0xff]  ;;  %v4076_v27 = vld [vmem:[#allocation8 + $0xec8] sm:$0xff] }
 0x324   :  { %6848 = vmatprep.subr.bf16.mxu0 %v8982_v51  ;;  %7020 = vmatprep.subr.bf16.mxu1 %v8984_v52  ;;  %v9030_v51 = vcombine.high %v4043_v42, %v4047_v43  ;;  %v9032_v52 = vcombine.high %v4044_v44, %v4048_v47  ;;  %v4075_v25 = vld [vmem:[#allocation8 + $0xec0] sm:$0xff]  ;;  %v4084_v36 = vld [vmem:[#allocation8 + $0xf08] sm:$0xff] }
 0x325   :  { %v4079_v26 = vld [vmem:[#allocation8 + $0xee0] sm:$0xff] }
 0x326   :  { %6849 = vmatpush1.bf16.msra.mxu0 %v8981_v54  ;;  %7021 = vmatpush1.bf16.msra.mxu1 %v8983_v55  ;;  %v4056_v54 = vld [vmem:[#allocation8 + $0xe28] sm:$0xff]  ;;  %v9029_v55 = vcombine.low %v4043_v42, %v4047_v43  ;;  %v4083_v34 = vld [vmem:[#allocation8 + $0xf00] sm:$0xff] }
 0x327   :  { %6850 = vmatprep.subr.bf16.mxu0 %v8990_v57  ;;  %7022 = vmatprep.subr.bf16.mxu1 %v8992_v58  ;;  %v9031_v57 = vcombine.low %v4044_v44, %v4048_v47  ;;  %v9038_v58 = vcombine.high %v4051_v53, %v4055_v30  ;;  %v9040_v61 = vcombine.high %v4052_v60, %v4056_v54  ;;  %v4087_v35 = vld [vmem:[#allocation8 + $0xf20] sm:$0xff]  ;;  %v4092_v47 = vld [vmem:[#allocation8 + $0xf48] sm:$0xff] }
 0x328   :  { %v4091_v43 = vld [vmem:[#allocation8 + $0xf40] sm:$0xff] }
 0x329   :  { %v4095_v44 = vld [vmem:[#allocation8 + $0xf60] sm:$0xff] }
 0x32a   :  { %6851 = vmatpush1.bf16.msra.mxu0 %v8989_v12  ;;  %7023 = vmatpush1.bf16.msra.mxu1 %v8991_v13  ;;  %v4064_v12 = vld [vmem:[#allocation8 + $0xe68] sm:$0xff]  ;;  %v9037_v13 = vcombine.low %v4051_v53, %v4055_v30  ;;  %v4099_v30 = vld [vmem:[#allocation8 + $0xf80] sm:$0xff] }
 0x32b   :  { %6852 = vmatprep.subr.bf16.mxu0 %v8998_v14  ;;  %7024 = vmatprep.subr.bf16.mxu1 %v9000_v15  ;;  %v9039_v14 = vcombine.low %v4052_v60, %v4056_v54  ;;  %v9046_v15 = vcombine.high %v4059_v1, %v4063_v10  ;;  %v9048_v16 = vcombine.high %v4060_v11, %v4064_v12  ;;  %v4103_v60 = vld [vmem:[#allocation8 + $0xfa0] sm:$0xff]  ;;  %v4100_v54 = vld [vmem:[#allocation8 + $0xf88] sm:$0xff] }
 0x32e   :  { %6853 = vmatpush1.bf16.msra.mxu0 %v8997_v20  ;;  %7025 = vmatpush1.bf16.msra.mxu1 %v8999_v21  ;;  %v4072_v20 = vld [vmem:[#allocation8 + $0xea8] sm:$0xff]  ;;  %v9045_v21 = vcombine.low %v4059_v1, %v4063_v10  ;;  %v4107_v10 = vld [vmem:[#allocation8 + $0xfc0] sm:$0xff] }
 0x32f   :  { %6854 = vmatprep.subr.bf16.mxu0 %v9006_v22  ;;  %7026 = vmatprep.subr.bf16.mxu1 %v9008_v23  ;;  %v9047_v22 = vcombine.low %v4060_v11, %v4064_v12  ;;  %v9054_v23 = vcombine.high %v4067_v17, %v4071_v18  ;;  %v9056_v24 = vcombine.high %v4068_v19, %v4072_v20  ;;  %v4111_v11 = vld [vmem:[#allocation8 + $0xfe0] sm:$0xff]  ;;  %v4108_v12 = vld [vmem:[#allocation8 + $0xfc8] sm:$0xff] }
 0x332   :  { %6855 = vmatpush1.bf16.msra.mxu0 %v9005_v28  ;;  %7027 = vmatpush1.bf16.msra.mxu1 %v9007_v29  ;;  %v4080_v28 = vld [vmem:[#allocation8 + $0xee8] sm:$0xff]  ;;  %v9053_v29 = vcombine.low %v4067_v17, %v4071_v18  ;;  %v3605_v18 = vld [vmem:[#allocation8 + $0x10] sm:$0xff] }
 0x333   :  { %6856 = vmatprep.subr.bf16.mxu0 %v9014_v31  ;;  %7028 = vmatprep.subr.bf16.mxu1 %v9016_v32  ;;  %v9055_v31 = vcombine.low %v4068_v19, %v4072_v20  ;;  %v9062_v32 = vcombine.high %v4075_v25, %v4079_v26  ;;  %v9064_v33 = vcombine.high %v4076_v27, %v4080_v28  ;;  %v3609_v19 = vld [vmem:[#allocation8 + $0x30] sm:$0xff]  ;;  %v3606_v20 = vld [vmem:[#allocation8 + $0x18] sm:$0xff] }
 0x336   :  { %6857 = vmatpush1.bf16.msra.mxu0 %v9013_v37  ;;  %7029 = vmatpush1.bf16.msra.mxu1 %v9015_v38  ;;  %v4088_v37 = vld [vmem:[#allocation8 + $0xf28] sm:$0xff]  ;;  %v9061_v38 = vcombine.low %v4075_v25, %v4079_v26  ;;  %v3613_v26 = vld [vmem:[#allocation8 + $0x50] sm:$0xff] }
 0x337   :  { %6858 = vmatprep.subr.bf16.mxu0 %v9022_v39  ;;  %7030 = vmatprep.subr.bf16.mxu1 %v9024_v41  ;;  %v9063_v39 = vcombine.low %v4076_v27, %v4080_v28  ;;  %v9070_v41 = vcombine.high %v4083_v34, %v4087_v35  ;;  %v9072_v42 = vcombine.high %v4084_v36, %v4088_v37  ;;  %v3617_v27 = vld [vmem:[#allocation8 + $0x70] sm:$0xff]  ;;  %v3614_v28 = vld [vmem:[#allocation8 + $0x58] sm:$0xff] }
 0x33a   :  { %6859 = vmatpush1.bf16.msra.mxu0 %v9021_v48  ;;  %7031 = vmatpush1.bf16.msra.mxu1 %v9023_v50  ;;  %v4096_v48 = vld [vmem:[#allocation8 + $0xf68] sm:$0xff]  ;;  %v9069_v50 = vcombine.low %v4083_v34, %v4087_v35  ;;  %v3621_v35 = vld [vmem:[#allocation8 + $0x90] sm:$0xff] }
 0x33b   :  { %6860 = vmatprep.subr.bf16.mxu0 %v9030_v51  ;;  %7032 = vmatprep.subr.bf16.mxu1 %v9032_v52  ;;  %v9071_v51 = vcombine.low %v4084_v36, %v4088_v37  ;;  %v9078_v52 = vcombine.high %v4091_v43, %v4095_v44  ;;  %v9080_v53 = vcombine.high %v4092_v47, %v4096_v48  ;;  %v3625_v36 = vld [vmem:[#allocation8 + $0xb0] sm:$0xff]  ;;  %v3622_v37 = vld [vmem:[#allocation8 + $0x98] sm:$0xff] }
 0x33e   :  { %6861 = vmatpush1.bf16.msra.mxu0 %v9029_v55  ;;  %7033 = vmatpush1.bf16.msra.mxu1 %v9031_v57  ;;  %v4104_v55 = vld [vmem:[#allocation8 + $0xfa8] sm:$0xff]  ;;  %v9077_v57 = vcombine.low %v4091_v43, %v4095_v44  ;;  %v3629_v44 = vld [vmem:[#allocation8 + $0xd0] sm:$0xff] }
 0x33f   :  { %6862 = vmatprep.subr.bf16.mxu0 %v9038_v58  ;;  %7034 = vmatprep.subr.bf16.mxu1 %v9040_v61  ;;  %v9079_v58 = vcombine.low %v4092_v47, %v4096_v48  ;;  %v9086_v61 = vcombine.high %v4099_v30, %v4103_v60  ;;  %v9088_v1 = vcombine.high %v4100_v54, %v4104_v55  ;;  %v3633_v47 = vld [vmem:[#allocation8 + $0xf0] sm:$0xff]  ;;  %v3630_v48 = vld [vmem:[#allocation8 + $0xd8] sm:$0xff] }
 0x342   :  { %6863 = vmatpush1.bf16.msra.mxu0 %v9037_v13  ;;  %7035 = vmatpush1.bf16.msra.mxu1 %v9039_v14  ;;  %v4112_v13 = vld [vmem:[#allocation8 + $0xfe8] sm:$0xff]  ;;  %v9085_v14 = vcombine.low %v4099_v30, %v4103_v60  ;;  %v3637_v60 = vld [vmem:[#allocation8 + $0x110] sm:$0xff] }
 0x343   :  { %6864 = vmatprep.subr.bf16.mxu0 %v9046_v15  ;;  %7036 = vmatprep.subr.bf16.mxu1 %v9048_v16  ;;  %v9087_v15 = vcombine.low %v4100_v54, %v4104_v55  ;;  %v9094_v16 = vcombine.high %v4107_v10, %v4111_v11  ;;  %v9096_v17 = vcombine.high %v4108_v12, %v4112_v13  ;;  %v3641_v54 = vld [vmem:[#allocation8 + $0x130] sm:$0xff]  ;;  %v3642_v55 = vld [vmem:[#allocation8 + $0x138] sm:$0xff] }
 0x346   :  { %6865 = vmatpush1.bf16.msra.mxu0 %v9045_v21  ;;  %7037 = vmatpush1.bf16.msra.mxu1 %v9047_v22  ;;  %v3610_v21 = vld [vmem:[#allocation8 + $0x38] sm:$0xff]  ;;  %v9093_v22 = vcombine.low %v4107_v10, %v4111_v11  ;;  %v3645_v10 = vld [vmem:[#allocation8 + $0x150] sm:$0xff] }
 0x347   :  { %6866 = vmatprep.subr.bf16.mxu0 %v9054_v23  ;;  %7038 = vmatprep.subr.bf16.mxu1 %v9056_v24  ;;  %v9095_v23 = vcombine.low %v4108_v12, %v4112_v13  ;;  %v8594_v24 = vcombine.high %v3605_v18, %v3609_v19  ;;  %v8596_v25 = vcombine.high %v3606_v20, %v3610_v21  ;;  %v3649_v11 = vld [vmem:[#allocation8 + $0x170] sm:$0xff]  ;;  %v3646_v12 = vld [vmem:[#allocation8 + $0x158] sm:$0xff] }
 0x348   :  { %v3650_v13 = vld [vmem:[#allocation8 + $0x178] sm:$0xff] }
 0x34a   :  { %6867 = vmatpush1.bf16.msra.mxu0 %v9053_v29  ;;  %7039 = vmatpush1.bf16.msra.mxu1 %v9055_v31  ;;  %v3618_v29 = vld [vmem:[#allocation8 + $0x78] sm:$0xff]  ;;  %v8593_v31 = vcombine.low %v3605_v18, %v3609_v19  ;;  %v3653_v18 = vld [vmem:[#allocation8 + $0x190] sm:$0xff] }
 0x34b   :  { %6868 = vmatprep.subr.bf16.mxu0 %v9062_v32  ;;  %7040 = vmatprep.subr.bf16.mxu1 %v9064_v33  ;;  %v8595_v32 = vcombine.low %v3606_v20, %v3610_v21  ;;  %v8602_v33 = vcombine.high %v3613_v26, %v3617_v27  ;;  %v8604_v34 = vcombine.high %v3614_v28, %v3618_v29  ;;  %v3657_v19 = vld [vmem:[#allocation8 + $0x1b0] sm:$0xff]  ;;  %v3654_v20 = vld [vmem:[#allocation8 + $0x198] sm:$0xff] }
 0x34c   :  { %v3658_v21 = vld [vmem:[#allocation8 + $0x1b8] sm:$0xff] }
 0x34e   :  { %6869 = vmatpush1.bf16.msra.mxu0 %v9061_v38  ;;  %7041 = vmatpush1.bf16.msra.mxu1 %v9063_v39  ;;  %v3626_v38 = vld [vmem:[#allocation8 + $0xb8] sm:$0xff]  ;;  %v8601_v39 = vcombine.low %v3613_v26, %v3617_v27  ;;  %v3661_v26 = vld [vmem:[#allocation8 + $0x1d0] sm:$0xff] }
 0x34f   :  { %6870 = vmatprep.subr.bf16.mxu0 %v9070_v41  ;;  %7042 = vmatprep.subr.bf16.mxu1 %v9072_v42  ;;  %v8603_v41 = vcombine.low %v3614_v28, %v3618_v29  ;;  %v8610_v42 = vcombine.high %v3621_v35, %v3625_v36  ;;  %v8612_v43 = vcombine.high %v3622_v37, %v3626_v38  ;;  %v3665_v27 = vld [vmem:[#allocation8 + $0x1f0] sm:$0xff]  ;;  %v3662_v28 = vld [vmem:[#allocation8 + $0x1d8] sm:$0xff] }
 0x350   :  { %v3666_v29 = vld [vmem:[#allocation8 + $0x1f8] sm:$0xff] }
 0x352   :  { %6871 = vmatpush1.bf16.msra.mxu0 %v9069_v50  ;;  %7043 = vmatpush1.bf16.msra.mxu1 %v9071_v51  ;;  %v3634_v50 = vld [vmem:[#allocation8 + $0xf8] sm:$0xff]  ;;  %v8609_v51 = vcombine.low %v3621_v35, %v3625_v36  ;;  %v3669_v35 = vld [vmem:[#allocation8 + $0x210] sm:$0xff] }
 0x353   :  { %6872 = vmatprep.subr.bf16.mxu0 %v9078_v52  ;;  %7044 = vmatprep.subr.bf16.mxu1 %v9080_v53  ;;  %v8611_v52 = vcombine.low %v3622_v37, %v3626_v38  ;;  %v8618_v53 = vcombine.high %v3629_v44, %v3633_v47  ;;  %v8620_v30 = vcombine.high %v3630_v48, %v3634_v50  ;;  %v3673_v36 = vld [vmem:[#allocation8 + $0x230] sm:$0xff]  ;;  %v3670_v37 = vld [vmem:[#allocation8 + $0x218] sm:$0xff] }
 0x354   :  { %v3674_v38 = vld [vmem:[#allocation8 + $0x238] sm:$0xff] }
 0x356   :  { %6873 = vmatpush1.bf16.msra.mxu0 %v9077_v57  ;;  %7045 = vmatpush1.bf16.msra.mxu1 %v9079_v58  ;;  %v8617_v57 = vcombine.low %v3629_v44, %v3633_v47  ;;  %v8619_v58 = vcombine.low %v3630_v48, %v3634_v50  ;;  %v3677_v44 = vld [vmem:[#allocation8 + $0x250] sm:$0xff]  ;;  %v3678_v48 = vld [vmem:[#allocation8 + $0x258] sm:$0xff] }
 0x357   :  { %6874 = vmatprep.subr.bf16.mxu0 %v9086_v61  ;;  %7046 = vmatprep.subr.bf16.mxu1 %v9088_v1  ;;  %v8626_v61 = vcombine.high %v3637_v60, %v3641_v54  ;;  %v3681_v47 = vld [vmem:[#allocation8 + $0x270] sm:$0xff]  ;;  %v3682_v50 = vld [vmem:[#allocation8 + $0x278] sm:$0xff] }
 0x35a   :  { %6875 = vmatpush1.bf16.msra.mxu0 %v9085_v14  ;;  %7047 = vmatpush1.bf16.msra.mxu1 %v9087_v15  ;;  %v8625_v14 = vcombine.low %v3637_v60, %v3641_v54  ;;  %v3685_v60 = vld [vmem:[#allocation8 + $0x290] sm:$0xff] }
 0x35b   :  { %6876 = vmatprep.subr.bf16.mxu0 %v9094_v16  ;;  %7048 = vmatprep.subr.bf16.mxu1 %v9096_v17  ;;  %v8634_v16 = vcombine.high %v3645_v10, %v3649_v11  ;;  %v8636_v17 = vcombine.high %v3646_v12, %v3650_v13  ;;  %v3689_v54 = vld [vmem:[#allocation8 + $0x2b0] sm:$0xff] }
 0x35e   :  { %6877 = vmatpush1.bf16.msra.mxu0 %v9093_v22  ;;  %7049 = vmatpush1.bf16.msra.mxu1 %v9095_v23  ;;  %v8633_v22 = vcombine.low %v3645_v10, %v3649_v11  ;;  %v8635_v23 = vcombine.low %v3646_v12, %v3650_v13  ;;  %v3693_v10 = vld [vmem:[#allocation8 + $0x2d0] sm:$0xff]  ;;  %v3694_v12 = vld [vmem:[#allocation8 + $0x2d8] sm:$0xff] }
 0x35f   :  { %7061 = vmatprep.subr.bf16.mxu0 %v8594_v24  ;;  %7233 = vmatprep.subr.bf16.mxu1 %v8596_v25  ;;  %v8642_v24 = vcombine.high %v3653_v18, %v3657_v19  ;;  %v8644_v25 = vcombine.high %v3654_v20, %v3658_v21  ;;  %v3697_v11 = vld [vmem:[#allocation8 + $0x2f0] sm:$0xff]  ;;  %v3698_v13 = vld [vmem:[#allocation8 + $0x2f8] sm:$0xff] }
 0x361   :  { %6879 = vmatmul.mubr.bf16.vlgmr.msra.gmra.mrb[8].mxu0 %v9868_v45  ;;  %7051 = vmatmul.mubr.bf16.vlgmr.msra.gmra.mrb[8].mxu1 %v9868_v45 }
 0x362   :  { %7062 = vmatpush1.bf16.msra.mxu0 %v8593_v31  ;;  %7093 = vmatprep.mubr.bf16.mxu0 %v9830_v0  ;;  %v8641_v31 = vcombine.low %v3653_v18, %v3657_v19  ;;  %v3701_v18 = vld [vmem:[#allocation8 + $0x310] sm:$0xff] }
 0x363   :  { %7234 = vmatpush1.bf16.msra.mxu1 %v8595_v32  ;;  %7265 = vmatprep.mubr.bf16.mxu1 %v9830_v0  ;;  %v3638_v0 = vld [vmem:[#allocation8 + $0x118] sm:$0xff]  ;;  %v8643_v32 = vcombine.low %v3654_v20, %v3658_v21  ;;  %v3705_v19 = vld [vmem:[#allocation8 + $0x330] sm:$0xff] }
 0x364   :  { %7063 = vmatprep.subr.bf16.mxu0 %v8602_v33  ;;  %7235 = vmatprep.subr.bf16.mxu1 %v8604_v34  ;;  %v8628_v1 = vcombine.high %v3638_v0, %v3642_v55  ;;  %v8627_v15 = vcombine.low %v3638_v0, %v3642_v55  ;;  %v8650_v33 = vcombine.high %v3661_v26, %v3665_v27  ;;  %v3686_v0 = vld [vmem:[#allocation8 + $0x298] sm:$0xff] }
 0x365   :  { %v8652_v34 = vcombine.high %v3662_v28, %v3666_v29  ;;  %v3690_v55 = vld [vmem:[#allocation8 + $0x2b8] sm:$0xff] }
 0x366   :  { %7064 = vmatpush1.bf16.msra.mxu0 %v8601_v39  ;;  %v8649_v39 = vcombine.low %v3661_v26, %v3665_v27  ;;  %v3702_v20 = vld [vmem:[#allocation8 + $0x318] sm:$0xff]  ;;  %v3709_v26 = vld [vmem:[#allocation8 + $0x350] sm:$0xff] }
 0x367   :  { %7236 = vmatpush1.bf16.msra.mxu1 %v8603_v41  ;;  %7065 = vmatprep.subr.bf16.mxu0 %v8610_v42  ;;  %v8651_v41 = vcombine.low %v3662_v28, %v3666_v29  ;;  %v8658_v42 = vcombine.high %v3669_v35, %v3673_v36  ;;  %v3706_v21 = vld [vmem:[#allocation8 + $0x338] sm:$0xff]  ;;  %v3713_v27 = vld [vmem:[#allocation8 + $0x370] sm:$0xff] }
 0x368   :  { %7237 = vmatprep.subr.bf16.mxu1 %v8612_v43  ;;  %v8660_v43 = vcombine.high %v3670_v37, %v3674_v38  ;;  %v3710_v28 = vld [vmem:[#allocation8 + $0x358] sm:$0xff] }
 0x369   :  { %v3714_v29 = vld [vmem:[#allocation8 + $0x378] sm:$0xff] }
 0x36a   :  { %7066 = vmatpush1.bf16.msra.mxu0 %v8609_v51  ;;  %v8657_v51 = vcombine.low %v3669_v35, %v3673_v36  ;;  %v3717_v35 = vld [vmem:[#allocation8 + $0x390] sm:$0xff] }
 0x36b   :  { %7238 = vmatpush1.bf16.msra.mxu1 %v8611_v52  ;;  %7067 = vmatprep.subr.bf16.mxu0 %v8618_v53  ;;  %v8659_v52 = vcombine.low %v3670_v37, %v3674_v38  ;;  %v8666_v53 = vcombine.high %v3677_v44, %v3681_v47  ;;  %v3721_v36 = vld [vmem:[#allocation8 + $0x3b0] sm:$0xff]  ;;  %v3718_v37 = vld [vmem:[#allocation8 + $0x398] sm:$0xff] }
 0x36c   :  { %7239 = vmatprep.subr.bf16.mxu1 %v8620_v30  ;;  %v8668_v30 = vcombine.high %v3678_v48, %v3682_v50  ;;  %v3722_v38 = vld [vmem:[#allocation8 + $0x3b8] sm:$0xff] }
 0x36e   :  { %7068 = vmatpush1.bf16.msra.mxu0 %v8617_v57  ;;  %v8665_v57 = vcombine.low %v3677_v44, %v3681_v47  ;;  %v3725_v44 = vld [vmem:[#allocation8 + $0x3d0] sm:$0xff] }
 0x36f   :  { %7240 = vmatpush1.bf16.msra.mxu1 %v8619_v58  ;;  %7069 = vmatprep.subr.bf16.mxu0 %v8626_v61  ;;  %v8667_v58 = vcombine.low %v3678_v48, %v3682_v50  ;;  %v8674_v61 = vcombine.high %v3685_v60, %v3689_v54  ;;  %v3729_v47 = vld [vmem:[#allocation8 + $0x3f0] sm:$0xff]  ;;  %v3726_v48 = vld [vmem:[#allocation8 + $0x3d8] sm:$0xff] }
 0x370   :  { %7241 = vmatprep.subr.bf16.mxu1 %v8628_v1  ;;  %v8676_v1 = vcombine.high %v3686_v0, %v3690_v55  ;;  %v3730_v50 = vld [vmem:[#allocation8 + $0x3f8] sm:$0xff] }
 0x372   :  { %7070 = vmatpush1.bf16.msra.mxu0 %v8625_v14  ;;  %v8673_v14 = vcombine.low %v3685_v60, %v3689_v54  ;;  %v3733_v60 = vld [vmem:[#allocation8 + $0x410] sm:$0xff] }
 0x373   :  { %7242 = vmatpush1.bf16.msra.mxu1 %v8627_v15  ;;  %7071 = vmatprep.subr.bf16.mxu0 %v8634_v16  ;;  %v8675_v15 = vcombine.low %v3686_v0, %v3690_v55  ;;  %v8682_v16 = vcombine.high %v3693_v10, %v3697_v11  ;;  %v3737_v54 = vld [vmem:[#allocation8 + $0x430] sm:$0xff]  ;;  %v3734_v0 = vld [vmem:[#allocation8 + $0x418] sm:$0xff] }
 0x374   :  { %7243 = vmatprep.subr.bf16.mxu1 %v8636_v17  ;;  %v8684_v17 = vcombine.high %v3694_v12, %v3698_v13  ;;  %v3738_v55 = vld [vmem:[#allocation8 + $0x438] sm:$0xff] }
 0x376   :  { %7072 = vmatpush1.bf16.msra.mxu0 %v8633_v22  ;;  %v8681_v22 = vcombine.low %v3693_v10, %v3697_v11  ;;  %v3741_v10 = vld [vmem:[#allocation8 + $0x450] sm:$0xff] }
 0x377   :  { %7244 = vmatpush1.bf16.msra.mxu1 %v8635_v23  ;;  %7073 = vmatprep.subr.bf16.mxu0 %v8642_v24  ;;  %v8683_v23 = vcombine.low %v3694_v12, %v3698_v13  ;;  %v8690_v24 = vcombine.high %v3701_v18, %v3705_v19  ;;  %v3745_v11 = vld [vmem:[#allocation8 + $0x470] sm:$0xff]  ;;  %v8721_v12 = vcombine.low %v3733_v60, %v3737_v54  ;;  %v3742_v13 = vld [vmem:[#allocation8 + $0x458] sm:$0xff] }
 0x378   :  { %7245 = vmatprep.subr.bf16.mxu1 %v8644_v25  ;;  %v8692_v25 = vcombine.high %v3702_v20, %v3706_v21 }
 0x37a   :  { %7074 = vmatpush1.bf16.msra.mxu0 %v8641_v31  ;;  %v8689_v31 = vcombine.low %v3701_v18, %v3705_v19  ;;  %v3753_v18 = vld [vmem:[#allocation8 + $0x4b0] sm:$0xff] }
 0x37b   :  { %7246 = vmatpush1.bf16.msra.mxu1 %v8643_v32  ;;  %7075 = vmatprep.subr.bf16.mxu0 %v8650_v33  ;;  %v8691_v32 = vcombine.low %v3702_v20, %v3706_v21  ;;  %v8698_v33 = vcombine.high %v3709_v26, %v3713_v27  ;;  %v3750_v20 = vld [vmem:[#allocation8 + $0x498] sm:$0xff] }
 0x37c   :  { %7247 = vmatprep.subr.bf16.mxu1 %v8652_v34  ;;  %v8700_v34 = vcombine.high %v3710_v28, %v3714_v29  ;;  %v3754_v21 = vld [vmem:[#allocation8 + $0x4b8] sm:$0xff] }
 0x37e   :  { %7076 = vmatpush1.bf16.msra.mxu0 %v8649_v39  ;;  %v8697_v39 = vcombine.low %v3709_v26, %v3713_v27  ;;  %v3757_v26 = vld [vmem:[#allocation8 + $0x4d0] sm:$0xff] }
 0x37f   :  { %7248 = vmatpush1.bf16.msra.mxu1 %v8651_v41  ;;  %7077 = vmatprep.subr.bf16.mxu0 %v8658_v42  ;;  %v8699_v41 = vcombine.low %v3710_v28, %v3714_v29  ;;  %v8706_v42 = vcombine.high %v3717_v35, %v3721_v36  ;;  %v3761_v27 = vld [vmem:[#allocation8 + $0x4f0] sm:$0xff]  ;;  %v3758_v28 = vld [vmem:[#allocation8 + $0x4d8] sm:$0xff] }
 0x380   :  { %7249 = vmatprep.subr.bf16.mxu1 %v8660_v43  ;;  %v8708_v43 = vcombine.high %v3718_v37, %v3722_v38  ;;  %v3762_v29 = vld [vmem:[#allocation8 + $0x4f8] sm:$0xff] }
 0x382   :  { %7078 = vmatpush1.bf16.msra.mxu0 %v8657_v51  ;;  %v8705_v51 = vcombine.low %v3717_v35, %v3721_v36  ;;  %v3769_v35 = vld [vmem:[#allocation8 + $0x530] sm:$0xff]  ;;  %v3766_v36 = vld [vmem:[#allocation8 + $0x518] sm:$0xff] }
 0x383   :  { %7250 = vmatpush1.bf16.msra.mxu1 %v8659_v52  ;;  %7079 = vmatprep.subr.bf16.mxu0 %v8666_v53  ;;  %v8707_v52 = vcombine.low %v3718_v37, %v3722_v38  ;;  %v8714_v53 = vcombine.high %v3725_v44, %v3729_v47  ;;  %v3770_v37 = vld [vmem:[#allocation8 + $0x538] sm:$0xff]  ;;  %v8747_v38 = vcombine.low %v3758_v28, %v3762_v29 }
 0x384   :  { %7251 = vmatprep.subr.bf16.mxu1 %v8668_v30  ;;  %v8716_v30 = vcombine.high %v3726_v48, %v3730_v50 }
 0x386   :  { %7080 = vmatpush1.bf16.msra.mxu0 %v8665_v57  ;;  %v8713_v57 = vcombine.low %v3725_v44, %v3729_v47  ;;  %v3774_v44 = vld [vmem:[#allocation8 + $0x558] sm:$0xff] }
 0x387   :  { %7252 = vmatpush1.bf16.msra.mxu1 %v8667_v58  ;;  %7081 = vmatprep.subr.bf16.mxu0 %v8674_v61  ;;  %v8715_v58 = vcombine.low %v3726_v48, %v3730_v50  ;;  %v8722_v61 = vcombine.high %v3733_v60, %v3737_v54  ;;  %v3778_v47 = vld [vmem:[#allocation8 + $0x578] sm:$0xff]  ;;  %v8755_v50 = vcombine.low %v3766_v36, %v3770_v37 }
 0x388   :  { %7253 = vmatprep.subr.bf16.mxu1 %v8676_v1  ;;  %v8724_v1 = vcombine.high %v3734_v0, %v3738_v55  ;;  %v3782_v60 = vld [vmem:[#allocation8 + $0x598] sm:$0xff] }
 0x389   :  { %v3786_v54 = vld [vmem:[#allocation8 + $0x5b8] sm:$0xff] }
 0x38a   :  { %7082 = vmatpush1.bf16.msra.mxu0 %v8673_v14  ;;  %v3746_v14 = vld [vmem:[#allocation8 + $0x478] sm:$0xff] }
 0x38b   :  { %7254 = vmatpush1.bf16.msra.mxu1 %v8675_v15  ;;  %7083 = vmatprep.subr.bf16.mxu0 %v8682_v16  ;;  %v8723_v15 = vcombine.low %v3734_v0, %v3738_v55  ;;  %v8730_v16 = vcombine.high %v3741_v10, %v3745_v11  ;;  %v8732_v19 = vcombine.high %v3742_v13, %v3746_v14 }
 0x38c   :  { %7255 = vmatprep.subr.bf16.mxu1 %v8684_v17  ;;  %v3749_v17 = vld [vmem:[#allocation8 + $0x490] sm:$0xff]  ;;  %v8763_v55 = vcombine.low %v3774_v44, %v3778_v47 }
 0x38e   :  { %7084 = vmatpush1.bf16.msra.mxu0 %v8681_v22  ;;  %v8729_v22 = vcombine.low %v3741_v10, %v3745_v11  ;;  %v3790_v10 = vld [vmem:[#allocation8 + $0x5d8] sm:$0xff] }
 0x38f   :  { %7256 = vmatpush1.bf16.msra.mxu1 %v8683_v23  ;;  %7085 = vmatprep.subr.bf16.mxu0 %v8690_v24  ;;  %v8731_v23 = vcombine.low %v3742_v13, %v3746_v14  ;;  %v8738_v24 = vcombine.high %v3749_v17, %v3753_v18  ;;  %v3794_v11 = vld [vmem:[#allocation8 + $0x5f8] sm:$0xff]  ;;  %v8771_v13 = vcombine.low %v3782_v60, %v3786_v54 }
 0x390   :  { %7257 = vmatprep.subr.bf16.mxu1 %v8692_v25  ;;  %v8740_v25 = vcombine.high %v3750_v20, %v3754_v21 }
 0x392   :  { %7086 = vmatpush1.bf16.msra.mxu0 %v8689_v31  ;;  %v8737_v31 = vcombine.low %v3749_v17, %v3753_v18  ;;  %v3801_v17 = vld [vmem:[#allocation8 + $0x630] sm:$0xff]  ;;  %v3798_v18 = vld [vmem:[#allocation8 + $0x618] sm:$0xff] }
 0x393   :  { %7258 = vmatpush1.bf16.msra.mxu1 %v8691_v32  ;;  %7087 = vmatprep.subr.bf16.mxu0 %v8698_v33  ;;  %v8746_v32 = vcombine.high %v3757_v26, %v3761_v27  ;;  %v8748_v33 = vcombine.high %v3758_v28, %v3762_v29 }
 0x394   :  { %7259 = vmatprep.subr.bf16.mxu1 %v8700_v34  ;;  %v3765_v34 = vld [vmem:[#allocation8 + $0x510] sm:$0xff] }
 0x395   :  { %v8753_v48 = vcombine.low %v3765_v34, %v3769_v35 }
 0x396   :  { %7088 = vmatpush1.bf16.msra.mxu0 %v8697_v39  ;;  %v8754_v39 = vcombine.high %v3765_v34, %v3769_v35  ;;  %v3814_v34 = vld [vmem:[#allocation8 + $0x698] sm:$0xff] }
 0x397   :  { %7260 = vmatpush1.bf16.msra.mxu1 %v8699_v41  ;;  %7089 = vmatprep.subr.bf16.mxu0 %v8706_v42  ;;  %v8756_v41 = vcombine.high %v3766_v36, %v3770_v37  ;;  %v3773_v42 = vld [vmem:[#allocation8 + $0x550] sm:$0xff]  ;;  %v3818_v35 = vld [vmem:[#allocation8 + $0x6b8] sm:$0xff] }
 0x398   :  { %7261 = vmatprep.subr.bf16.mxu1 %v8708_v43  ;;  %v3777_v43 = vld [vmem:[#allocation8 + $0x570] sm:$0xff] }
 0x399   :  { %v8761_v0 = vcombine.low %v3773_v42, %v3777_v43 }
 0x39a   :  { %7090 = vmatpush1.bf16.msra.mxu0 %v8705_v51  ;;  %v8762_v51 = vcombine.high %v3773_v42, %v3777_v43  ;;  %v3822_v42 = vld [vmem:[#allocation8 + $0x6d8] sm:$0xff] }
 0x39b   :  { %7262 = vmatpush1.bf16.msra.mxu1 %v8707_v52  ;;  %7091 = vmatprep.subr.bf16.mxu0 %v8714_v53  ;;  %v8764_v52 = vcombine.high %v3774_v44, %v3778_v47  ;;  %v3781_v53 = vld [vmem:[#allocation8 + $0x590] sm:$0xff]  ;;  %v3826_v43 = vld [vmem:[#allocation8 + $0x6f8] sm:$0xff]  ;;  %v8803_v47 = vcombine.low %v3814_v34, %v3818_v35 }
 0x39c   :  { %7263 = vmatprep.subr.bf16.mxu1 %v8716_v30  ;;  %v3785_v30 = vld [vmem:[#allocation8 + $0x5b0] sm:$0xff] }
 0x39e   :  { %7092 = vmatpush1.bf16.msra.mxu0 %v8713_v57  ;;  %v8770_v57 = vcombine.high %v3781_v53, %v3785_v30 }
 0x39f   :  { %7264 = vmatpush1.bf16.msra.mxu1 %v8715_v58  ;;  %7104 = vmatprep.subr.bf16.mxu0 %v8722_v61  ;;  %v8772_v58 = vcombine.high %v3782_v60, %v3786_v54  ;;  %v3789_v61 = vld [vmem:[#allocation8 + $0x5d0] sm:$0xff]  ;;  %v8811_v54 = vcombine.low %v3822_v42, %v3826_v43 }
 0x3a0   :  { %7276 = vmatprep.subr.bf16.mxu1 %v8724_v1  ;;  %v3793_v1 = vld [vmem:[#allocation8 + $0x5f0] sm:$0xff] }
 0x3a1   :  { %7094 = vmatmul.mubr.bf16.vlgmr.msra.gmra.mrb[12].mxu0 %v9826_v59  ;;  %v8778_v14 = vcombine.high %v3789_v61, %v3793_v1 }
 0x3a2   :  { %7266 = vmatmul.mubr.bf16.vlgmr.msra.gmra.mrb[12].mxu1 %v9826_v59  ;;  %7105 = vmatpush1.bf16.msra.mxu0 %v8721_v12  ;;  %v8739_v59 = vcombine.low %v3750_v20, %v3754_v21  ;;  %v8769_v12 = vcombine.low %v3781_v53, %v3785_v30  ;;  %v8777_v20 = vcombine.low %v3789_v61, %v3793_v1  ;;  %v3830_v53 = vld [vmem:[#allocation8 + $0x718] sm:$0xff] }
 0x3a3   :  { %7136 = vmatprep.mubr.bf16.mxu0 %v9832_v2  ;;  %7277 = vmatpush1.bf16.msra.mxu1 %v8723_v15  ;;  %v8780_v15 = vcombine.high %v3790_v10, %v3794_v11  ;;  %v8779_v21 = vcombine.low %v3790_v10, %v3794_v11  ;;  %v3834_v30 = vld [vmem:[#allocation8 + $0x738] sm:$0xff] }
 0x3a4   :  { %7308 = vmatprep.mubr.bf16.mxu1 %v9832_v2  ;;  %7106 = vmatprep.subr.bf16.mxu0 %v8730_v16  ;;  %v8745_v2 = vcombine.low %v3757_v26, %v3761_v27  ;;  %v3797_v16 = vld [vmem:[#allocation8 + $0x610] sm:$0xff]  ;;  %v3806_v26 = vld [vmem:[#allocation8 + $0x658] sm:$0xff]  ;;  %v8819_v11 = vcombine.low %v3830_v53, %v3834_v30 }
 0x3a5   :  { %7278 = vmatprep.subr.bf16.mxu1 %v8732_v19  ;;  %v3802_v19 = vld [vmem:[#allocation8 + $0x638] sm:$0xff]  ;;  %v8785_v28 = vcombine.low %v3797_v16, %v3801_v17 }
 0x3a6   :  { %7107 = vmatpush1.bf16.msra.mxu0 %v8729_v22  ;;  %v8786_v22 = vcombine.high %v3797_v16, %v3801_v17  ;;  %v3810_v27 = vld [vmem:[#allocation8 + $0x678] sm:$0xff]  ;;  %v8787_v29 = vcombine.low %v3798_v18, %v3802_v19 }
 0x3a7   :  { %7279 = vmatpush1.bf16.msra.mxu1 %v8731_v23  ;;  %7108 = vmatprep.subr.bf16.mxu0 %v8738_v24  ;;  %v8788_v23 = vcombine.high %v3798_v18, %v3802_v19  ;;  %v3805_v24 = vld [vmem:[#allocation8 + $0x650] sm:$0xff]  ;;  %v8795_v37 = vcombine.low %v3806_v26, %v3810_v27  ;;  %v3838_v61 = vld [vmem:[#allocation8 + $0x758] sm:$0xff] }
 0x3a8   :  { %7280 = vmatprep.subr.bf16.mxu1 %v8740_v25  ;;  %v3809_v25 = vld [vmem:[#allocation8 + $0x670] sm:$0xff]  ;;  %v3842_v1 = vld [vmem:[#allocation8 + $0x778] sm:$0xff] }
 0x3a9   :  { %v8793_v36 = vcombine.low %v3805_v24, %v3809_v25  ;;  %v3846_v16 = vld [vmem:[#allocation8 + $0x798] sm:$0xff]  ;;  %v8827_v19 = vcombine.low %v3838_v61, %v3842_v1 }
 0x3aa   :  { %7109 = vmatpush1.bf16.msra.mxu0 %v8737_v31  ;;  %v8794_v31 = vcombine.high %v3805_v24, %v3809_v25  ;;  %v3850_v17 = vld [vmem:[#allocation8 + $0x7b8] sm:$0xff] }
 0x3ab   :  { %7281 = vmatpush1.bf16.msra.mxu1 %v8739_v59  ;;  %7110 = vmatprep.subr.bf16.mxu0 %v8746_v32  ;;  %v8796_v59 = vcombine.high %v3806_v26, %v3810_v27  ;;  %v3813_v32 = vld [vmem:[#allocation8 + $0x690] sm:$0xff]  ;;  %v3854_v24 = vld [vmem:[#allocation8 + $0x7d8] sm:$0xff]  ;;  %v8835_v27 = vcombine.low %v3846_v16, %v3850_v17 }
 0x3ac   :  { %7282 = vmatprep.subr.bf16.mxu1 %v8748_v33  ;;  %v3817_v33 = vld [vmem:[#allocation8 + $0x6b0] sm:$0xff]  ;;  %v3858_v25 = vld [vmem:[#allocation8 + $0x7f8] sm:$0xff] }
 0x3ad   :  { %v8801_v44 = vcombine.low %v3813_v32, %v3817_v33 }
 0x3ae   :  { %7111 = vmatpush1.bf16.msra.mxu0 %v8745_v2  ;;  %v8802_v2 = vcombine.high %v3813_v32, %v3817_v33  ;;  %v3862_v32 = vld [vmem:[#allocation8 + $0x818] sm:$0xff] }
 0x3af   :  { %7283 = vmatpush1.bf16.msra.mxu1 %v8747_v38  ;;  %7112 = vmatprep.subr.bf16.mxu0 %v8754_v39  ;;  %v8804_v38 = vcombine.high %v3814_v34, %v3818_v35  ;;  %v3821_v39 = vld [vmem:[#allocation8 + $0x6d0] sm:$0xff]  ;;  %v3866_v33 = vld [vmem:[#allocation8 + $0x838] sm:$0xff]  ;;  %v8843_v35 = vcombine.low %v3854_v24, %v3858_v25 }
 0x3b0   :  { %7284 = vmatprep.subr.bf16.mxu1 %v8756_v41  ;;  %v3825_v41 = vld [vmem:[#allocation8 + $0x6f0] sm:$0xff] }
 0x3b1   :  { %v8809_v60 = vcombine.low %v3821_v39, %v3825_v41 }
 0x3b2   :  { %7113 = vmatpush1.bf16.msra.mxu0 %v8753_v48  ;;  %v8810_v48 = vcombine.high %v3821_v39, %v3825_v41  ;;  %v3870_v41 = vld [vmem:[#allocation8 + $0x858] sm:$0xff] }
 0x3b3   :  { %7285 = vmatpush1.bf16.msra.mxu1 %v8755_v50  ;;  %7114 = vmatprep.subr.bf16.mxu0 %v8762_v51  ;;  %v8812_v50 = vcombine.high %v3822_v42, %v3826_v43  ;;  %v3829_v51 = vld [vmem:[#allocation8 + $0x710] sm:$0xff]  ;;  %v3874_v42 = vld [vmem:[#allocation8 + $0x878] sm:$0xff]  ;;  %v8851_v43 = vcombine.low %v3862_v32, %v3866_v33 }
 0x3b4   :  { %7286 = vmatprep.subr.bf16.mxu1 %v8764_v52  ;;  %v3833_v52 = vld [vmem:[#allocation8 + $0x730] sm:$0xff] }
 0x3b5   :  { %v8817_v10 = vcombine.low %v3829_v51, %v3833_v52 }
 0x3b6   :  { %7115 = vmatpush1.bf16.msra.mxu0 %v8761_v0  ;;  %v8818_v0 = vcombine.high %v3829_v51, %v3833_v52  ;;  %v3878_v51 = vld [vmem:[#allocation8 + $0x898] sm:$0xff] }
 0x3b7   :  { %7287 = vmatpush1.bf16.msra.mxu1 %v8763_v55  ;;  %7116 = vmatprep.subr.bf16.mxu0 %v8770_v57  ;;  %v8820_v55 = vcombine.high %v3830_v53, %v3834_v30  ;;  %v3837_v57 = vld [vmem:[#allocation8 + $0x750] sm:$0xff]  ;;  %v3882_v52 = vld [vmem:[#allocation8 + $0x8b8] sm:$0xff]  ;;  %v8859_v30 = vcombine.low %v3870_v41, %v3874_v42 }
 0x3b8   :  { %7288 = vmatprep.subr.bf16.mxu1 %v8772_v58  ;;  %v3841_v58 = vld [vmem:[#allocation8 + $0x770] sm:$0xff] }
 0x3b9   :  { %v8825_v18 = vcombine.low %v3837_v57, %v3841_v58 }
 0x3ba   :  { %7117 = vmatpush1.bf16.msra.mxu0 %v8769_v12  ;;  %v8826_v12 = vcombine.high %v3837_v57, %v3841_v58  ;;  %v3886_v57 = vld [vmem:[#allocation8 + $0x8d8] sm:$0xff] }
 0x3bb   :  { %7289 = vmatpush1.bf16.msra.mxu1 %v8771_v13  ;;  %7118 = vmatprep.subr.bf16.mxu0 %v8778_v14  ;;  %v8828_v13 = vcombine.high %v3838_v61, %v3842_v1  ;;  %v3845_v14 = vld [vmem:[#allocation8 + $0x790] sm:$0xff]  ;;  %v3890_v58 = vld [vmem:[#allocation8 + $0x8f8] sm:$0xff] }
 0x3bc   :  { %7290 = vmatprep.subr.bf16.mxu1 %v8780_v15  ;;  %v3849_v15 = vld [vmem:[#allocation8 + $0x7b0] sm:$0xff] }
 0x3bd   :  { %v8833_v26 = vcombine.low %v3845_v14, %v3849_v15 }
 0x3be   :  { %7119 = vmatpush1.bf16.msra.mxu0 %v8777_v20  ;;  %v8834_v20 = vcombine.high %v3845_v14, %v3849_v15  ;;  %v3898_v14 = vld [vmem:[#allocation8 + $0x938] sm:$0xff]  ;;  %v8875_v15 = vcombine.low %v3886_v57, %v3890_v58 }
 0x3bf   :  { %7291 = vmatpush1.bf16.msra.mxu1 %v8779_v21  ;;  %7120 = vmatprep.subr.bf16.mxu0 %v8786_v22  ;;  %v8836_v21 = vcombine.high %v3846_v16, %v3850_v17  ;;  %v3853_v22 = vld [vmem:[#allocation8 + $0x7d0] sm:$0xff] }
 0x3c0   :  { %7292 = vmatprep.subr.bf16.mxu1 %v8788_v23  ;;  %v3857_v23 = vld [vmem:[#allocation8 + $0x7f0] sm:$0xff] }
 0x3c1   :  { %v8841_v34 = vcombine.low %v3853_v22, %v3857_v23 }
 0x3c2   :  { %7121 = vmatpush1.bf16.msra.mxu0 %v8785_v28  ;;  %v8842_v28 = vcombine.high %v3853_v22, %v3857_v23 }
 0x3c3   :  { %7293 = vmatpush1.bf16.msra.mxu1 %v8787_v29  ;;  %7122 = vmatprep.subr.bf16.mxu0 %v8794_v31  ;;  %v8844_v29 = vcombine.high %v3854_v24, %v3858_v25  ;;  %v3861_v31 = vld [vmem:[#allocation8 + $0x810] sm:$0xff] }
 0x3c4   :  { %7294 = vmatprep.subr.bf16.mxu1 %v8796_v59  ;;  %v3865_v59 = vld [vmem:[#allocation8 + $0x830] sm:$0xff] }
 0x3c5   :  { %v8849_v39 = vcombine.low %v3861_v31, %v3865_v59 }
 0x3c6   :  { %7123 = vmatpush1.bf16.msra.mxu0 %v8793_v36  ;;  %v8850_v36 = vcombine.high %v3861_v31, %v3865_v59 }
 0x3c7   :  { %7295 = vmatpush1.bf16.msra.mxu1 %v8795_v37  ;;  %7124 = vmatprep.subr.bf16.mxu0 %v8802_v2  ;;  %v8852_v37 = vcombine.high %v3862_v32, %v3866_v33  ;;  %v3869_v2 = vld [vmem:[#allocation8 + $0x850] sm:$0xff] }
 0x3c8   :  { %7296 = vmatprep.subr.bf16.mxu1 %v8804_v38  ;;  %v3873_v38 = vld [vmem:[#allocation8 + $0x870] sm:$0xff] }
 0x3c9   :  { %v8857_v53 = vcombine.low %v3869_v2, %v3873_v38 }
 0x3ca   :  { %7125 = vmatpush1.bf16.msra.mxu0 %v8801_v44  ;;  %v8858_v44 = vcombine.high %v3869_v2, %v3873_v38 }
 0x3cb   :  { %7297 = vmatpush1.bf16.msra.mxu1 %v8803_v47  ;;  %7126 = vmatprep.subr.bf16.mxu0 %v8810_v48  ;;  %v3877_v47 = vld [vmem:[#allocation8 + $0x890] sm:$0xff] }
 0x3cc   :  { %7298 = vmatprep.subr.bf16.mxu1 %v8812_v50  ;;  %v3881_v48 = vld [vmem:[#allocation8 + $0x8b0] sm:$0xff]  ;;  %v8860_v50 = vcombine.high %v3870_v41, %v3874_v42 }
 0x3cd   :  { %v8865_v61 = vcombine.low %v3877_v47, %v3881_v48  ;;  %v3925_v42 = vld [vmem:[#allocation8 + $0xa10] sm:$0xff] }
 0x3ce   :  { %7127 = vmatpush1.bf16.msra.mxu0 %v8809_v60  ;;  %v8866_v60 = vcombine.high %v3877_v47, %v3881_v48  ;;  %v3930_v47 = vld [vmem:[#allocation8 + $0xa38] sm:$0xff] }
 0x3cf   :  { %7299 = vmatpush1.bf16.msra.mxu1 %v8811_v54  ;;  %7128 = vmatprep.subr.bf16.mxu0 %v8818_v0  ;;  %v8868_v54 = vcombine.high %v3878_v51, %v3882_v52  ;;  %v3885_v0 = vld [vmem:[#allocation8 + $0x8d0] sm:$0xff] }
 0x3d0   :  { %7300 = vmatprep.subr.bf16.mxu1 %v8820_v55  ;;  %v3889_v55 = vld [vmem:[#allocation8 + $0x8f0] sm:$0xff] }
 0x3d1   :  { %v8874_v1 = vcombine.high %v3885_v0, %v3889_v55 }
 0x3d2   :  { %7129 = vmatpush1.bf16.msra.mxu0 %v8817_v10  ;;  %v8876_v10 = vcombine.high %v3886_v57, %v3890_v58 }
 0x3d3   :  { %7301 = vmatpush1.bf16.msra.mxu1 %v8819_v11  ;;  %7130 = vmatprep.subr.bf16.mxu0 %v8826_v12  ;;  %v3893_v11 = vld [vmem:[#allocation8 + $0x910] sm:$0xff] }
 0x3d4   :  { %7302 = vmatprep.subr.bf16.mxu1 %v8828_v13  ;;  %v3897_v12 = vld [vmem:[#allocation8 + $0x930] sm:$0xff]  ;;  %v3894_v13 = vld [vmem:[#allocation8 + $0x918] sm:$0xff] }
 0x3d5   :  { %v8882_v16 = vcombine.high %v3893_v11, %v3897_v12  ;;  %v8884_v17 = vcombine.high %v3894_v13, %v3898_v14  ;;  %v8881_v22 = vcombine.low %v3893_v11, %v3897_v12  ;;  %v8883_v23 = vcombine.low %v3894_v13, %v3898_v14 }
 0x3d6   :  { %7131 = vmatpush1.bf16.msra.mxu0 %v8825_v18  ;;  %v3901_v18 = vld [vmem:[#allocation8 + $0x950] sm:$0xff] }
 0x3d7   :  { %7303 = vmatpush1.bf16.msra.mxu1 %v8827_v19  ;;  %7132 = vmatprep.subr.bf16.mxu0 %v8834_v20  ;;  %v3905_v19 = vld [vmem:[#allocation8 + $0x970] sm:$0xff]  ;;  %v3902_v20 = vld [vmem:[#allocation8 + $0x958] sm:$0xff] }
 0x3d8   :  { %7304 = vmatprep.subr.bf16.mxu1 %v8836_v21  ;;  %v3906_v21 = vld [vmem:[#allocation8 + $0x978] sm:$0xff]  ;;  %v8890_v24 = vcombine.high %v3901_v18, %v3905_v19  ;;  %v8889_v31 = vcombine.low %v3901_v18, %v3905_v19 }
 0x3d9   :  { %v8892_v25 = vcombine.high %v3902_v20, %v3906_v21  ;;  %v8891_v59 = vcombine.low %v3902_v20, %v3906_v21 }
 0x3da   :  { %7133 = vmatpush1.bf16.msra.mxu0 %v8833_v26  ;;  %v3909_v26 = vld [vmem:[#allocation8 + $0x990] sm:$0xff] }
 0x3db   :  { %7305 = vmatpush1.bf16.msra.mxu1 %v8835_v27  ;;  %7134 = vmatprep.subr.bf16.mxu0 %v8842_v28  ;;  %v3913_v27 = vld [vmem:[#allocation8 + $0x9b0] sm:$0xff]  ;;  %v3910_v28 = vld [vmem:[#allocation8 + $0x998] sm:$0xff] }
 0x3dc   :  { %7306 = vmatprep.subr.bf16.mxu1 %v8844_v29  ;;  %v3914_v29 = vld [vmem:[#allocation8 + $0x9b8] sm:$0xff]  ;;  %v8898_v32 = vcombine.high %v3909_v26, %v3913_v27  ;;  %v8897_v2 = vcombine.low %v3909_v26, %v3913_v27 }
 0x3dd   :  { %v8900_v33 = vcombine.high %v3910_v28, %v3914_v29  ;;  %v8899_v38 = vcombine.low %v3910_v28, %v3914_v29 }
 0x3de   :  { %7135 = vmatpush1.bf16.msra.mxu0 %v8841_v34  ;;  %v3917_v34 = vld [vmem:[#allocation8 + $0x9d0] sm:$0xff] }
 0x3df   :  { %7307 = vmatpush1.bf16.msra.mxu1 %v8843_v35  ;;  %7147 = vmatprep.subr.bf16.mxu0 %v8850_v36  ;;  %v3921_v35 = vld [vmem:[#allocation8 + $0x9f0] sm:$0xff]  ;;  %v3918_v36 = vld [vmem:[#allocation8 + $0x9d8] sm:$0xff] }
 0x3e0   :  { %7319 = vmatprep.subr.bf16.mxu1 %v8852_v37  ;;  %v3922_v37 = vld [vmem:[#allocation8 + $0x9f8] sm:$0xff]  ;;  %v8905_v48 = vcombine.low %v3917_v34, %v3921_v35 }
 0x3e1   :  { %7137 = vmatmul.mubr.bf16.vlgmr.msra.gmra.mrb[12].mxu0 %v9828_v63  ;;  %v8908_v41 = vcombine.high %v3918_v36, %v3922_v37 }
 0x3e2   :  { %7309 = vmatmul.mubr.bf16.vlgmr.msra.gmra.mrb[12].mxu1 %v9828_v63  ;;  %7148 = vmatpush1.bf16.msra.mxu0 %v8849_v39  ;;  %v8867_v63 = vcombine.low %v3878_v51, %v3882_v52  ;;  %v8906_v39 = vcombine.high %v3917_v34, %v3921_v35 }
 0x3e3   :  { %7179 = vmatprep.mubr.bf16.mxu0 %v9870_v46  ;;  %7320 = vmatpush1.bf16.msra.mxu1 %v8851_v43  ;;  %v3929_v43 = vld [vmem:[#allocation8 + $0xa30] sm:$0xff] }
 0x3e4   :  { %7351 = vmatprep.mubr.bf16.mxu1 %v9870_v46  ;;  %7149 = vmatprep.subr.bf16.mxu0 %v8858_v44  ;;  %v8873_v46 = vcombine.low %v3885_v0, %v3889_v55  ;;  %v3926_v44 = vld [vmem:[#allocation8 + $0xa18] sm:$0xff]  ;;  %v8914_v51 = vcombine.high %v3925_v42, %v3929_v43  ;;  %v8913_v0 = vcombine.low %v3925_v42, %v3929_v43 }
 0x3e5   :  { %7321 = vmatprep.subr.bf16.mxu1 %v8860_v50  ;;  %v8907_v50 = vcombine.low %v3918_v36, %v3922_v37  ;;  %v8916_v52 = vcombine.high %v3926_v44, %v3930_v47  ;;  %v8915_v55 = vcombine.low %v3926_v44, %v3930_v47 }
 0x3e6   :  { %7150 = vmatpush1.bf16.msra.mxu0 %v8857_v53  ;;  %v3933_v53 = vld [vmem:[#allocation8 + $0xa50] sm:$0xff] }
 0x3e7   :  { %7322 = vmatpush1.bf16.msra.mxu1 %v8859_v30  ;;  %7151 = vmatprep.subr.bf16.mxu0 %v8866_v60  ;;  %v3937_v30 = vld [vmem:[#allocation8 + $0xa70] sm:$0xff]  ;;  %v3934_v60 = vld [vmem:[#allocation8 + $0xa58] sm:$0xff] }
 0x3e8   :  { %7323 = vmatprep.subr.bf16.mxu1 %v8868_v54  ;;  %v3938_v54 = vld [vmem:[#allocation8 + $0xa78] sm:$0xff]  ;;  %v8922_v57 = vcombine.high %v3933_v53, %v3937_v30  ;;  %v8921_v11 = vcombine.low %v3933_v53, %v3937_v30 }
 0x3e9   :  { %v8924_v58 = vcombine.high %v3934_v60, %v3938_v54  ;;  %v8923_v12 = vcombine.low %v3934_v60, %v3938_v54 }
 0x3ea   :  { %7152 = vmatpush1.bf16.msra.mxu0 %v8865_v61  ;;  %v3941_v61 = vld [vmem:[#allocation8 + $0xa90] sm:$0xff] }
 0x3eb   :  { %7324 = vmatpush1.bf16.msra.mxu1 %v8867_v63  ;;  %7153 = vmatprep.subr.bf16.mxu0 %v8874_v1  ;;  %v3945_v63 = vld [vmem:[#allocation8 + $0xab0] sm:$0xff]  ;;  %v3942_v1 = vld [vmem:[#allocation8 + $0xa98] sm:$0xff] }
 0x3ec   :  { %7325 = vmatprep.subr.bf16.mxu1 %v8876_v10  ;;  %v3946_v10 = vld [vmem:[#allocation8 + $0xab8] sm:$0xff]  ;;  %v8930_v13 = vcombine.high %v3941_v61, %v3945_v63  ;;  %v8929_v18 = vcombine.low %v3941_v61, %v3945_v63 }
 0x3ed   :  { %v8932_v14 = vcombine.high %v3942_v1, %v3946_v10  ;;  %v8931_v19 = vcombine.low %v3942_v1, %v3946_v10 }
 0x3ee   :  { %7154 = vmatpush1.bf16.msra.mxu0 %v8873_v46  ;;  %v3949_v46 = vld [vmem:[#allocation8 + $0xad0] sm:$0xff] }
 0x3ef   :  { %7326 = vmatpush1.bf16.msra.mxu1 %v8875_v15  ;;  %7155 = vmatprep.subr.bf16.mxu0 %v8882_v16  ;;  %v3953_v15 = vld [vmem:[#allocation8 + $0xaf0] sm:$0xff]  ;;  %v3950_v16 = vld [vmem:[#allocation8 + $0xad8] sm:$0xff] }
 0x3f0   :  { %7327 = vmatprep.subr.bf16.mxu1 %v8884_v17  ;;  %v3954_v17 = vld [vmem:[#allocation8 + $0xaf8] sm:$0xff]  ;;  %v8938_v20 = vcombine.high %v3949_v46, %v3953_v15  ;;  %v8937_v26 = vcombine.low %v3949_v46, %v3953_v15 }
 0x3f1   :  { %v8940_v21 = vcombine.high %v3950_v16, %v3954_v17  ;;  %v8939_v27 = vcombine.low %v3950_v16, %v3954_v17  ;;  %v4002_v46 = vld [vmem:[#allocation8 + $0xc78] sm:$0xff]  ;;  %v4005_v17 = vld [vmem:[#allocation8 + $0xc90] sm:$0xff] }
 0x3f2   :  { %7156 = vmatpush1.bf16.msra.mxu0 %v8881_v22  ;;  %v3957_v22 = vld [vmem:[#allocation8 + $0xb10] sm:$0xff] }
 0x3f3   :  { %7328 = vmatpush1.bf16.msra.mxu1 %v8883_v23  ;;  %7157 = vmatprep.subr.bf16.mxu0 %v8890_v24  ;;  %v3961_v23 = vld [vmem:[#allocation8 + $0xb30] sm:$0xff]  ;;  %v3958_v24 = vld [vmem:[#allocation8 + $0xb18] sm:$0xff] }
 0x3f4   :  { %7329 = vmatprep.subr.bf16.mxu1 %v8892_v25  ;;  %v3962_v25 = vld [vmem:[#allocation8 + $0xb38] sm:$0xff]  ;;  %v8946_v28 = vcombine.high %v3957_v22, %v3961_v23  ;;  %v8945_v34 = vcombine.low %v3957_v22, %v3961_v23 }
 0x3f5   :  { %v8948_v29 = vcombine.high %v3958_v24, %v3962_v25  ;;  %v8947_v35 = vcombine.low %v3958_v24, %v3962_v25 }
 0x3f6   :  { %7158 = vmatpush1.bf16.msra.mxu0 %v8889_v31  ;;  %v3965_v31 = vld [vmem:[#allocation8 + $0xb50] sm:$0xff] }
 0x3f7   :  { %7330 = vmatpush1.bf16.msra.mxu1 %v8891_v59  ;;  %7159 = vmatprep.subr.bf16.mxu0 %v8898_v32  ;;  %v3969_v59 = vld [vmem:[#allocation8 + $0xb70] sm:$0xff]  ;;  %v3966_v32 = vld [vmem:[#allocation8 + $0xb58] sm:$0xff] }
 0x3f8   :  { %7331 = vmatprep.subr.bf16.mxu1 %v8900_v33  ;;  %v3970_v33 = vld [vmem:[#allocation8 + $0xb78] sm:$0xff]  ;;  %v8954_v36 = vcombine.high %v3965_v31, %v3969_v59  ;;  %v8953_v42 = vcombine.low %v3965_v31, %v3969_v59 }
 0x3f9   :  { %v8956_v37 = vcombine.high %v3966_v32, %v3970_v33  ;;  %v8955_v43 = vcombine.low %v3966_v32, %v3970_v33  ;;  %v4021_v33 = vld [vmem:[#allocation8 + $0xd10] sm:$0xff] }
 0x3fa   :  { %7160 = vmatpush1.bf16.msra.mxu0 %v8897_v2  ;;  %v3973_v2 = vld [vmem:[#allocation8 + $0xb90] sm:$0xff] }
 0x3fb   :  { %7332 = vmatpush1.bf16.msra.mxu1 %v8899_v38  ;;  %7161 = vmatprep.subr.bf16.mxu0 %v8906_v39  ;;  %v3977_v38 = vld [vmem:[#allocation8 + $0xbb0] sm:$0xff]  ;;  %v3974_v39 = vld [vmem:[#allocation8 + $0xb98] sm:$0xff] }
 0x3fc   :  { %7333 = vmatprep.subr.bf16.mxu1 %v8908_v41  ;;  %v3978_v41 = vld [vmem:[#allocation8 + $0xbb8] sm:$0xff]  ;;  %v8962_v44 = vcombine.high %v3973_v2, %v3977_v38  ;;  %v8961_v53 = vcombine.low %v3973_v2, %v3977_v38 }
 0x3fd   :  { %v8964_v47 = vcombine.high %v3974_v39, %v3978_v41  ;;  %v8963_v30 = vcombine.low %v3974_v39, %v3978_v41  ;;  %v4029_v39 = vld [vmem:[#allocation8 + $0xd50] sm:$0xff] }
 0x3fe   :  { %7162 = vmatpush1.bf16.msra.mxu0 %v8905_v48  ;;  %v3981_v48 = vld [vmem:[#allocation8 + $0xbd0] sm:$0xff] }
 0x3ff   :  { %7334 = vmatpush1.bf16.msra.mxu1 %v8907_v50  ;;  %7163 = vmatprep.subr.bf16.mxu0 %v8914_v51  ;;  %v3985_v50 = vld [vmem:[#allocation8 + $0xbf0] sm:$0xff]  ;;  %v3982_v51 = vld [vmem:[#allocation8 + $0xbd8] sm:$0xff] }
 0x400   :  { %7335 = vmatprep.subr.bf16.mxu1 %v8916_v52  ;;  %v3986_v52 = vld [vmem:[#allocation8 + $0xbf8] sm:$0xff]  ;;  %v8970_v60 = vcombine.high %v3981_v48, %v3985_v50  ;;  %v8969_v61 = vcombine.low %v3981_v48, %v3985_v50  ;;  %v4033_v41 = vld [vmem:[#allocation8 + $0xd70] sm:$0xff] }
 0x401   :  { %v8972_v54 = vcombine.high %v3982_v51, %v3986_v52  ;;  %v8971_v63 = vcombine.low %v3982_v51, %v3986_v52  ;;  %v9018_v50 = vcombine.high %v4029_v39, %v4033_v41  ;;  %v4037_v52 = vld [vmem:[#allocation8 + $0xd90] sm:$0xff] }
 0x402   :  { %7164 = vmatpush1.bf16.msra.mxu0 %v8913_v0  ;;  %v3989_v0 = vld [vmem:[#allocation8 + $0xc10] sm:$0xff] }
 0x403   :  { %7336 = vmatpush1.bf16.msra.mxu1 %v8915_v55  ;;  %7165 = vmatprep.subr.bf16.mxu0 %v8922_v57  ;;  %v3993_v55 = vld [vmem:[#allocation8 + $0xc30] sm:$0xff]  ;;  %v3990_v57 = vld [vmem:[#allocation8 + $0xc18] sm:$0xff] }
 0x404   :  { %7337 = vmatprep.subr.bf16.mxu1 %v8924_v58  ;;  %v3994_v58 = vld [vmem:[#allocation8 + $0xc38] sm:$0xff]  ;;  %v8978_v1 = vcombine.high %v3989_v0, %v3993_v55 }
 0x405   :  { %v8980_v10 = vcombine.high %v3990_v57, %v3994_v58  ;;  %v8979_v15 = vcombine.low %v3990_v57, %v3994_v58  ;;  %v9017_v58 = vcombine.low %v4029_v39, %v4033_v41 }
 0x406   :  { %7166 = vmatpush1.bf16.msra.mxu0 %v8921_v11  ;;  %v3997_v11 = vld [vmem:[#allocation8 + $0xc50] sm:$0xff] }
 0x407   :  { %7338 = vmatpush1.bf16.msra.mxu1 %v8923_v12  ;;  %7167 = vmatprep.subr.bf16.mxu0 %v8930_v13  ;;  %v4001_v12 = vld [vmem:[#allocation8 + $0xc70] sm:$0xff]  ;;  %v8977_v13 = vcombine.low %v3989_v0, %v3993_v55  ;;  %v4042_v0 = vld [vmem:[#allocation8 + $0xdb8] sm:$0xff] }
 0x408   :  { %7339 = vmatprep.subr.bf16.mxu1 %v8932_v14  ;;  %v3998_v14 = vld [vmem:[#allocation8 + $0xc58] sm:$0xff]  ;;  %v8986_v16 = vcombine.high %v3997_v11, %v4001_v12  ;;  %v8985_v22 = vcombine.low %v3997_v11, %v4001_v12 }
 0x409   :  { %v8987_v23 = vcombine.low %v3998_v14, %v4002_v46 }
 0x40a   :  { %7168 = vmatpush1.bf16.msra.mxu0 %v8929_v18  ;;  %v4009_v18 = vld [vmem:[#allocation8 + $0xcb0] sm:$0xff] }
 0x40b   :  { %7340 = vmatpush1.bf16.msra.mxu1 %v8931_v19  ;;  %7169 = vmatprep.subr.bf16.mxu0 %v8938_v20  ;;  %v8988_v19 = vcombine.high %v3998_v14, %v4002_v46  ;;  %v4006_v20 = vld [vmem:[#allocation8 + $0xc98] sm:$0xff]  ;;  %v8994_v24 = vcombine.high %v4005_v17, %v4009_v18  ;;  %v8993_v31 = vcombine.low %v4005_v17, %v4009_v18 }
 0x40c   :  { %7341 = vmatprep.subr.bf16.mxu1 %v8940_v21  ;;  %v4010_v21 = vld [vmem:[#allocation8 + $0xcb8] sm:$0xff] }
 0x40d   :  { %v8996_v25 = vcombine.high %v4006_v20, %v4010_v21 }
 0x40e   :  { %7170 = vmatpush1.bf16.msra.mxu0 %v8937_v26  ;;  %v4013_v26 = vld [vmem:[#allocation8 + $0xcd0] sm:$0xff] }
 0x40f   :  { %7342 = vmatpush1.bf16.msra.mxu1 %v8939_v27  ;;  %7171 = vmatprep.subr.bf16.mxu0 %v8946_v28  ;;  %v4017_v27 = vld [vmem:[#allocation8 + $0xcf0] sm:$0xff]  ;;  %v4014_v28 = vld [vmem:[#allocation8 + $0xcd8] sm:$0xff] }
 0x410   :  { %7343 = vmatprep.subr.bf16.mxu1 %v8948_v29  ;;  %v4018_v29 = vld [vmem:[#allocation8 + $0xcf8] sm:$0xff]  ;;  %v9002_v59 = vcombine.high %v4013_v26, %v4017_v27 }
 0x411   :  { %v9004_v32 = vcombine.high %v4014_v28, %v4018_v29 }
 0x412   :  { %7172 = vmatpush1.bf16.msra.mxu0 %v8945_v34  ;;  %v4025_v34 = vld [vmem:[#allocation8 + $0xd30] sm:$0xff] }
 0x413   :  { %7344 = vmatpush1.bf16.msra.mxu1 %v8947_v35  ;;  %7173 = vmatprep.subr.bf16.mxu0 %v8954_v36  ;;  %v4022_v35 = vld [vmem:[#allocation8 + $0xd18] sm:$0xff]  ;;  %v9010_v2 = vcombine.high %v4021_v33, %v4025_v34 }
 0x414   :  { %7345 = vmatprep.subr.bf16.mxu1 %v8956_v37  ;;  %v4026_v36 = vld [vmem:[#allocation8 + $0xd38] sm:$0xff]  ;;  %v9003_v37 = vcombine.low %v4014_v28, %v4018_v29 }
 0x415   :  { %v9012_v38 = vcombine.high %v4022_v35, %v4026_v36  ;;  %v9011_v48 = vcombine.low %v4022_v35, %v4026_v36  ;;  %v4054_v36 = vld [vmem:[#allocation8 + $0xe18] sm:$0xff] }
 0x416   :  { %7174 = vmatpush1.bf16.msra.mxu0 %v8953_v42  ;;  %v4030_v42 = vld [vmem:[#allocation8 + $0xd58] sm:$0xff] }
 0x417   :  { %7346 = vmatpush1.bf16.msra.mxu1 %v8955_v43  ;;  %7175 = vmatprep.subr.bf16.mxu0 %v8962_v44  ;;  %v4034_v43 = vld [vmem:[#allocation8 + $0xd78] sm:$0xff]  ;;  %v9009_v44 = vcombine.low %v4021_v33, %v4025_v34 }
 0x418   :  { %7347 = vmatprep.subr.bf16.mxu1 %v8964_v47  ;;  %v9900_v47 = vld [vmem:[#allocation10] sm:$0xff]  ;;  %v9020_v51 = vcombine.high %v4030_v42, %v4034_v43 }
 0x419   :  { %v4124_v55 = vrot.slane %v9900_v47, %v581_v4  ;;  %v4132_v57 = vrot.slane %v9900_v47, %v589_v6 }
 0x41a   :  { %7176 = vmatpush1.bf16.msra.mxu0 %v8961_v53  ;;  %v4041_v53 = vld [vmem:[#allocation8 + $0xdb0] sm:$0xff] }
 0x41b   :  { %7348 = vmatpush1.bf16.msra.mxu1 %v8963_v30  ;;  %7177 = vmatprep.subr.bf16.mxu0 %v8970_v60  ;;  %v4120_v30 = vrot.slane %v9900_v47, %v577_v62  ;;  %v4128_v60 = vrot.slane %v9900_v47, %v585_v3  ;;  %v9026_v62 = vcombine.high %v4037_v52, %v4041_v53 }
 0x41c   :  { %7349 = vmatprep.subr.bf16.mxu1 %v8972_v54  ;;  %v4038_v54 = vld [vmem:[#allocation8 + $0xd98] sm:$0xff]  ;;  %v9025_v4 = vcombine.low %v4037_v52, %v4041_v53  ;;  %v4065_v52 = vld [vmem:[#allocation8 + $0xe70] sm:$0xff] }
 0x41d   :  { %v9028_v11 = vcombine.high %v4038_v54, %v4042_v0  ;;  %v4062_v53 = vld [vmem:[#allocation8 + $0xe58] sm:$0xff] }
 0x41e   :  { %7178 = vmatpush1.bf16.msra.mxu0 %v8969_v61  ;;  %v9019_v61 = vcombine.low %v4030_v42, %v4034_v43 }
 0x41f   :  { %7350 = vmatpush1.bf16.msra.mxu1 %v8971_v63  ;;  %7190 = vmatprep.subr.bf16.mxu0 %v8978_v1  ;;  %v4045_v63 = vld [vmem:[#allocation8 + $0xdd0] sm:$0xff] }
 0x420   :  { %7362 = vmatprep.subr.bf16.mxu1 %v8980_v10  ;;  %v4049_v1 = vld [vmem:[#allocation8 + $0xdf0] sm:$0xff] }
 0x421   :  { %7180 = vmatmul.mubr.bf16.vlgmr.msra.gmra.mrb[12].mxu0 %v9866_v40 }
 0x422   :  { %7352 = vmatmul.mubr.bf16.vlgmr.msra.gmra.mrb[12].mxu1 %v9866_v40  ;;  %7191 = vmatpush1.bf16.msra.mxu0 %v8977_v13  ;;  %v8995_v40 = vcombine.low %v4006_v20, %v4010_v21  ;;  %v9027_v20 = vcombine.low %v4038_v54, %v4042_v0  ;;  %v9033_v21 = vcombine.low %v4045_v63, %v4049_v1 }
 0x423   :  { %7222 = vmatprep.mubr.bf16.mxu0 %v9876_v49  ;;  %7363 = vmatpush1.bf16.msra.mxu1 %v8979_v15  ;;  %v4046_v15 = vld [vmem:[#allocation8 + $0xdd8] sm:$0xff] }
 0x424   :  { %7394 = vmatprep.mubr.bf16.mxu1 %v9876_v49  ;;  %7192 = vmatprep.subr.bf16.mxu0 %v8986_v16  ;;  %v9001_v49 = vcombine.low %v4013_v26, %v4017_v27  ;;  %v4050_v16 = vld [vmem:[#allocation8 + $0xdf8] sm:$0xff]  ;;  %v9034_v26 = vcombine.high %v4045_v63, %v4049_v1 }
 0x425   :  { %7364 = vmatprep.subr.bf16.mxu1 %v8988_v19  ;;  %v9035_v29 = vcombine.low %v4046_v15, %v4050_v16 }
 0x426   :  { %7193 = vmatpush1.bf16.msra.mxu0 %v8985_v22 }
 0x427   :  { %7365 = vmatpush1.bf16.msra.mxu1 %v8987_v23  ;;  %7194 = vmatprep.subr.bf16.mxu0 %v8994_v24 }
 0x428   :  { %7366 = vmatprep.subr.bf16.mxu1 %v8996_v25 }
 0x42a   :  { %7195 = vmatpush1.bf16.msra.mxu0 %v8993_v31  ;;  %v9036_v31 = vcombine.high %v4046_v15, %v4050_v16 }
 0x42b   :  { %7367 = vmatpush1.bf16.msra.mxu1 %v8995_v40  ;;  %7196 = vmatprep.subr.bf16.mxu0 %v9002_v59  ;;  %v4053_v40 = vld [vmem:[#allocation8 + $0xe10] sm:$0xff] }
 0x42c   :  { %7368 = vmatprep.subr.bf16.mxu1 %v9004_v32  ;;  %v4057_v59 = vld [vmem:[#allocation8 + $0xe30] sm:$0xff] }
 0x42d   :  { %v9042_v43 = vcombine.high %v4053_v40, %v4057_v59 }
 0x42e   :  { %7197 = vmatpush1.bf16.msra.mxu0 %v9001_v49  ;;  %v4058_v49 = vld [vmem:[#allocation8 + $0xe38] sm:$0xff] }
 0x42f   :  { %7369 = vmatpush1.bf16.msra.mxu1 %v9003_v37  ;;  %7198 = vmatprep.subr.bf16.mxu0 %v9010_v2  ;;  %v9043_v54 = vcombine.low %v4054_v36, %v4058_v49 }
 0x430   :  { %7370 = vmatprep.subr.bf16.mxu1 %v9012_v38 }
 0x432   :  { %7199 = vmatpush1.bf16.msra.mxu0 %v9009_v44 }
 0x433   :  { %7371 = vmatpush1.bf16.msra.mxu1 %v9011_v48  ;;  %7200 = vmatprep.subr.bf16.mxu0 %v9018_v50  ;;  %v9044_v50 = vcombine.high %v4054_v36, %v4058_v49 }
 0x434   :  { %v6880_v10 = vpop.f32.mrb[8].mxu0  ;;  %v7052_v3 = vpop.f32.mrb[8].mxu1  ;;  %7372 = vmatprep.subr.bf16.mxu1 %v9020_v51  ;;  %v4061_v51 = vld [vmem:[#allocation8 + $0xe50] sm:$0xff] }
 0x435   :  { %v9270_v12 = vadd.f32 %v6880_v10, %v4120_v30  ;;  %v9274_v13 = vadd.f32 %v7052_v3, %v4128_v60  ;;  %v6882_v14 = vpop.f32.mrb[9].mxu0  ;;  %v7054_v46 = vpop.f32.mrb[9].mxu1  ;;  %v9050_v0 = vcombine.high %v4061_v51, %v4065_v52  ;;  %v9049_v63 = vcombine.low %v4061_v51, %v4065_v52 }
 0x436   :  { %v9271_v17 = vadd.f32 %v6882_v14, %v4124_v55  ;;  %v9275_v6 = vadd.f32 %v7054_v46, %v4132_v57  ;;  %v6884_v18 = vpop.f32.mrb[10].mxu0  ;;  %v7056_v19 = vpop.f32.mrb[10].mxu1  ;;  %7201 = vmatpush1.bf16.msra.mxu0 %v9017_v58  ;;  %v4073_v58 = vld [vmem:[#allocation8 + $0xeb0] sm:$0xff]  ;;  %v4082_v14 = vld [vmem:[#allocation8 + $0xef8] sm:$0xff] }
 0x437   :  { %v9272_v22 = vadd.f32 %v6884_v18, %v4120_v30  ;;  %v9276_v23 = vadd.f32 %v7056_v19, %v4128_v60  ;;  %7373 = vmatpush1.bf16.msra.mxu1 %v9019_v61  ;;  %v6886_v24 = vpop.f32.mrb[11].mxu0  ;;  %v7058_v25 = vpop.f32.mrb[11].mxu1  ;;  %7202 = vmatprep.subr.bf16.mxu0 %v9026_v62  ;;  %v7405_v32 = vmax.f32 %v9270_v12, 0.0  ;;  %v7407_v33 = vmax.f32 %v9274_v13, 0.0  ;;  %v4066_v30 = vld [vmem:[#allocation8 + $0xe78] sm:$0xff]  ;;  %v4081_v12 = vld [vmem:[#allocation8 + $0xef0] sm:$0xff] }
 0x438   :  { %v9273_v27 = vadd.f32 %v6886_v24, %v4124_v55  ;;  %v9277_v28 = vadd.f32 %v7058_v25, %v4132_v57  ;;  %7374 = vmatprep.subr.bf16.mxu1 %v9028_v11  ;;  %v7406_v37 = vmax.f32 %v9271_v17, 0.0  ;;  %v7408_v2 = vmax.f32 %v9275_v6, 0.0  ;;  %v4069_v57 = vld [vmem:[#allocation8 + $0xe90] sm:$0xff]  ;;  %v4070_v61 = vld [vmem:[#allocation8 + $0xe98] sm:$0xff] }
 0x439   :  { %v7413_v34 = vmax.f32 %v9272_v22, 0.0  ;;  %v7415_v35 = vmax.f32 %v9276_v23, 0.0  ;;  %v9041_v60 = vcombine.low %v4053_v40, %v4057_v59  ;;  %v9052_v55 = vcombine.high %v4062_v53, %v4066_v30  ;;  %v4074_v62 = vld [vmem:[#allocation8 + $0xeb8] sm:$0xff]  ;;  %v4077_v11 = vld [vmem:[#allocation8 + $0xed0] sm:$0xff] }
 0x43a   :  { %v7414_v38 = vmax.f32 %v9273_v27, 0.0  ;;  %v7416_v39 = vmax.f32 %v9277_v28, 0.0  ;;  %7203 = vmatpush1.bf16.msra.mxu0 %v9025_v4  ;;  %v9051_v1 = vcombine.low %v4062_v53, %v4066_v30  ;;  %v9058_v10 = vcombine.high %v4069_v57, %v4073_v58  ;;  %v4078_v13 = vld [vmem:[#allocation8 + $0xed8] sm:$0xff]  ;;  %v4085_v17 = vld [vmem:[#allocation8 + $0xf10] sm:$0xff] }
 0x43b   :  { %v9914_v41 = vpack.c.bf16 %v7413_v34, %v7405_v32  ;;  %v9916_v42 = vpack.c.bf16 %v7415_v35, %v7407_v33  ;;  %7375 = vmatpush1.bf16.msra.mxu1 %v9027_v20  ;;  %7204 = vmatprep.subr.bf16.mxu0 %v9034_v26  ;;  %v9060_v3 = vcombine.high %v4070_v61, %v4074_v62  ;;  %v4089_v6 = vld [vmem:[#allocation8 + $0xf30] sm:$0xff]  ;;  %v4086_v18 = vld [vmem:[#allocation8 + $0xf18] sm:$0xff] }
 0x43c   :  { %v9918_v44 = vpack.c.bf16 %v7414_v38, %v7406_v37  ;;  %v9920_v48 = vpack.c.bf16 %v7416_v39, %v7408_v2  ;;  %7376 = vmatprep.subr.bf16.mxu1 %v9036_v31  ;;  %v9057_v46 = vcombine.low %v4069_v57, %v4073_v58  ;;  %v9059_v4 = vcombine.low %v4070_v61, %v4074_v62  ;;  %v4090_v19 = vld [vmem:[#allocation8 + $0xf38] sm:$0xff]  ;;  %v4093_v24 = vld [vmem:[#allocation8 + $0xf50] sm:$0xff]  ;;  %v9412_v57 = vld [vmem:[#allocation11 + $0x80] sm:$0xff]  }
 0x43d   :  { %v9066_v15 = vcombine.high %v4077_v11, %v4081_v12  ;;  %v9068_v16 = vcombine.high %v4078_v13, %v4082_v14  ;;  %v9065_v20 = vcombine.low %v4077_v11, %v4081_v12  ;;  %v9074_v22 = vcombine.high %v4085_v17, %v4089_v6  ;;  %v4097_v25 = vld [vmem:[#allocation8 + $0xf70] sm:$0xff]  ;;  %v4094_v26 = vld [vmem:[#allocation8 + $0xf58] sm:$0xff]  ;;  %v9421_v12 = vld [vmem:[#allocation11 + $0x58] sm:$0xff]  }
 0x43e   :  { %7205 = vmatpush1.bf16.msra.mxu0 %v9033_v21  ;;  %v9067_v21 = vcombine.low %v4078_v13, %v4082_v14  ;;  %v9076_v23 = vcombine.high %v4086_v18, %v4090_v19  ;;  %v4098_v27 = vld [vmem:[#allocation8 + $0xf78] sm:$0xff]  ;;  %v9073_v28 = vcombine.low %v4085_v17, %v4089_v6  ;;  %v9082_v31 = vcombine.high %v4093_v24, %v4097_v25  ;;  %v4101_v59 = vld [vmem:[#allocation8 + $0xf90] sm:$0xff]  ;;  %v9423_v13 = vld [vmem:[#allocation11 + $0x18] sm:$0xff]  }
 0x43f   :  { %7377 = vmatpush1.bf16.msra.mxu1 %v9035_v29  ;;  %7206 = vmatprep.subr.bf16.mxu0 %v9042_v43  ;;  %v9075_v29 = vcombine.low %v4086_v18, %v4090_v19  ;;  %v9084_v40 = vcombine.high %v4094_v26, %v4098_v27  ;;  %v4105_v32 = vld [vmem:[#allocation8 + $0xfb0] sm:$0xff]  ;;  %v4102_v33 = vld [vmem:[#allocation8 + $0xf98] sm:$0xff]  ;;  %v9081_v35 = vcombine.low %v4093_v24, %v4097_v25  ;;  %v9425_v14 = vld [vmem:[#allocation11 + $0x60] sm:$0xff]  }
 0x440   :  { %7378 = vmatprep.subr.bf16.mxu1 %v9044_v50  ;;  %v4106_v34 = vld [vmem:[#allocation8 + $0xfb8] sm:$0xff]  ;;  %v9083_v36 = vcombine.low %v4094_v26, %v4098_v27  ;;  %v9090_v49 = vcombine.high %v4101_v59, %v4105_v32  ;;  %v4109_v2 = vld [vmem:[#allocation8 + $0xfd0] sm:$0xff]  ;;  %v9089_v50 = vcombine.low %v4101_v59, %v4105_v32  ;;  %v9439_v24 = vld [vmem:[#allocation11 + $0x38] sm:$0xff]  }
 0x441   :  { %v9092_v37 = vcombine.high %v4102_v33, %v4106_v34  ;;  %v4113_v38 = vld [vmem:[#allocation8 + $0xff0] sm:$0xff]  ;;  %v4110_v39 = vld [vmem:[#allocation8 + $0xfd8] sm:$0xff]  ;;  %v9091_v51 = vcombine.low %v4102_v33, %v4106_v34  ;;  %v9440_v25 = vld [vmem:[#allocation11 + $0xb8] sm:$0xff]  }
 0x442   :  { %7207 = vmatpush1.bf16.msra.mxu0 %v9041_v60  ;;  %v4114_v43 = vld [vmem:[#allocation8 + $0xff8] sm:$0xff]  ;;  %v9098_v52 = vcombine.high %v4109_v2, %v4113_v38  ;;  %v9097_v30 = vcombine.low %v4109_v2, %v4113_v38  ;;  %v9413_v58 = vld [vmem:[#allocation11 + $0x48] sm:$0xff]   ;;  %v9441_v26 = vld [vmem:[#allocation11 + $0x140] sm:$0xff]  }
 0x443   :  { %7379 = vmatpush1.bf16.msra.mxu1 %v9043_v54  ;;  %7208 = vmatprep.subr.bf16.mxu0 %v9050_v0  ;;  %v9100_v53 = vcombine.high %v4110_v39, %v4114_v43  ;;  %v9099_v60 = vcombine.low %v4110_v39, %v4114_v43  ;;  %v9409_v54 = vld [vmem:[#allocation11 + $0x40] sm:$0xff]   ;;  %v9414_v61 = vld [vmem:[#allocation11 + $0xc8] sm:$0xff]   ;;  %v9420_v11 = vld [vmem:[#allocation11 + $0x90] sm:$0xff]  }
 0x444   :  { %7380 = vmatprep.subr.bf16.mxu1 %v9052_v55  ;;  %v9410_v0 = vld [vmem:[#allocation11 + $0xc0] sm:$0xff]   ;;  %v9415_v62 = vld [vmem:[#allocation11 + $0x8] sm:$0xff]   ;;  %v9433_v18 = vld [vmem:[#allocation11 + $0x70] sm:$0xff]  }
 0x445   :  { %v9411_v55 = vld [vmem:[#allocation11] sm:$0xff]   ;;  %v9431_v17 = vld [vmem:[#allocation11 + $0x28] sm:$0xff]   ;;  %v9434_v19 = vld [vmem:[#allocation11 + $0xf0] sm:$0xff]  }
 0x446   :  { %7209 = vmatpush1.bf16.msra.mxu0 %v9049_v63  ;;  %v9416_v63 = vld [vmem:[#allocation11 + $0x88] sm:$0xff]   ;;  %v9442_v27 = vld [vmem:[#allocation11 + $0x1c0] sm:$0xff]   ;;  %v9449_v33 = vld [vmem:[#allocation11 + $0x150] sm:$0xff]  }
 0x447   :  { %7381 = vmatpush1.bf16.msra.mxu1 %v9051_v1  ;;  %7210 = vmatprep.subr.bf16.mxu0 %v9058_v10  ;;  %v9417_v1 = vld [vmem:[#allocation11 + $0x50] sm:$0xff]   ;;  %v9432_v6 = vld [vmem:[#allocation11 + $0xa8] sm:$0xff]   ;;  %v9457_v2 = vld [vmem:[#allocation11 + $0x160] sm:$0xff]  }
 0x448   :  { %7382 = vmatprep.subr.bf16.mxu1 %v9060_v3  ;;  %v9418_v10 = vld [vmem:[#allocation11 + $0xd0] sm:$0xff]   ;;  %v9447_v59 = vld [vmem:[#allocation11 + $0x108] sm:$0xff]   ;;  %v9458_v38 = vld [vmem:[#allocation11 + $0x1e0] sm:$0xff]  }
 0x449   :  { %v9419_v3 = vld [vmem:[#allocation11 + $0x10] sm:$0xff]   ;;  %v9448_v32 = vld [vmem:[#allocation11 + $0x188] sm:$0xff]   ;;  %v9459_v39 = vld [vmem:[#allocation11 + $0x120] sm:$0xff]  }
 0x44a   :  { %7211 = vmatpush1.bf16.msra.mxu0 %v9057_v46  ;;  %v9426_v46 = vld [vmem:[#allocation11 + $0xe0] sm:$0xff]   ;;  %v9450_v34 = vld [vmem:[#allocation11 + $0x1d0] sm:$0xff]  }
 0x44b   :  { %7383 = vmatpush1.bf16.msra.mxu1 %v9059_v4  ;;  %7212 = vmatprep.subr.bf16.mxu0 %v9066_v15  ;;  %v9428_v4 = vld [vmem:[#allocation11 + $0xa0] sm:$0xff]   ;;  %v9429_v15 = vld [vmem:[#allocation11 + $0x68] sm:$0xff]  }
 0x44c   :  { %7384 = vmatprep.subr.bf16.mxu1 %v9068_v16  ;;  %v9430_v16 = vld [vmem:[#allocation11 + $0xe8] sm:$0xff]   ;;  %v9460_v43 = vld [vmem:[#allocation11 + $0x1a0] sm:$0xff]  }
 0x44e   :  { %7213 = vmatpush1.bf16.msra.mxu0 %v9065_v20  ;;  %v9435_v20 = vld [vmem:[#allocation11 + $0x30] sm:$0xff]  }
 0x44f   :  { %7385 = vmatpush1.bf16.msra.mxu1 %v9067_v21  ;;  %7214 = vmatprep.subr.bf16.mxu0 %v9074_v22  ;;  %v9436_v21 = vld [vmem:[#allocation11 + $0xb0] sm:$0xff]   ;;  %v9437_v22 = vld [vmem:[#allocation11 + $0x78] sm:$0xff]  }
 0x450   :  { %7386 = vmatprep.subr.bf16.mxu1 %v9076_v23  ;;  %v9438_v23 = vld [vmem:[#allocation11 + $0xf8] sm:$0xff]  }
 0x452   :  { %7215 = vmatpush1.bf16.msra.mxu0 %v9073_v28  ;;  %v9443_v28 = vld [vmem:[#allocation11 + $0x100] sm:$0xff]  }
 0x453   :  { %7387 = vmatpush1.bf16.msra.mxu1 %v9075_v29  ;;  %7216 = vmatprep.subr.bf16.mxu0 %v9082_v31  ;;  %v9444_v29 = vld [vmem:[#allocation11 + $0x180] sm:$0xff]   ;;  %v9445_v31 = vld [vmem:[#allocation11 + $0x148] sm:$0xff]  }
 0x454   :  { %7388 = vmatprep.subr.bf16.mxu1 %v9084_v40  ;;  %v9446_v40 = vld [vmem:[#allocation11 + $0x1c8] sm:$0xff]  }
 0x456   :  { %7217 = vmatpush1.bf16.msra.mxu0 %v9081_v35  ;;  %v9451_v35 = vld [vmem:[#allocation11 + $0x110] sm:$0xff]  }
 0x457   :  { %7389 = vmatpush1.bf16.msra.mxu1 %v9083_v36  ;;  %7218 = vmatprep.subr.bf16.mxu0 %v9090_v49  ;;  %v9452_v36 = vld [vmem:[#allocation11 + $0x190] sm:$0xff]   ;;  %v9453_v49 = vld [vmem:[#allocation11 + $0x158] sm:$0xff]  }
 0x458   :  { %7390 = vmatprep.subr.bf16.mxu1 %v9092_v37  ;;  %v9454_v37 = vld [vmem:[#allocation11 + $0x1d8] sm:$0xff]  }
 0x45a   :  { %7219 = vmatpush1.bf16.msra.mxu0 %v9089_v50  ;;  %v9461_v50 = vld [vmem:[#allocation11 + $0x168] sm:$0xff]  }
 0x45b   :  { %7391 = vmatpush1.bf16.msra.mxu1 %v9091_v51  ;;  %7220 = vmatprep.subr.bf16.mxu0 %v9098_v52  ;;  %v9462_v51 = vld [vmem:[#allocation11 + $0x1e8] sm:$0xff]  }
 0x45c   :  { %7392 = vmatprep.subr.bf16.mxu1 %v9100_v53  ;;  %v9463_v52 = vld [vmem:[#allocation11 + $0x128] sm:$0xff]  }
 0x45d   :  { %v9464_v53 = vld [vmem:[#allocation11 + $0x1a8] sm:$0xff]  }
 0x45e   :  { %7221 = vmatpush1.bf16.msra.mxu0 %v9097_v30  ;;  %v9465_v30 = vld [vmem:[#allocation11 + $0x170] sm:$0xff]  }
 0x45f   :  { %7393 = vmatpush1.bf16.msra.mxu1 %v9099_v60  ;;  %9166 = vmatprep.subr.bf16.mxu0 %v9409_v54  ;;  %v9466_v60 = vld [vmem:[#allocation11 + $0x1f0] sm:$0xff]  }
 0x460   :  { %9188 = vmatprep.subr.bf16.mxu1 %v9410_v0  ;;  %v9467_v54 = vld [vmem:[#allocation11 + $0x130] sm:$0xff]  }
 0x461   :  { %7223 = vmatmul.mubr.bf16.vlgmr.msra.gmra.mrb[12].mxu0 %v9868_v45  ;;  %v9468_v0 = vld [vmem:[#allocation11 + $0x1b0] sm:$0xff]  }
 0x462   :  { %7395 = vmatmul.mubr.bf16.vlgmr.msra.gmra.mrb[12].mxu1 %v9868_v45  ;;  %9167 = vmatpush3.bf16.msra.mxu0 %v9411_v55  ;;  %v9422_v45 = vld [vmem:[#allocation11 + $0xd8] sm:$0xff]  }
 0x463   :  { %7980 = vmatprep.mubr.bf16.mxu0 %v9918_v44  ;;  %9189 = vmatpush3.bf16.msra.mxu1 %v9412_v57  ;;  %v9424_v44 = vld [vmem:[#allocation11 + $0x98] sm:$0xff]  }
 0x464   :  { %8021 = vmatprep.mubr.bf16.mxu1 %v9920_v48  ;;  %9168 = vmatprep.subr.bf16.mxu0 %v9413_v58  ;;  %v9427_v48 = vld [vmem:[#allocation11 + $0x20] sm:$0xff]   ;;  %v9469_v55 = vld [vmem:[#allocation11 + $0x178] sm:$0xff]  }
 0x465   :  { %9190 = vmatprep.subr.bf16.mxu1 %v9414_v61  ;;  %v9470_v57 = vld [vmem:[#allocation11 + $0x1f8] sm:$0xff]  }
 0x466   :  { %9169 = vmatpush3.bf16.msra.mxu0 %v9415_v62  ;;  %v9471_v58 = vld [vmem:[#allocation11 + $0x138] sm:$0xff]   ;;  %v4136_v62 = vrot.slane %v9900_v47, %v593_v5 }
 0x467   :  { %9191 = vmatpush3.bf16.msra.mxu1 %v9416_v63  ;;  %9170 = vmatprep.subr.bf16.mxu0 %v9417_v1  ;;  %v9472_v61 = vld [vmem:[#allocation11 + $0x1b8] sm:$0xff]   ;;  %v4144_v63 = vrot.slane %v9900_v47, %v601_v7  ;;  %v4140_v1 = vrot.slane %v9900_v47, %v597_v8 }
 0x468   :  { %9192 = vmatprep.subr.bf16.mxu1 %v9418_v10  ;;  %v4148_v10 = vrot.slane %v9900_v47, %v605_v9 }
 0x46a   :  { %9171 = vmatpush3.bf16.msra.mxu0 %v9419_v3 }
 0x46b   :  { %9193 = vmatpush3.bf16.msra.mxu1 %v9420_v11  ;;  %9172 = vmatprep.subr.bf16.mxu0 %v9421_v12 }
 0x46c   :  { %9194 = vmatprep.subr.bf16.mxu1 %v9422_v45 }
 0x46e   :  { %9173 = vmatpush3.bf16.msra.mxu0 %v9423_v13 }
 0x46f   :  { %9195 = vmatpush3.bf16.msra.mxu1 %v9424_v44  ;;  %9174 = vmatprep.subr.bf16.mxu0 %v9425_v14 }
 0x470   :  { %9196 = vmatprep.subr.bf16.mxu1 %v9426_v46 }
 0x472   :  { %9175 = vmatpush3.bf16.msra.mxu0 %v9427_v48 }
 0x473   :  { %9197 = vmatpush3.bf16.msra.mxu1 %v9428_v4  ;;  %9176 = vmatprep.subr.bf16.mxu0 %v9429_v15 }
 0x474   :  { %9198 = vmatprep.subr.bf16.mxu1 %v9430_v16 }
 0x476   :  { %9177 = vmatpush3.bf16.msra.mxu0 %v9431_v17 }
 0x477   :  { %9199 = vmatpush3.bf16.msra.mxu1 %v9432_v6  ;;  %9178 = vmatprep.subr.bf16.mxu0 %v9433_v18 }
 0x478   :  { %9200 = vmatprep.subr.bf16.mxu1 %v9434_v19 }
 0x47a   :  { %9179 = vmatpush3.bf16.msra.mxu0 %v9435_v20 }
 0x47b   :  { %9201 = vmatpush3.bf16.msra.mxu1 %v9436_v21  ;;  %9180 = vmatprep.subr.bf16.mxu0 %v9437_v22 }
 0x47c   :  { %9202 = vmatprep.subr.bf16.mxu1 %v9438_v23 }
 0x47e   :  { %9181 = vmatpush3.bf16.msra.mxu0 %v9439_v24 }
 0x47f   :  { %9203 = vmatpush3.bf16.msra.mxu1 %v9440_v25  ;;  %9210 = vmatprep.subr.bf16.mxu0 %v9441_v26 }
 0x480   :  { %9232 = vmatprep.subr.bf16.mxu1 %v9442_v27 }
 0x481   :  { %7981 = vmatmul.mubr.bf16.vlgmr.msra.gmra.mrb[16].mxu0 %v9914_v41  ;;  %v9455_v41 = vld [vmem:[#allocation11 + $0x118] sm:$0xff]  }
 0x482   :  { %8022 = vmatmul.mubr.bf16.vlgmr.msra.gmra.mrb[16].mxu1 %v9916_v42  ;;  %9211 = vmatpush3.bf16.msra.mxu0 %v9443_v28  ;;  %v9456_v42 = vld [vmem:[#allocation11 + $0x198] sm:$0xff]   ;;  %v9101_v28 = vld [vmem:[#allocation13] ss:$0 sm:$0xff] }
 0x483   :  { %9233 = vmatpush3.bf16.msra.mxu1 %v9444_v29  ;;  %9212 = vmatprep.subr.bf16.mxu0 %v9445_v31 }
 0x484   :  { %9234 = vmatprep.subr.bf16.mxu1 %v9446_v40 }
 0x486   :  { %9213 = vmatpush3.bf16.msra.mxu0 %v9447_v59 }
 0x487   :  { %9235 = vmatpush3.bf16.msra.mxu1 %v9448_v32  ;;  %9214 = vmatprep.subr.bf16.mxu0 %v9449_v33 }
 0x488   :  { %9236 = vmatprep.subr.bf16.mxu1 %v9450_v34 }
 0x48a   :  { %9215 = vmatpush3.bf16.msra.mxu0 %v9451_v35 }
 0x48b   :  { %9237 = vmatpush3.bf16.msra.mxu1 %v9452_v36  ;;  %9216 = vmatprep.subr.bf16.mxu0 %v9453_v49 }
 0x48c   :  { %9238 = vmatprep.subr.bf16.mxu1 %v9454_v37 }
 0x48e   :  { %9217 = vmatpush3.bf16.msra.mxu0 %v9455_v41 }
 0x48f   :  { %9239 = vmatpush3.bf16.msra.mxu1 %v9456_v42  ;;  %9218 = vmatprep.subr.bf16.mxu0 %v9457_v2 }
 0x490   :  { %9240 = vmatprep.subr.bf16.mxu1 %v9458_v38 }
 0x492   :  { %9219 = vmatpush3.bf16.msra.mxu0 %v9459_v39 }
 0x493   :  { %9241 = vmatpush3.bf16.msra.mxu1 %v9460_v43  ;;  %9220 = vmatprep.subr.bf16.mxu0 %v9461_v50 }
 0x494   :  { %9242 = vmatprep.subr.bf16.mxu1 %v9462_v51 }
 0x496   :  { %9221 = vmatpush3.bf16.msra.mxu0 %v9463_v52 }
 0x497   :  { %9243 = vmatpush3.bf16.msra.mxu1 %v9464_v53  ;;  %9222 = vmatprep.subr.bf16.mxu0 %v9465_v30 }
 0x498   :  { %9244 = vmatprep.subr.bf16.mxu1 %v9466_v60 }
 0x49a   :  { %9223 = vmatpush3.bf16.msra.mxu0 %v9467_v54 }
 0x49b   :  { %9245 = vmatpush3.bf16.msra.mxu1 %v9468_v0  ;;  %9224 = vmatprep.subr.bf16.mxu0 %v9469_v55 }
 0x49c   :  { %9246 = vmatprep.subr.bf16.mxu1 %v9470_v57 }
 0x49e   :  { %9225 = vmatpush3.bf16.msra.mxu0 %v9471_v58 }
 0x49f   :  { %9247 = vmatpush3.bf16.msra.mxu1 %v9472_v61 }
 0x534   :  { %v7224_v3 = vpop.f32.mrb[12].mxu0 }
 0x535   :  { %v9278_v11 = vadd.f32 %v7224_v3, %v4136_v62  ;;  %v7396_v12 = vpop.f32.mrb[12].mxu1  ;;  %v7226_v45 = vpop.f32.mrb[13].mxu0 }
 0x536   :  { %v9282_v13 = vadd.f32 %v7396_v12, %v4144_v63  ;;  %v9279_v44 = vadd.f32 %v7226_v45, %v4140_v1  ;;  %v7398_v14 = vpop.f32.mrb[13].mxu1  ;;  %v7228_v5 = vpop.f32.mrb[14].mxu0 }
 0x537   :  { %v9283_v46 = vadd.f32 %v7398_v14, %v4148_v10  ;;  %v9280_v48 = vadd.f32 %v7228_v5, %v4136_v62  ;;  %v7400_v4 = vpop.f32.mrb[14].mxu1  ;;  %v7230_v7 = vpop.f32.mrb[15].mxu0  ;;  %v7409_v8 = vmax.f32 %v9278_v11, 0.0 }
 0x538   :  { %v9284_v15 = vadd.f32 %v7400_v4, %v4144_v63  ;;  %v9281_v16 = vadd.f32 %v7230_v7, %v4140_v1  ;;  %v7402_v17 = vpop.f32.mrb[15].mxu1  ;;  %v7411_v18 = vmax.f32 %v9282_v13, 0.0  ;;  %v7410_v9 = vmax.f32 %v9279_v44, 0.0 }
 0x539   :  { %v7417_v6 = vmax.f32 %v9280_v48, 0.0  ;;  %v9285_v56 = vadd.f32 %v7402_v17, %v4148_v10  ;;  %v7412_v20 = vmax.f32 %v9283_v46, 0.0 }
 0x53a   :  { %v7419_v47 = vmax.f32 %v9284_v15, 0.0  ;;  %v7418_v19 = vmax.f32 %v9281_v16, 0.0 }
 0x53b   :  { %v7425_v21 = vpack.c.bf16 %v7417_v6, %v7409_v8  ;;  %v7420_v22 = vmax.f32 %v9285_v56, 0.0 }
 0x53c   :  { %v7427_v23 = vpack.c.bf16 %v7419_v47, %v7411_v18  ;;  %v7426_v24 = vpack.c.bf16 %v7418_v19, %v7410_v9 }
 0x53d   :  { %v7428_v25 = vpack.c.bf16 %v7420_v22, %v7412_v20 }
 0x53e   :  { %8062 = vmatprep.mubr.bf16.mxu0 %v7426_v24 }
 0x53f   :  { %8103 = vmatprep.mubr.bf16.mxu1 %v7428_v25  ;;  %8063 = vmatmul.mubr.bf16.vlgmr.msra.gmra.mrb[20].mxu0 %v7425_v21 }
 0x540   :  { %8104 = vmatmul.mubr.bf16.vlgmr.msra.gmra.mrb[20].mxu1 %v7427_v23 }
 0x554   :  { %v9182_v26 = vpop.f32.mrb[16].mxu0 }
 0x555   :  { %v9204_v27 = vpop.f32.mrb[16].mxu1  ;;  %v9183_v29 = vpop.f32.mrb[17].mxu0 }
 0x556   :  { %v9184_v31 = vadd.f32 %v9183_v29, %v9182_v26  ;;  %v9205_v40 = vpop.f32.mrb[17].mxu1  ;;  %v9185_v59 = vpop.f32.mrb[18].mxu0 }
 0x557   :  { %v9206_v32 = vadd.f32 %v9205_v40, %v9204_v27  ;;  %v9207_v33 = vpop.f32.mrb[18].mxu1  ;;  %v9186_v34 = vpop.f32.mrb[19].mxu0 }
 0x558   :  { %v7983_v35 = vadd.f32 %v9184_v31, %v9101_v28  ;;  %v9187_v36 = vadd.f32 %v9186_v34, %v9185_v59  ;;  %v9208_v49 = vpop.f32.mrb[19].mxu1 }
 0x559   :  { %v9209_v37 = vadd.f32 %v9208_v49, %v9207_v33 }
 0x55a   :  { %v8024_v41 = vadd.f32 %v9206_v32, %v7983_v35  ;;  %v7986_v42 = vadd.f32 %v9187_v36, %v9101_v28 }
 0x55c   :  { %v8027_v2 = vadd.f32 %v9209_v37, %v7986_v42 }
 0x612   :  { %v9226_v38 = vpop.f32.mrb[20].mxu0 }
 0x613   :  { %v9248_v39 = vpop.f32.mrb[20].mxu1  ;;  %v9227_v43 = vpop.f32.mrb[21].mxu0 }
 0x614   :  { %v9228_v50 = vadd.f32 %v9227_v43, %v9226_v38  ;;  %v9249_v51 = vpop.f32.mrb[21].mxu1  ;;  %v9229_v52 = vpop.f32.mrb[22].mxu0 }
 0x615   :  { %v9250_v53 = vadd.f32 %v9249_v51, %v9248_v39  ;;  %v9251_v30 = vpop.f32.mrb[22].mxu1  ;;  %v9230_v60 = vpop.f32.mrb[23].mxu0 }
 0x616   :  { %v8065_v54 = vadd.f32 %v9228_v50, %v8024_v41  ;;  %v9231_v0 = vadd.f32 %v9230_v60, %v9229_v52  ;;  %v9252_v55 = vpop.f32.mrb[23].mxu1 }
 0x617   :  { %v9253_v57 = vadd.f32 %v9252_v55, %v9251_v30 }
 0x618   :  { %v8106_v58 = vadd.f32 %v9250_v53, %v8065_v54  ;;  %v8068_v61 = vadd.f32 %v9231_v0, %v8027_v2 }
 0x61a   :  { %8112 = vst [vmem:[#allocation14] sm:$0xff] %v8106_v58  ;;  %v8109_v62 = vadd.f32 %v9253_v57, %v8068_v61 }
 0x61c   :  { %8113 = vst [vmem:[#allocation14 + $0x8] sm:$0xff] %v8109_v62 }
 0x61d   :  { %9646 = shalt.err (!%p9643_p4)
}
 0x61e   :  { %s9647_s15 = scalar_lea.hbm %s9959_s7, 256 }
 0x61f   :  { %p9648_p5 = scmp.ne.s32.totalorder %s9959_s7, %s9647_s15  ;;  %p9651_p6 = scmp.lt.u32.totalorder %s9647_s15, %s9959_s7 }
 0x621   :  { %p9653_p7 = pnand %p9651_p6, %p9648_p5 }
 0x623   :  { %9656 = shalt.err (!%p9653_p7)
}
 0x624   :  { %s9682_s21 = smov 128   ;;  %s9683_s22 = smov 8  }
 0x625   :  { %8125 = dma.vmem_to_hbm [thread:$0]  %s8120_s3, 256, %s9959_s7, [#allocation4], %s9682_s21, %s9682_s21, %s9683_s22  }
 0x626   :  { %9665 = dma.done.wait [#allocation4], 256  }
 0x627   :  { %9666 = vsyncadd [#allocation4], 4294967040 }
 0x628   :  { %8129 = vsyncpa [#allocation3], 1 }
 0x629   :  { %8130 = vsyncpa [#allocation6], 1 }
 0x62a   :  { %8131 = vsyncpa [#allocation9], 1 }
 0x62b   :  { %8132 = vsyncpa [#allocation12], 1 }
 0x62c   :  { %8133 = vsyncpa [#allocation4], 1 }

</bundles_post_ra>
